<compile_context>
chip_gen: v7x
topology: tpu7x:2x2x1
jax: 0.10.0
libtpu: 0.0.40
codegen_flags: <defaults>
</compile_context>

<pallas_src>
import functools

import jax
import jax.numpy as jnp
from jax.experimental import pallas as pl
from jax.experimental.pallas import tpu as pltpu

N_RBF = 8  # number of Gaussian radial basis functions


def _round_up(x, m):
    return (x + m - 1) // m * m


# ---------------------------------------------------------------------------
# Kernel: tiled pairwise energies + analytic gradient (per-row accumulators)
# ---------------------------------------------------------------------------
def _pair_kernel(nv_ref, wa_ref, wca_ref, scal_ref,
                 pos_i_ref, post_j_ref, posj_ref, loc_i_ref, loct_j_ref,
                 e0i_ref, out_ref, pe_acc, gr_acc,
                 *, r_max, inv_r_max, gamma, tm, tn, n_rbf, compute_virials):
    i = pl.program_id(0)
    j = pl.program_id(1)

    @pl.when(j == 0)
    def _():
        pe_acc[...] = e0i_ref[...]           # start from per-species ref energy
        gr_acc[...] = jnp.zeros_like(gr_acc)

    pos_i = pos_i_ref[...]        # (TM, 3)  row-tile positions
    post_j = post_j_ref[...]      # (3, TN)  column-tile positions (transposed)
    loc_i = loc_i_ref[...]        # (TM, 1)
    loc_j = loct_j_ref[...]       # (1, TN)

    # pairwise displacement components on the VPU (no Gram-matrix cancellation)
    dx = pos_i[:, 0:1] - post_j[0:1, :]
    dy = pos_i[:, 1:2] - post_j[1:2, :]
    dz = pos_i[:, 2:3] - post_j[2:3, :]
    d2 = dx * dx + dy * dy + dz * dz

    # mask from small (TM,1) / (1,TN) index vectors (no full-tile iotas)
    nv = nv_ref[0]
    gi = i * tm + jax.lax.broadcasted_iota(jnp.int32, (tm, 1), 0)   # (TM,1)
    gj = j * tn + jax.lax.broadcasted_iota(jnp.int32, (1, tn), 1)   # (1,TN)
    valid = (gi < nv) & (gj < nv)                                   # bcast

    d2s = jnp.maximum(d2, 1e-12)            # also guards coincident atoms
    inv_d = jax.lax.rsqrt(d2s)              # one EUP rsqrt, no divides
    d = d2s * inv_d

    mask = jnp.where((gi != gj) & valid & (d < r_max), 1.0, 0.0
                     ).astype(jnp.float32)

    # masked region contributes nothing; clamping keeps exp factors bounded
    dcl = jnp.minimum(d, r_max)

    # factorized equally-spaced Gaussian RBFs (3 exps/pair instead of n_rbf):
    #   w_k * exp(-g (d - c_k)^2) = wa_k * base * t^k
    two_g_c0 = scal_ref[0, 0]
    two_g_dc = scal_ref[0, 1]
    base = jnp.exp(dcl * (two_g_c0 - gamma * dcl))
    t = jnp.exp(two_g_dc * dcl)

    s = jnp.zeros_like(d)       # sum_k w_k G_k
    s2 = jnp.zeros_like(d)      # sum_k w_k c_k G_k
    tk = base
    for kk in range(n_rbf):     # static unrolled, n_rbf small
        s = s + wa_ref[0, kk] * tk
        s2 = s2 + wca_ref[0, kk] * tk
        if kk + 1 < n_rbf:
            tk = tk * t
    ds = (2.0 * gamma) * (s2 - dcl * s)     # d/dd of s

    # polynomial cutoff fc(d) = (1 - (d/r_max)^2)^2 and its derivative
    x = dcl * inv_r_max
    omx2 = 1.0 - x * x
    fc = omx2 * omx2
    dfc = (-4.0 * inv_r_max) * x * omx2

    phi = s * fc * mask
    dphi = (ds * fc + s * dfc) * mask

    # per-row pair-energy accumulation (XLU lane reduction)
    pe_acc[...] += jnp.sum(phi, axis=1, keepdims=True)

    # gradient: sum_j coef * (r_i - r_j) = rowsum(coef)*r_i - coef @ r_j  (MXU)
    coef = (loc_i + loc_j) * dphi * inv_d            # (TM, TN)
    coef_sum = jnp.sum(coef, axis=1, keepdims=True)  # (TM, 1)
    gr_acc[...] += coef_sum * pos_i - jnp.dot(
        coef, posj_ref[...], preferred_element_type=jnp.float32,
        precision=jax.lax.Precision.HIGHEST)

    @pl.when(j == pl.num_programs(1) - 1)
    def _():
        node_e = pe_acc[...]                 # (TM, 1)  e0 + pair energy
        forces = -gr_acc[...]                # (TM, 3)  forces = -dE/dr
        e_loc = node_e * loc_i               # (TM, 1)  node_energy * local
        if compute_virials:
            vir_cols = [pos_i[:, a:a + 1] * forces[:, b:b + 1]
                        for a in range(3) for b in range(3)]
        else:
            vir_cols = [jnp.zeros((tm, 1), jnp.float32)] * 9
        pad = jnp.zeros((tm, 2), jnp.float32)
        # single full-slab store: [node_e, fx, fy, fz, e_local, vir(9), 0, 0]
        out_ref[...] = jnp.concatenate([node_e, forces, e_loc] + vir_cols
                                       + [pad], axis=1)


# ---------------------------------------------------------------------------
# Wrapper
# ---------------------------------------------------------------------------
def lammps_mace_forward(positions, node_onehot, local_or_ghost, batch_onehot,
                        atomic_e0, rbf_w, rbf_centers, *,
                        r_max=3.0, gamma=2.0, compute_virials=False):
    n = positions.shape[0]
    z = node_onehot.shape[1]
    g = batch_onehot.shape[1]
    k = rbf_w.shape[-1]
    f32 = jnp.float32

    # Tile sizes: keep >=2 row tiles for mid-size N (v7x megacore sharding on
    # the "parallel" axis); grow the reduction axis for large N to amortize
    # the ~0.35us per-grid-step overhead, raising the scoped-VMEM limit.
    if n <= 128:
        tm, tn = 128, 128
    elif n <= 1024:
        tm, tn = 128, 256
    else:
        tm, tn = 256, 1024
    rows_pad = _round_up(n, tm)          # rows / cols padded independently
    cols_pad = _round_up(n, tn)

    def pad_rows(a, rows):
        a = a.astype(f32)
        return jnp.pad(a, ((0, rows - n), (0, 0)))

    # row-tiled arrays
    pos_r = pad_rows(positions, rows_pad)            # (rows_pad, 3)
    loc_r = pad_rows(local_or_ghost, rows_pad)       # (rows_pad, 1)
    batch_r = pad_rows(batch_onehot, rows_pad)       # (rows_pad, G)
    e0_atom = jnp.sum(node_onehot.astype(f32)
                      * atomic_e0.astype(f32).reshape(1, z),
                      axis=1, keepdims=True)         # (n, 1) exact, no matmul
    e0_r = pad_rows(e0_atom, rows_pad)               # (rows_pad, 1)

    # column-tiled arrays
    pos_c = pad_rows(positions, cols_pad)            # (cols_pad, 3) for MXU dot
    pos_ct = pos_c.T                                 # (3, cols_pad) lane-dense
    loc_ct = pad_rows(local_or_ghost, cols_pad).T    # (1, cols_pad)

    # fold RBF weights for the equally-spaced-centers exp factorization
    gamma = float(gamma)
    r_max = float(r_max)
    centers = rbf_centers.astype(f32).reshape(1, k)
    w = rbf_w.astype(f32).reshape(1, k)
    wa = w * jnp.exp(-gamma * centers * centers)                  # (1, K)
    wca = wa * centers                                            # (1, K)
    c0 = centers[:, 0:1]
    dc = (centers[:, 1:2] - centers[:, 0:1]) if k > 1 else jnp.zeros((1, 1), f32)
    scal = jnp.concatenate([2.0 * gamma * c0, 2.0 * gamma * dc], axis=1)  # (1,2)

    nv = jnp.array([n], jnp.int32)                   # runtime valid-atom count

    smem = pl.BlockSpec(memory_space=pltpu.MemorySpace.SMEM)
    pair_kernel = functools.partial(
        _pair_kernel, r_max=r_max, inv_r_max=1.0 / r_max, gamma=gamma,
        tm=tm, tn=tn, n_rbf=k, compute_virials=bool(compute_virials))

    cost = pl.CostEstimate(
        flops=int((8 * k + 50) * rows_pad * cols_pad),
        transcendentals=int(4 * rows_pad * cols_pad),   # 3 exp + 1 rsqrt / pair
        bytes_accessed=int(4 * (rows_pad * 21 * (cols_pad // tn)
                                + cols_pad * 7 * (rows_pad // tm))))

    slab = pl.pallas_call(
        pair_kernel,
        out_shape=jax.ShapeDtypeStruct((rows_pad, 16), f32),
        grid=(rows_pad // tm, cols_pad // tn),
        in_specs=[
            smem,                                          # n_valid (1,)
            smem,                                          # wa   (1, K)
            smem,                                          # wca  (1, K)
            smem,                                          # scal (1, 2)
            pl.BlockSpec((tm, 3), lambda i, j: (i, 0)),    # row positions
            pl.BlockSpec((3, tn), lambda i, j: (0, j)),    # col positions^T
            pl.BlockSpec((tn, 3), lambda i, j: (j, 0)),    # col positions (MXU)
            pl.BlockSpec((tm, 1), lambda i, j: (i, 0)),    # row local/ghost
            pl.BlockSpec((1, tn), lambda i, j: (0, j)),    # col local/ghost
            pl.BlockSpec((tm, 1), lambda i, j: (i, 0)),    # per-atom e0
        ],
        out_specs=pl.BlockSpec((tm, 16), lambda i, j: (i, 0)),
        scratch_shapes=[pltpu.VMEM((tm, 1), f32),          # pair-energy acc
                        pltpu.VMEM((tm, 3), f32)],         # gradient acc
        compiler_params=pltpu.CompilerParams(
            dimension_semantics=("parallel", "arbitrary"),
            vmem_limit_bytes=(48 * 1024 * 1024 if tn >= 512 else None)),
        cost_estimate=cost,
    )(nv, wa, wca, scal, pos_r, pos_ct, pos_c, loc_r, loc_ct, e0_r)

    # per-graph scatter_sum + virial contraction: one plain-XLA f32 matmul over
    # the atom axis (G is tiny; a second lane-sparse Pallas kernel is slower).
    gsum = jax.lax.dot_general(batch_r, slab,
                               dimension_numbers=(((0,), (0,)), ((), ())),
                               precision=jax.lax.Precision.HIGHEST,
                               preferred_element_type=f32)     # (G, 16)

    node_energy = slab[:n, 0]                  # (N,)
    forces = slab[:n, 1:4]                     # (N, 3)
    total_energy_local = gsum[:, 4]            # (G,)
    virials = gsum[:, 5:14].reshape(g, 3, 3)   # (G, 3, 3)

    return {
        "total_energy_local": total_energy_local,
        "node_energy": node_energy,
        "forces": forces,
        "virials": virials,
    }


# ---------------------------------------------------------------------------
# Pure-JAX reference of the same surrogate (dense, small-N only)
# ---------------------------------------------------------------------------
def _reference(positions, node_onehot, local, batch_onehot, e0, w, centers,
               r_max, gamma, compute_virials):
    n = positions.shape[0]
    diff = positions[:, None, :] - positions[None, :, :]          # (N, N, 3)
    d2 = jnp.sum(diff * diff, axis=-1)
    eye = jnp.eye(n, dtype=jnp.float32)
    d = jnp.sqrt(d2 + eye)
    mask = (1.0 - eye) * (d < r_max).astype(jnp.float32)
    dm = d[..., None] - centers.reshape(1, 1, -1)
    gsn = jnp.exp(-gamma * dm * dm)
    s = jnp.sum(w.reshape(1, 1, -1) * gsn, axis=-1)
    ds = jnp.sum(w.reshape(1, 1, -1) * (-2.0 * gamma * dm) * gsn, axis=-1)
    x = d / r_max
    fc = (1.0 - x * x) ** 2
    dfc = -4.0 * x / r_max * (1.0 - x * x)
    phi = s * fc * mask
    dphi = (ds * fc + s * dfc) * mask
    node_e = (jnp.sum(node_onehot * e0.reshape(1, -1), axis=1, keepdims=True)
              + jnp.sum(phi, axis=1, keepdims=True))               # (N, 1)
    tot = jnp.sum(batch_onehot * (node_e * local), axis=0)         # (G,)
    coef = (local + local.T) * dphi / d
    grad = jnp.sum(coef[..., None] * diff, axis=1)                 # (N, 3)
    forces = -grad
    if compute_virials:
        vir = -jnp.sum(batch_onehot[:, :, None, None]
                       * positions[:, None, :, None]
                       * grad[:, None, None, :], axis=0)           # (G, 3, 3)
    else:
        vir = jnp.zeros((batch_onehot.shape[1], 3, 3), jnp.float32)
    return node_e[:, 0], tot, forces, vir


if __name__ == "__main__":
    key = jax.random.PRNGKey(0)
    k_pos, k_spec, k_local, k_e0, k_w = jax.random.split(key, 5)

    N = 16            # total atoms (local + ghost)
    Z = 4             # number of species
    G = 2             # num_graphs = data['ptr'].numel() - 1
    R_MAX = 3.0
    GAMMA = 2.0

    positions = jax.random.uniform(k_pos, (N, 3), jnp.float32,
                                   minval=0.0, maxval=4.0)
    species = jax.random.randint(k_spec, (N,), 0, Z)
    node_onehot = jax.nn.one_hot(species, Z, dtype=jnp.float32)        # (N, Z)
    local_or_ghost = (jax.random.uniform(k_local, (N, 1)) > 0.25
                      ).astype(jnp.float32)                            # (N, 1)
    batch = jnp.concatenate([jnp.zeros(N // 2, jnp.int32),
                             jnp.ones(N - N // 2, jnp.int32)])
    batch_onehot = jax.nn.one_hot(batch, G, dtype=jnp.float32)         # (N, G)

    atomic_e0 = jax.random.normal(k_e0, (Z, 1), jnp.float32)           # (Z, 1)
    rbf_w = 0.1 * jax.random.normal(k_w, (1, N_RBF), jnp.float32)      # (1, K)
    rbf_centers = jnp.linspace(0.5, R_MAX, N_RBF,
                               dtype=jnp.float32).reshape(1, N_RBF)    # (1, K)

    out = lammps_mace_forward(positions, node_onehot, local_or_ghost,
                              batch_onehot, atomic_e0, rbf_w, rbf_centers,
                              r_max=R_MAX, gamma=GAMMA, compute_virials=True)
    jax.block_until_ready(out)

    assert out["total_energy_local"].shape == (G,)
    assert out["node_energy"].shape == (N,)
    assert out["forces"].shape == (N, 3)
    assert out["virials"].shape == (G, 3, 3)

    ref_ne, ref_tot, ref_f, ref_v = _reference(
        positions, node_onehot, local_or_ghost, batch_onehot, atomic_e0,
        rbf_w, rbf_centers, R_MAX, GAMMA, True)

    assert jnp.allclose(out["node_energy"], ref_ne, rtol=1e-3, atol=1e-3)
    assert jnp.allclose(out["total_energy_local"], ref_tot, rtol=1e-3, atol=1e-3)
    assert jnp.allclose(out["forces"], ref_f, rtol=1e-3, atol=1e-3)
    assert jnp.allclose(out["virials"], ref_v, rtol=1e-3, atol=2e-3)

    print("KERNEL_OK")
</pallas_src>

<mosaic_0001>
module attributes {stable_mosaic.version = 11 : i64} {
  func.func @_pair_kernel(%arg0: i32, %arg1: i32, %arg2: memref<1xi32, #tpu.memory_space<smem>>, %arg3: memref<1x8xf32, #tpu.memory_space<smem>>, %arg4: memref<1x8xf32, #tpu.memory_space<smem>>, %arg5: memref<1x2xf32, #tpu.memory_space<smem>>, %arg6: memref<128x3xf32, #tpu.memory_space<vmem>>, %arg7: memref<3x128xf32, #tpu.memory_space<vmem>>, %arg8: memref<128x3xf32, #tpu.memory_space<vmem>>, %arg9: memref<128x1xf32, #tpu.memory_space<vmem>>, %arg10: memref<1x128xf32, #tpu.memory_space<vmem>>, %arg11: memref<128x1xf32, #tpu.memory_space<vmem>>, %arg12: memref<128x16xf32, #tpu.memory_space<vmem>>, %arg13: memref<128x1xf32, #tpu.memory_space<vmem>>, %arg14: memref<128x3xf32, #tpu.memory_space<vmem>>) attributes {dimension_semantics = [#tpu.dimension_semantics<parallel>, #tpu.dimension_semantics<arbitrary>], iteration_bounds = array<i64: 1, 1>, scalar_prefetch = 0 : i64, scratch_operands = 2 : i64, tpu.core_type = #tpu.core_type<tc>, window_params = [{transform_indices = @transform_0, window_bounds = array<i64: 1>}, {transform_indices = @transform_1, window_bounds = array<i64: 1, 8>}, {transform_indices = @transform_2, window_bounds = array<i64: 1, 8>}, {transform_indices = @transform_3, window_bounds = array<i64: 1, 2>}, {transform_indices = @transform_4, window_bounds = array<i64: 128, 3>}, {transform_indices = @transform_5, window_bounds = array<i64: 3, 128>}, {transform_indices = @transform_6, window_bounds = array<i64: 128, 3>}, {transform_indices = @transform_7, window_bounds = array<i64: 128, 1>}, {transform_indices = @transform_8, window_bounds = array<i64: 1, 128>}, {transform_indices = @transform_9, window_bounds = array<i64: 128, 1>}, {transform_indices = @transform_10, window_bounds = array<i64: 128, 16>}]} {
    %c0_i32 = arith.constant 0 : i32
    %0 = arith.cmpi eq, %arg1, %c0_i32 : i32
    %1 = arith.extui %0 : i1 to i32
    %c0_i32_0 = arith.constant 0 : i32
    %2 = arith.cmpi ne, %1, %c0_i32_0 : i32
    scf.if %2 {
      %c0_65 = arith.constant 0 : index
      %c0_66 = arith.constant 0 : index
      %185 = vector.load %arg11[%c0_65, %c0_66] : memref<128x1xf32, #tpu.memory_space<vmem>>, vector<128x1xf32>
      %c0_67 = arith.constant 0 : index
      %c0_68 = arith.constant 0 : index
      %186 = vector.load %arg13[%c0_67, %c0_68] : memref<128x1xf32, #tpu.memory_space<vmem>>, vector<128x1xf32>
      tpu.vector_store %arg13[%c0_67, %c0_68], %185 {strides = array<i32>} : memref<128x1xf32, #tpu.memory_space<vmem>>, vector<128x1xf32>,
      %cst_69 = arith.constant 0.000000e+00 : f32
      %187 = vector.broadcast %cst_69 : f32 to vector<128x3xf32>
      %c0_70 = arith.constant 0 : index
      %c0_71 = arith.constant 0 : index
      %188 = vector.load %arg14[%c0_70, %c0_71] : memref<128x3xf32, #tpu.memory_space<vmem>>, vector<128x3xf32>
      tpu.vector_store %arg14[%c0_70, %c0_71], %187 {strides = array<i32>} : memref<128x3xf32, #tpu.memory_space<vmem>>, vector<128x3xf32>,
    } else {
    }
    %c0 = arith.constant 0 : index
    %c0_1 = arith.constant 0 : index
    %3 = vector.load %arg6[%c0, %c0_1] : memref<128x3xf32, #tpu.memory_space<vmem>>, vector<128x3xf32>
    %c0_2 = arith.constant 0 : index
    %c0_3 = arith.constant 0 : index
    %4 = vector.load %arg7[%c0_2, %c0_3] : memref<3x128xf32, #tpu.memory_space<vmem>>, vector<3x128xf32>
    %c0_4 = arith.constant 0 : index
    %c0_5 = arith.constant 0 : index
    %5 = vector.load %arg9[%c0_4, %c0_5] : memref<128x1xf32, #tpu.memory_space<vmem>>, vector<128x1xf32>
    %c0_6 = arith.constant 0 : index
    %c0_7 = arith.constant 0 : index
    %6 = vector.load %arg10[%c0_6, %c0_7] : memref<1x128xf32, #tpu.memory_space<vmem>>, vector<1x128xf32>
    %7 = vector.extract_strided_slice %3 {offsets = [0, 0], sizes = [128, 1], strides = [1, 1]} : vector<128x3xf32> to vector<128x1xf32>
    %8 = vector.extract_strided_slice %4 {offsets = [0, 0], sizes = [1, 128], strides = [1, 1]} : vector<3x128xf32> to vector<1x128xf32>
    %9 = vector.broadcast %7 : vector<128x1xf32> to vector<128x128xf32>
    %10 = vector.broadcast %8 : vector<1x128xf32> to vector<128x128xf32>
    %11 = arith.subf %9, %10 : vector<128x128xf32>
    %12 = vector.extract_strided_slice %3 {offsets = [0, 1], sizes = [128, 1], strides = [1, 1]} : vector<128x3xf32> to vector<128x1xf32>
    %13 = vector.extract_strided_slice %4 {offsets = [1, 0], sizes = [1, 128], strides = [1, 1]} : vector<3x128xf32> to vector<1x128xf32>
    %14 = vector.broadcast %12 : vector<128x1xf32> to vector<128x128xf32>
    %15 = vector.broadcast %13 : vector<1x128xf32> to vector<128x128xf32>
    %16 = arith.subf %14, %15 : vector<128x128xf32>
    %17 = vector.extract_strided_slice %3 {offsets = [0, 2], sizes = [128, 1], strides = [1, 1]} : vector<128x3xf32> to vector<128x1xf32>
    %18 = vector.extract_strided_slice %4 {offsets = [2, 0], sizes = [1, 128], strides = [1, 1]} : vector<3x128xf32> to vector<1x128xf32>
    %19 = vector.broadcast %17 : vector<128x1xf32> to vector<128x128xf32>
    %20 = vector.broadcast %18 : vector<1x128xf32> to vector<128x128xf32>
    %21 = arith.subf %19, %20 : vector<128x128xf32>
    %22 = arith.mulf %11, %11 : vector<128x128xf32>
    %23 = arith.mulf %16, %16 : vector<128x128xf32>
    %24 = arith.addf %22, %23 : vector<128x128xf32>
    %25 = arith.mulf %21, %21 : vector<128x128xf32>
    %26 = arith.addf %24, %25 : vector<128x128xf32>
    %c0_8 = arith.constant 0 : index
    %27 = memref.load %arg2[%c0_8] : memref<1xi32, #tpu.memory_space<smem>>
    %c128_i32 = arith.constant 128 : i32
    %28 = arith.muli %arg0, %c128_i32 : i32
    %29 = tpu.iota {dimensions = array<i32: 0>} : vector<128x1xi32>
    %30 = vector.broadcast %28 : i32 to vector<128x1xi32>
    %31 = arith.addi %30, %29 : vector<128x1xi32>
    %c128_i32_9 = arith.constant 128 : i32
    %32 = arith.muli %arg1, %c128_i32_9 : i32
    %33 = tpu.iota {dimensions = array<i32: 1>} : vector<1x128xi32>
    %34 = vector.broadcast %32 : i32 to vector<1x128xi32>
    %35 = arith.addi %34, %33 : vector<1x128xi32>
    %36 = vector.broadcast %27 : i32 to vector<128x1xi32>
    %37 = arith.cmpi slt, %31, %36 : vector<128x1xi32>
    %38 = vector.broadcast %27 : i32 to vector<1x128xi32>
    %39 = arith.cmpi slt, %35, %38 : vector<1x128xi32>
    %40 = vector.broadcast %37 : vector<128x1xi1> to vector<128x128xi1>
    %41 = vector.broadcast %39 : vector<1x128xi1> to vector<128x128xi1>
    %42 = arith.andi %40, %41 : vector<128x128xi1>
    %cst = arith.constant 9.99999996E-13 : f32
    %43 = vector.broadcast %cst : f32 to vector<128x128xf32>
    %44 = arith.maximumf %26, %43 : vector<128x128xf32>
    %45 = math.rsqrt %44 : vector<128x128xf32>
    %46 = arith.mulf %44, %45 : vector<128x128xf32>
    %47 = vector.broadcast %31 : vector<128x1xi32> to vector<128x128xi32>
    %48 = vector.broadcast %35 : vector<1x128xi32> to vector<128x128xi32>
    %49 = arith.cmpi ne, %47, %48 : vector<128x128xi32>
    %50 = arith.andi %49, %42 : vector<128x128xi1>
    %cst_10 = arith.constant 3.000000e+00 : f32
    %51 = vector.broadcast %cst_10 : f32 to vector<128x128xf32>
    %52 = arith.cmpf olt, %46, %51 : vector<128x128xf32>
    %53 = arith.andi %50, %52 : vector<128x128xi1>
    %cst_11 = arith.constant 1.000000e+00 : f32
    %cst_12 = arith.constant 0.000000e+00 : f32
    %54 = vector.broadcast %cst_11 : f32 to vector<128x128xf32>
    %55 = vector.broadcast %cst_12 : f32 to vector<128x128xf32>
    %56 = arith.select %53, %54, %55 : vector<128x128xi1>, vector<128x128xf32>
    %cst_13 = arith.constant 3.000000e+00 : f32
    %57 = vector.broadcast %cst_13 : f32 to vector<128x128xf32>
    %58 = arith.minimumf %46, %57 : vector<128x128xf32>
    %c0_14 = arith.constant 0 : index
    %c0_15 = arith.constant 0 : index
    %59 = memref.load %arg5[%c0_14, %c0_15] : memref<1x2xf32, #tpu.memory_space<smem>>
    %c0_16 = arith.constant 0 : index
    %c1 = arith.constant 1 : index
    %60 = memref.load %arg5[%c0_16, %c1] : memref<1x2xf32, #tpu.memory_space<smem>>
    %cst_17 = arith.constant 2.000000e+00 : f32
    %61 = vector.broadcast %cst_17 : f32 to vector<128x128xf32>
    %62 = arith.mulf %61, %58 : vector<128x128xf32>
    %63 = vector.broadcast %59 : f32 to vector<128x128xf32>
    %64 = arith.subf %63, %62 : vector<128x128xf32>
    %65 = arith.mulf %58, %64 : vector<128x128xf32>
    %66 = math.exp %65 : vector<128x128xf32>
    %67 = vector.broadcast %60 : f32 to vector<128x128xf32>
    %68 = arith.mulf %67, %58 : vector<128x128xf32>
    %69 = math.exp %68 : vector<128x128xf32>
    %cst_18 = arith.constant 0.000000e+00 : f32
    %70 = vector.broadcast %cst_18 : f32 to vector<128x128xf32>
    %cst_19 = arith.constant 0.000000e+00 : f32
    %71 = vector.broadcast %cst_19 : f32 to vector<128x128xf32>
    %c0_20 = arith.constant 0 : index
    %c0_21 = arith.constant 0 : index
    %72 = memref.load %arg3[%c0_20, %c0_21] : memref<1x8xf32, #tpu.memory_space<smem>>
    %73 = vector.broadcast %72 : f32 to vector<128x128xf32>
    %74 = arith.mulf %73, %66 : vector<128x128xf32>
    %75 = arith.addf %70, %74 : vector<128x128xf32>
    %c0_22 = arith.constant 0 : index
    %c0_23 = arith.constant 0 : index
    %76 = memref.load %arg4[%c0_22, %c0_23] : memref<1x8xf32, #tpu.memory_space<smem>>
    %77 = vector.broadcast %76 : f32 to vector<128x128xf32>
    %78 = arith.mulf %77, %66 : vector<128x128xf32>
    %79 = arith.addf %71, %78 : vector<128x128xf32>
    %80 = arith.mulf %66, %69 : vector<128x128xf32>
    %c0_24 = arith.constant 0 : index
    %c1_25 = arith.constant 1 : index
    %81 = memref.load %arg3[%c0_24, %c1_25] : memref<1x8xf32, #tpu.memory_space<smem>>
    %82 = vector.broadcast %81 : f32 to vector<128x128xf32>
    %83 = arith.mulf %82, %80 : vector<128x128xf32>
    %84 = arith.addf %75, %83 : vector<128x128xf32>
    %c0_26 = arith.constant 0 : index
    %c1_27 = arith.constant 1 : index
    %85 = memref.load %arg4[%c0_26, %c1_27] : memref<1x8xf32, #tpu.memory_space<smem>>
    %86 = vector.broadcast %85 : f32 to vector<128x128xf32>
    %87 = arith.mulf %86, %80 : vector<128x128xf32>
    %88 = arith.addf %79, %87 : vector<128x128xf32>
    %89 = arith.mulf %80, %69 : vector<128x128xf32>
    %c0_28 = arith.constant 0 : index
    %c2 = arith.constant 2 : index
    %90 = memref.load %arg3[%c0_28, %c2] : memref<1x8xf32, #tpu.memory_space<smem>>
    %91 = vector.broadcast %90 : f32 to vector<128x128xf32>
    %92 = arith.mulf %91, %89 : vector<128x128xf32>
    %93 = arith.addf %84, %92 : vector<128x128xf32>
    %c0_29 = arith.constant 0 : index
    %c2_30 = arith.constant 2 : index
    %94 = memref.load %arg4[%c0_29, %c2_30] : memref<1x8xf32, #tpu.memory_space<smem>>
    %95 = vector.broadcast %94 : f32 to vector<128x128xf32>
    %96 = arith.mulf %95, %89 : vector<128x128xf32>
    %97 = arith.addf %88, %96 : vector<128x128xf32>
    %98 = arith.mulf %89, %69 : vector<128x128xf32>
    %c0_31 = arith.constant 0 : index
    %c3 = arith.constant 3 : index
    %99 = memref.load %arg3[%c0_31, %c3] : memref<1x8xf32, #tpu.memory_space<smem>>
    %100 = vector.broadcast %99 : f32 to vector<128x128xf32>
    %101 = arith.mulf %100, %98 : vector<128x128xf32>
    %102 = arith.addf %93, %101 : vector<128x128xf32>
    %c0_32 = arith.constant 0 : index
    %c3_33 = arith.constant 3 : index
    %103 = memref.load %arg4[%c0_32, %c3_33] : memref<1x8xf32, #tpu.memory_space<smem>>
    %104 = vector.broadcast %103 : f32 to vector<128x128xf32>
    %105 = arith.mulf %104, %98 : vector<128x128xf32>
    %106 = arith.addf %97, %105 : vector<128x128xf32>
    %107 = arith.mulf %98, %69 : vector<128x128xf32>
    %c0_34 = arith.constant 0 : index
    %c4 = arith.constant 4 : index
    %108 = memref.load %arg3[%c0_34, %c4] : memref<1x8xf32, #tpu.memory_space<smem>>
    %109 = vector.broadcast %108 : f32 to vector<128x128xf32>
    %110 = arith.mulf %109, %107 : vector<128x128xf32>
    %111 = arith.addf %102, %110 : vector<128x128xf32>
    %c0_35 = arith.constant 0 : index
    %c4_36 = arith.constant 4 : index
    %112 = memref.load %arg4[%c0_35, %c4_36] : memref<1x8xf32, #tpu.memory_space<smem>>
    %113 = vector.broadcast %112 : f32 to vector<128x128xf32>
    %114 = arith.mulf %113, %107 : vector<128x128xf32>
    %115 = arith.addf %106, %114 : vector<128x128xf32>
    %116 = arith.mulf %107, %69 : vector<128x128xf32>
    %c0_37 = arith.constant 0 : index
    %c5 = arith.constant 5 : index
    %117 = memref.load %arg3[%c0_37, %c5] : memref<1x8xf32, #tpu.memory_space<smem>>
    %118 = vector.broadcast %117 : f32 to vector<128x128xf32>
    %119 = arith.mulf %118, %116 : vector<128x128xf32>
    %120 = arith.addf %111, %119 : vector<128x128xf32>
    %c0_38 = arith.constant 0 : index
    %c5_39 = arith.constant 5 : index
    %121 = memref.load %arg4[%c0_38, %c5_39] : memref<1x8xf32, #tpu.memory_space<smem>>
    %122 = vector.broadcast %121 : f32 to vector<128x128xf32>
    %123 = arith.mulf %122, %116 : vector<128x128xf32>
    %124 = arith.addf %115, %123 : vector<128x128xf32>
    %125 = arith.mulf %116, %69 : vector<128x128xf32>
    %c0_40 = arith.constant 0 : index
    %c6 = arith.constant 6 : index
    %126 = memref.load %arg3[%c0_40, %c6] : memref<1x8xf32, #tpu.memory_space<smem>>
    %127 = vector.broadcast %126 : f32 to vector<128x128xf32>
    %128 = arith.mulf %127, %125 : vector<128x128xf32>
    %129 = arith.addf %120, %128 : vector<128x128xf32>
    %c0_41 = arith.constant 0 : index
    %c6_42 = arith.constant 6 : index
    %130 = memref.load %arg4[%c0_41, %c6_42] : memref<1x8xf32, #tpu.memory_space<smem>>
    %131 = vector.broadcast %130 : f32 to vector<128x128xf32>
    %132 = arith.mulf %131, %125 : vector<128x128xf32>
    %133 = arith.addf %124, %132 : vector<128x128xf32>
    %134 = arith.mulf %125, %69 : vector<128x128xf32>
    %c0_43 = arith.constant 0 : index
    %c7 = arith.constant 7 : index
    %135 = memref.load %arg3[%c0_43, %c7] : memref<1x8xf32, #tpu.memory_space<smem>>
    %136 = vector.broadcast %135 : f32 to vector<128x128xf32>
    %137 = arith.mulf %136, %134 : vector<128x128xf32>
    %138 = arith.addf %129, %137 : vector<128x128xf32>
    %c0_44 = arith.constant 0 : index
    %c7_45 = arith.constant 7 : index
    %139 = memref.load %arg4[%c0_44, %c7_45] : memref<1x8xf32, #tpu.memory_space<smem>>
    %140 = vector.broadcast %139 : f32 to vector<128x128xf32>
    %141 = arith.mulf %140, %134 : vector<128x128xf32>
    %142 = arith.addf %133, %141 : vector<128x128xf32>
    %143 = arith.mulf %58, %138 : vector<128x128xf32>
    %144 = arith.subf %142, %143 : vector<128x128xf32>
    %cst_46 = arith.constant 4.000000e+00 : f32
    %145 = vector.broadcast %cst_46 : f32 to vector<128x128xf32>
    %146 = arith.mulf %145, %144 : vector<128x128xf32>
    %cst_47 = arith.constant 0.333333343 : f32
    %147 = vector.broadcast %cst_47 : f32 to vector<128x128xf32>
    %148 = arith.mulf %58, %147 : vector<128x128xf32>
    %149 = arith.mulf %148, %148 : vector<128x128xf32>
    %cst_48 = arith.constant 1.000000e+00 : f32
    %150 = vector.broadcast %cst_48 : f32 to vector<128x128xf32>
    %151 = arith.subf %150, %149 : vector<128x128xf32>
    %152 = arith.mulf %151, %151 : vector<128x128xf32>
    %cst_49 = arith.constant -1.33333337 : f32
    %153 = vector.broadcast %cst_49 : f32 to vector<128x128xf32>
    %154 = arith.mulf %153, %148 : vector<128x128xf32>
    %155 = arith.mulf %154, %151 : vector<128x128xf32>
    %156 = arith.mulf %138, %152 : vector<128x128xf32>
    %157 = arith.mulf %156, %56 : vector<128x128xf32>
    %158 = arith.mulf %146, %152 : vector<128x128xf32>
    %159 = arith.mulf %138, %155 : vector<128x128xf32>
    %160 = arith.addf %158, %159 : vector<128x128xf32>
    %161 = arith.mulf %160, %56 : vector<128x128xf32>
    %c0_50 = arith.constant 0 : index
    %c0_51 = arith.constant 0 : index
    %162 = vector.load %arg13[%c0_50, %c0_51] : memref<128x1xf32, #tpu.memory_space<vmem>>, vector<128x1xf32>
    %cst_52 = arith.constant dense<0.000000e+00> : vector<128xf32>
    %163 = vector.multi_reduction <add>, %157, %cst_52 [1] : vector<128x128xf32> to vector<128xf32>
    %164 = vector.shape_cast %163 : vector<128xf32> to vector<128x1xf32>
    %165 = arith.addf %162, %164 : vector<128x1xf32>
    %c0_53 = arith.constant 0 : index
    %c0_54 = arith.constant 0 : index
    %166 = vector.load %arg13[%c0_53, %c0_54] : memref<128x1xf32, #tpu.memory_space<vmem>>, vector<128x1xf32>
    tpu.vector_store %arg13[%c0_53, %c0_54], %165 {strides = array<i32>} : memref<128x1xf32, #tpu.memory_space<vmem>>, vector<128x1xf32>,
    %167 = vector.broadcast %5 : vector<128x1xf32> to vector<128x128xf32>
    %168 = vector.broadcast %6 : vector<1x128xf32> to vector<128x128xf32>
    %169 = arith.addf %167, %168 : vector<128x128xf32>
    %170 = arith.mulf %169, %161 : vector<128x128xf32>
    %171 = arith.mulf %170, %45 : vector<128x128xf32>
    %cst_55 = arith.constant dense<0.000000e+00> : vector<128xf32>
    %172 = vector.multi_reduction <add>, %171, %cst_55 [1] : vector<128x128xf32> to vector<128xf32>
    %173 = vector.shape_cast %172 : vector<128xf32> to vector<128x1xf32>
    %c0_56 = arith.constant 0 : index
    %c0_57 = arith.constant 0 : index
    %174 = vector.load %arg14[%c0_56, %c0_57] : memref<128x3xf32, #tpu.memory_space<vmem>>, vector<128x3xf32>
    %175 = vector.broadcast %173 : vector<128x1xf32> to vector<128x3xf32>
    %176 = arith.mulf %175, %3 : vector<128x3xf32>
    %c0_58 = arith.constant 0 : index
    %c0_59 = arith.constant 0 : index
    %177 = vector.load %arg8[%c0_58, %c0_59] : memref<128x3xf32, #tpu.memory_space<vmem>>, vector<128x3xf32>
    %cst_60 = arith.constant dense<0.000000e+00> : vector<128x3xf32>
    %178 = tpu.matmul %171, %177, %cst_60 {dimension_numbers = #tpu.dot_dimension_numbers<[1], [0], [0], [1], [0, 0, 1, 1], [], []>, precision = #tpu.contract_precision<fp32>} : vector<128x128xf32>, vector<128x3xf32>, vector<128x3xf32> -> vector<128x3xf32>
    %179 = arith.subf %176, %178 : vector<128x3xf32>
    %180 = arith.addf %174, %179 : vector<128x3xf32>
    %c0_61 = arith.constant 0 : index
    %c0_62 = arith.constant 0 : index
    %181 = vector.load %arg14[%c0_61, %c0_62] : memref<128x3xf32, #tpu.memory_space<vmem>>, vector<128x3xf32>
    tpu.vector_store %arg14[%c0_61, %c0_62], %180 {strides = array<i32>} : memref<128x3xf32, #tpu.memory_space<vmem>>, vector<128x3xf32>,
    %c0_i32_63 = arith.constant 0 : i32
    %182 = arith.cmpi eq, %arg1, %c0_i32_63 : i32
    %183 = arith.extui %182 : i1 to i32
    %c0_i32_64 = arith.constant 0 : i32
    %184 = arith.cmpi ne, %183, %c0_i32_64 : i32
    scf.if %184 {
      %c0_65 = arith.constant 0 : index
      %c0_66 = arith.constant 0 : index
      %185 = vector.load %arg13[%c0_65, %c0_66] : memref<128x1xf32, #tpu.memory_space<vmem>>, vector<128x1xf32>
      %c0_67 = arith.constant 0 : index
      %c0_68 = arith.constant 0 : index
      %186 = vector.load %arg14[%c0_67, %c0_68] : memref<128x3xf32, #tpu.memory_space<vmem>>, vector<128x3xf32>
      %cst_69 = arith.constant 0.000000e+00 : f32
      %187 = vector.broadcast %cst_69 : f32 to vector<128x3xf32>
      %188 = arith.subf %187, %186 : vector<128x3xf32>
      %189 = arith.mulf %185, %5 : vector<128x1xf32>
      %190 = vector.extract_strided_slice %3 {offsets = [0, 0], sizes = [128, 1], strides = [1, 1]} : vector<128x3xf32> to vector<128x1xf32>
      %191 = vector.extract_strided_slice %188 {offsets = [0, 0], sizes = [128, 1], strides = [1, 1]} : vector<128x3xf32> to vector<128x1xf32>
      %192 = arith.mulf %190, %191 : vector<128x1xf32>
      %193 = vector.extract_strided_slice %3 {offsets = [0, 0], sizes = [128, 1], strides = [1, 1]} : vector<128x3xf32> to vector<128x1xf32>
      %194 = vector.extract_strided_slice %188 {offsets = [0, 1], sizes = [128, 1], strides = [1, 1]} : vector<128x3xf32> to vector<128x1xf32>
      %195 = arith.mulf %193, %194 : vector<128x1xf32>
      %196 = vector.extract_strided_slice %3 {offsets = [0, 0], sizes = [128, 1], strides = [1, 1]} : vector<128x3xf32> to vector<128x1xf32>
      %197 = vector.extract_strided_slice %188 {offsets = [0, 2], sizes = [128, 1], strides = [1, 1]} : vector<128x3xf32> to vector<128x1xf32>
      %198 = arith.mulf %196, %197 : vector<128x1xf32>
      %199 = vector.extract_strided_slice %3 {offsets = [0, 1], sizes = [128, 1], strides = [1, 1]} : vector<128x3xf32> to vector<128x1xf32>
      %200 = vector.extract_strided_slice %188 {offsets = [0, 0], sizes = [128, 1], strides = [1, 1]} : vector<128x3xf32> to vector<128x1xf32>
      %201 = arith.mulf %199, %200 : vector<128x1xf32>
      %202 = vector.extract_strided_slice %3 {offsets = [0, 1], sizes = [128, 1], strides = [1, 1]} : vector<128x3xf32> to vector<128x1xf32>
      %203 = vector.extract_strided_slice %188 {offsets = [0, 1], sizes = [128, 1], strides = [1, 1]} : vector<128x3xf32> to vector<128x1xf32>
      %204 = arith.mulf %202, %203 : vector<128x1xf32>
      %205 = vector.extract_strided_slice %3 {offsets = [0, 1], sizes = [128, 1], strides = [1, 1]} : vector<128x3xf32> to vector<128x1xf32>
      %206 = vector.extract_strided_slice %188 {offsets = [0, 2], sizes = [128, 1], strides = [1, 1]} : vector<128x3xf32> to vector<128x1xf32>
      %207 = arith.mulf %205, %206 : vector<128x1xf32>
      %208 = vector.extract_strided_slice %3 {offsets = [0, 2], sizes = [128, 1], strides = [1, 1]} : vector<128x3xf32> to vector<128x1xf32>
      %209 = vector.extract_strided_slice %188 {offsets = [0, 0], sizes = [128, 1], strides = [1, 1]} : vector<128x3xf32> to vector<128x1xf32>
      %210 = arith.mulf %208, %209 : vector<128x1xf32>
      %211 = vector.extract_strided_slice %3 {offsets = [0, 2], sizes = [128, 1], strides = [1, 1]} : vector<128x3xf32> to vector<128x1xf32>
      %212 = vector.extract_strided_slice %188 {offsets = [0, 1], sizes = [128, 1], strides = [1, 1]} : vector<128x3xf32> to vector<128x1xf32>
      %213 = arith.mulf %211, %212 : vector<128x1xf32>
      %214 = vector.extract_strided_slice %3 {offsets = [0, 2], sizes = [128, 1], strides = [1, 1]} : vector<128x3xf32> to vector<128x1xf32>
      %215 = vector.extract_strided_slice %188 {offsets = [0, 2], sizes = [128, 1], strides = [1, 1]} : vector<128x3xf32> to vector<128x1xf32>
      %216 = arith.mulf %214, %215 : vector<128x1xf32>
      %cst_70 = arith.constant 0.000000e+00 : f32
      %217 = vector.broadcast %cst_70 : f32 to vector<128x2xf32>
      %218 = tpu.concatenate %185, %188, %189, %192, %195, %198, %201, %204, %207, %210, %213, %216, %217 in 1 : vector<128x1xf32>, vector<128x3xf32>, vector<128x1xf32>, vector<128x1xf32>, vector<128x1xf32>, vector<128x1xf32>, vector<128x1xf32>, vector<128x1xf32>, vector<128x1xf32>, vector<128x1xf32>, vector<128x1xf32>, vector<128x1xf32>, vector<128x2xf32> -> vector<128x16xf32>
      %c0_71 = arith.constant 0 : index
      %c0_72 = arith.constant 0 : index
      %219 = vector.load %arg12[%c0_71, %c0_72] : memref<128x16xf32, #tpu.memory_space<vmem>>, vector<128x16xf32>
      tpu.vector_store %arg12[%c0_71, %c0_72], %218 {strides = array<i32>} : memref<128x16xf32, #tpu.memory_space<vmem>>, vector<128x16xf32>,
    } else {
    }
    return
  }
  func.func @transform_0(%arg0: i32, %arg1: i32) -> i32 {
    %c0_i32 = arith.constant 0 : i32
    %c0_i32_0 = arith.constant 0 : i32
    return %c0_i32 : i32
  }
  func.func @transform_1(%arg0: i32, %arg1: i32) -> (i32, i32) {
    %c0_i32 = arith.constant 0 : i32
    %c0_i32_0 = arith.constant 0 : i32
    %c0_i32_1 = arith.constant 0 : i32
    return %c0_i32, %c0_i32_0 : i32, i32
  }
  func.func @transform_2(%arg0: i32, %arg1: i32) -> (i32, i32) {
    %c0_i32 = arith.constant 0 : i32
    %c0_i32_0 = arith.constant 0 : i32
    %c0_i32_1 = arith.constant 0 : i32
    return %c0_i32, %c0_i32_0 : i32, i32
  }
  func.func @transform_3(%arg0: i32, %arg1: i32) -> (i32, i32) {
    %c0_i32 = arith.constant 0 : i32
    %c0_i32_0 = arith.constant 0 : i32
    %c0_i32_1 = arith.constant 0 : i32
    return %c0_i32, %c0_i32_0 : i32, i32
  }
  func.func @transform_4(%arg0: i32, %arg1: i32) -> (i32, i32) {
    %c0_i32 = arith.constant 0 : i32
    %c0_i32_0 = arith.constant 0 : i32
    return %arg0, %c0_i32 : i32, i32
  }
  func.func @transform_5(%arg0: i32, %arg1: i32) -> (i32, i32) {
    %c0_i32 = arith.constant 0 : i32
    %c0_i32_0 = arith.constant 0 : i32
    return %c0_i32, %arg1 : i32, i32
  }
  func.func @transform_6(%arg0: i32, %arg1: i32) -> (i32, i32) {
    %c0_i32 = arith.constant 0 : i32
    %c0_i32_0 = arith.constant 0 : i32
    return %arg1, %c0_i32 : i32, i32
  }
  func.func @transform_7(%arg0: i32, %arg1: i32) -> (i32, i32) {
    %c0_i32 = arith.constant 0 : i32
    %c0_i32_0 = arith.constant 0 : i32
    return %arg0, %c0_i32 : i32, i32
  }
  func.func @transform_8(%arg0: i32, %arg1: i32) -> (i32, i32) {
    %c0_i32 = arith.constant 0 : i32
    %c0_i32_0 = arith.constant 0 : i32
    return %c0_i32, %arg1 : i32, i32
  }
  func.func @transform_9(%arg0: i32, %arg1: i32) -> (i32, i32) {
    %c0_i32 = arith.constant 0 : i32
    %c0_i32_0 = arith.constant 0 : i32
    return %arg0, %c0_i32 : i32, i32
  }
  func.func @transform_10(%arg0: i32, %arg1: i32) -> (i32, i32) {
    %c0_i32 = arith.constant 0 : i32
    %c0_i32_0 = arith.constant 0 : i32
    return %arg0, %c0_i32 : i32, i32
  }
}

</mosaic_0001>

<bundles_post_ra>
// kernel: tpu_custom_call.1
= control target key start
LH: loop header
LB: loop body
LE: loop exit
PB: predicated region body
PF: predicated region fallthrough
CT: control target
= control target key end

     0   :  { %16 = vsyncpa [#allocation6], 0  ;;  %s9499_s0 = inlined_call_operand.<no memory space> [shape: s32[1], index: 0, kind: input, shape index: {}]   ;;  %s9500_s1 = inlined_call_operand.vmem [shape: f32[1,8], index: 1, kind: input, shape index: {}]   ;;  %s9501_s2 = inlined_call_operand.vmem [shape: f32[1,8], index: 2, kind: input, shape index: {}]   ;;  %s9502_s3 = inlined_call_operand.vmem [shape: f32[1,2], index: 3, kind: input, shape index: {}]   ;;  %s9503_s4 = inlined_call_operand.vmem [shape: f32[128,3], index: 4, kind: input, shape index: {}]   ;;  %s9504_s5 = inlined_call_operand.vmem [shape: f32[3,128], index: 5, kind: input, shape index: {}]   ;;  %s9505_s6 = inlined_call_operand.vmem [shape: f32[128,3], index: 6, kind: input, shape index: {}]   ;;  %s9506_s7 = inlined_call_operand.vmem [shape: f32[128,1], index: 7, kind: input, shape index: {}]   ;;  %s9507_s8 = inlined_call_operand.vmem [shape: f32[1,128], index: 8, kind: input, shape index: {}]   ;;  %s9508_s9 = inlined_call_operand.vmem [shape: f32[128,1], index: 9, kind: input, shape index: {}]   ;;  %s9509_s10 = inlined_call_operand.vmem [shape: f32[128,16], index: 10, kind: output, shape index: {}]  }
   0x1   :  { %17 = vsyncpa [#allocation8], 0  ;;  %s36_s15 = sshll.u32 %s9501_s2, 4  ;;  %s26_s18 = sshll.u32 %s9500_s1, 4  ;;  %s37_s15 = int_to_ptr.vmem [resolvable:$true] %s36_s15  ;;  %s27_s18 = int_to_ptr.vmem [resolvable:$true] %s26_s18 }
   0x2   :  { %s5549_s19 = scalar_lea.vmem %s37_s15, 16  ;;  %p5554_p1 = scmp.lt.s32.totalorder %s37_s15, %s37_s15 }
   0x3   :  { %p5550_p0 = scmp.ne.s32.totalorder %s37_s15, %s5549_s19  ;;  %p5555_p2 = scmp.lt.s32.totalorder %s5549_s19, %s5549_s19 }
   0x5   :  { %p5556_p3 = por %p5555_p2, %p5554_p1 }
   0x7   :  { %p5557_p4 = pnand %p5556_p3, %p5550_p0 }
   0x9   :  { %5560 = shalt.err (!%p5557_p4)
}
   0xa   :  { %s5589_s20 = smov [#allocation7]   ;;  %s5561_s21 = scalar_lea.vmem %s27_s18, 16 }
   0xb   :  { %39 = dma.vmem_to_smem %s37_s15, 16, %s5589_s20, [#allocation8]  }
   0xc   :  { %p5562_p5 = scmp.ne.s32.totalorder %s27_s18, %s5561_s21  ;;  %p5566_p6 = scmp.lt.s32.totalorder %s27_s18, %s27_s18 }
   0xd   :  { %p5567_p7 = scmp.lt.s32.totalorder %s5561_s21, %s5561_s21 }
   0xf   :  { %p5568_p8 = por %p5567_p7, %p5566_p6 }
  0x11   :  { %p5569_p9 = pnand %p5568_p8, %p5562_p5 }
  0x13   :  { %5572 = shalt.err (!%p5569_p9)
}
  0x14   :  { %s5590_s2 = smov [#allocation5]   ;;  %s46_s23 = sshll.u32 %s9502_s3, 4  ;;  %s47_s23 = int_to_ptr.vmem [resolvable:$true] %s46_s23 }
  0x15   :  { %29 = dma.vmem_to_smem %s27_s18, 16, %s5590_s2, [#allocation6]  }
  0x16   :  { %s5573_s24 = scalar_lea.vmem %s47_s23, 16  ;;  %p5578_p11 = scmp.lt.s32.totalorder %s47_s23, %s47_s23 }
  0x17   :  { %p5574_p10 = scmp.ne.s32.totalorder %s47_s23, %s5573_s24  ;;  %p5579_p12 = scmp.lt.s32.totalorder %s5573_s24, %s5573_s24 }
  0x19   :  { %p5580_p13 = por %p5579_p12, %p5578_p11 }
  0x1b   :  { %p5581_p0 = pnand %p5580_p13, %p5574_p10 }
  0x1d   :  { %5584 = shalt.err (!%p5581_p0)
}
  0x1e   :  { %s5591_s25 = smov [#allocation9]  }
  0x1f   :  { %49 = dma.vmem_to_smem %s47_s23, 16, %s5591_s25, [#allocation8]  }
  0x20   :  { %5585 = dma.done.wait [#allocation6], 16  }
  0x21   :  { %5586 = vsyncadd [#allocation6], 4294967280 }
  0x22   :  { %5587 = dma.done.wait [#allocation8], 32  }
  0x23   :  { %5588 = vsyncadd [#allocation8], 4294967264 }
  0x24   :  { %71 = sfence }
  0x25   :  { %v128_v0 = vld [vmem:[%s9503_s4 + $0x10] sm:$0xff]  ;;  %v126_v1 = vld [vmem:[%s9503_s4] sm:$0xff]  ;;  %v5592_v2 = vmov 1   ;;  %v5593_v3 = vmov 0   ;;  %v129_v4 = vld [vmem:[%s9503_s4 + $0x18] sm:$0xff]  ;;  %v5594_v12 = vmov 2   ;;  %v240_v40 = vlaneseq }
  0x26   :  { %5412 = vset.pattern.permute.xlu0 %v5592_v2  ;;  %5411 = vset.pattern.permute.xlu1 %v5593_v3  ;;  %v131_v5 = vld [vmem:[%s9503_s4 + $0x28] sm:$0xff]  ;;  %v133_v6 = vld [vmem:[%s9503_s4 + $0x38] sm:$0xff]  ;;  %v130_v13 = vld [vmem:[%s9503_s4 + $0x20] sm:$0xff]  ;;  %s5772_s16 = sld [smem:[#allocation9 + $0x1]]  ;;  %s5774_s17 = sld [smem:[#allocation9]]  ;;  %v5829_v56 = vstv %s9499_s0 }
  0x27   :  { %172 = vperm.xlu1 %5411, %v128_v0   ;;  %261 = vperm.xlu0 %5412, %v126_v1   ;;  %v135_v7 = vld [vmem:[%s9503_s4 + $0x48] sm:$0xff]  ;;  %v137_v8 = vld [vmem:[%s9503_s4 + $0x58] sm:$0xff]  ;;  %v132_v14 = vld [vmem:[%s9503_s4 + $0x30] sm:$0xff]  ;;  %v5770_v43 = vshrl.u32 %v240_v40, 7  ;;  %s5776_s18 = sld [smem:[#allocation5]]  ;;  %s5780_s20 = sld [smem:[#allocation5 + $0x1]] }
  0x28   :  { %v139_v9 = vld [vmem:[%s9503_s4 + $0x68] sm:$0xff]  ;;  %v141_v10 = vld [vmem:[%s9503_s4 + $0x78] sm:$0xff]  ;;  %v134_v15 = vld [vmem:[%s9503_s4 + $0x40] sm:$0xff]  ;;  %s5778_s19 = sld [smem:[#allocation7]]  ;;  %s5786_s21 = sld [smem:[#allocation7 + $0x1]]  ;;  %v5824_v55 = vand.u32 127, %v240_v40 }
  0x29   :  { %v127_v11 = vld [vmem:[%s9503_s4 + $0x8] sm:$0xff]  ;;  %v136_v16 = vld [vmem:[%s9503_s4 + $0x50] sm:$0xff]  ;;  %v138_v17 = vld [vmem:[%s9503_s4 + $0x60] sm:$0xff]  ;;  %9655 = vst [vmem:[#allocation12_spill] sm:$0xff] %v5770_v43  ;;  %s5788_s2 = sld [smem:[#allocation5 + $0x2]]  ;;  %v242_v46 = vsub.s32 0, %v5770_v43  ;;  %vm550_vm0 = vcmp.lt.s32.totalorder %v5770_v43, %v5829_v56 }
  0x2a   :  { %v140_v18 = vld [vmem:[%s9503_s4 + $0x70] sm:$0xff]  ;;  %v143_v19 = vld [vmem:[%s9506_s7] sm:$0xff]  ;;  %v326_v47 = vsub.s32 1, %v5770_v43  ;;  %s5792_s1 = sld [smem:[#allocation7 + $0x2]]  ;;  %s5794_s22 = sld [smem:[#allocation5 + $0x3]]  ;;  %v410_v49 = vsub.s32 2, %v5770_v43  ;;  %vm6030_vm1 = vcmp.lt.s32.totalorder %v5824_v55, %v5829_v56  ;;  %vm665_vm3 = vcmp.ne.s32.totalorder %v5770_v43, %v5824_v55 }
  0x2b   :  { %177 = vperm.xlu1 %5411, %v129_v4   ;;  %273 = vperm.xlu0 %5412, %v129_v4   ;;  %v142_v48 = vld [vmem:[%s9504_s5] sm:$0x7]  ;;  %s5799_s25 = sld [smem:[#allocation7 + $0x3]]  ;;  %s5801_s26 = sld [smem:[#allocation5 + $0x4]]  ;;  %9656 = vst [vmem:[#allocation13_spill] sm:$0xff] %v5824_v55  ;;  %v5846_v61 = vadd.s32 8, %v5770_v43  ;;  %vm6111_vm7 = vmand %vm550_vm0, %vm6030_vm1 }
  0x2c   :  { %s5804_s27 = sld [smem:[#allocation7 + $0x4]]  ;;  %s5806_s3 = sld [smem:[#allocation5 + $0x5]]  ;;  %v5814_v52 = vrot.slane %v142_v48, %v242_v46  ;;  %v5816_v53 = vrot.slane %v142_v48, %v326_v47  ;;  %v5822_v54 = vrot.slane %v142_v48, %v410_v49  ;;  %v5840_v59 = vstv %s5774_s17  ;;  %vm6147_vm9 = vmand %vm665_vm3, %vm6111_vm7 }
  0x2d   :  { %s5812_s28 = sld [smem:[#allocation7 + $0x5]]  ;;  %s5818_s5 = sld [smem:[#allocation5 + $0x6]]  ;;  %v5843_v60 = vstv %s5772_s16  ;;  %v5849_v62 = vadd.s32 16, %v5770_v43  ;;  %v5852_v63 = vstv %s5776_s18  ;;  %vm551_vm2 = vcmp.lt.s32.totalorder %v5846_v61, %v5829_v56 }
  0x2e   :  { %s5820_s29 = sld [smem:[#allocation7 + $0x6]]  ;;  %s5831_s12 = sld [smem:[#allocation5 + $0x7]]  ;;  %9657 = vst [vmem:[#allocation14_spill] sm:$0xff] %v5852_v63  ;;  %vm666_vm4 = vcmp.ne.s32.totalorder %v5846_v61, %v5824_v55  ;;  %vm6131_vm8 = vmand %vm551_vm2, %vm6030_vm1 }
  0x2f   :  { %187 = vperm.xlu1 %5411, %v131_v5   ;;  %281 = vperm.xlu0 %5412, %v131_v5   ;;  %s5833_s13 = sld [smem:[#allocation7 + $0x7]]  ;;  %vm552_vm5 = vcmp.lt.s32.totalorder %v5849_v62, %v5829_v56  ;;  %vm667_vm6 = vcmp.ne.s32.totalorder %v5849_v62, %v5824_v55  ;;  %vm682_vm11 = vmand %vm666_vm4, %vm6131_vm8  ;;  %s5597_s24 = smov 126  }
  0x30   :  { %vm6190_vm14 = vmand %vm552_vm5, %vm6030_vm1  ;;  %s5601_s16 = smov 5   ;;  %s5602_s17 = smov 8  }
  0x31   :  { %vm6226_vm0 = vmand %vm667_vm6, %vm6190_vm14  ;;  %s5603_s18 = smov 6  }
  0x33   :  { %197 = vperm.xlu1 %5411, %v133_v6   ;;  %289 = vperm.xlu0 %5412, %v133_v6   ;;  %v5915_v46 = vstv %s5818_s5 }
  0x34   :  { %9663 = vst [vmem:[#allocation20_spill] sm:$0xff] %v5915_v46 }
  0x35   :  { %v5926_v47 = vstv %s5833_s13 }
  0x36   :  { %9666 = vst [vmem:[#allocation23_spill] sm:$0xff] %v5926_v47 }
  0x37   :  { %207 = vperm.xlu1 %5411, %v135_v7   ;;  %297 = vperm.xlu0 %5412, %v135_v7  }
  0x3b   :  { %217 = vperm.xlu1 %5411, %v137_v8   ;;  %305 = vperm.xlu0 %5412, %v137_v8  }
  0x3f   :  { %227 = vperm.xlu1 %5411, %v139_v9   ;;  %313 = vperm.xlu0 %5412, %v139_v9  }
  0x43   :  { %237 = vperm.xlu1 %5411, %v141_v10   ;;  %321 = vperm.xlu0 %5412, %v141_v10  }
  0x47   :  { %5413 = vset.pattern.permute.xlu1 %v5592_v2  ;;  %5415 = vset.pattern.permute.xlu0 %v5594_v12  ;;  %v5861_v2 = vstv %s5786_s21 }
  0x48   :  { %265 = vperm.xlu1 %5413, %v127_v11   ;;  %349 = vperm.xlu0 %5415, %v127_v11  }
  0x4c   :  { %269 = vperm.xlu1 %5413, %v128_v0   ;;  %361 = vperm.xlu0 %5415, %v130_v13  }
  0x50   :  { %277 = vperm.xlu1 %5413, %v130_v13   ;;  %369 = vperm.xlu0 %5415, %v132_v14  }
  0x54   :  { %285 = vperm.xlu1 %5413, %v132_v14   ;;  %377 = vperm.xlu0 %5415, %v134_v15  }
  0x58   :  { %293 = vperm.xlu1 %5413, %v134_v15   ;;  %385 = vperm.xlu0 %5415, %v136_v16  }
  0x5c   :  { %301 = vperm.xlu1 %5413, %v136_v16   ;;  %393 = vperm.xlu0 %5415, %v138_v17  }
  0x60   :  { %309 = vperm.xlu1 %5413, %v138_v17   ;;  %401 = vperm.xlu0 %5415, %v140_v18  }
  0x64   :  { %317 = vperm.xlu1 %5413, %v140_v18   ;;  %5416 = vset.pattern.permute.xlu0 %v5593_v3 }
  0x65   :  { %162 = vperm.xlu0 %5416, %v126_v1  }
  0x68   :  { %5414 = vset.pattern.permute.xlu1 %v5594_v12 }
  0x69   :  { %345 = vperm.xlu1 %5414, %v126_v1   ;;  %167 = vperm.xlu0 %5416, %v127_v11   ;;  %v5858_v1 = vstv %s5780_s20  ;;  %s5605_s20 = smov 9  }
  0x6d   :  { %353 = vperm.xlu1 %5414, %v128_v0   ;;  %182 = vperm.xlu0 %5416, %v130_v13   ;;  %v5855_v0 = vstv %s5778_s19  ;;  %s5604_s19 = smov 7  }
  0x71   :  { %357 = vperm.xlu1 %5414, %v129_v4   ;;  %192 = vperm.xlu0 %5416, %v132_v14   ;;  %v5867_v4 = vstv %s5792_s1 }
  0x75   :  { %365 = vperm.xlu1 %5414, %v131_v5   ;;  %202 = vperm.xlu0 %5416, %v134_v15   ;;  %v5870_v5 = vstv %s5794_s22 }
  0x79   :  { %373 = vperm.xlu1 %5414, %v133_v6   ;;  %212 = vperm.xlu0 %5416, %v136_v16   ;;  %v5873_v6 = vadd.s32 32, %v5770_v43  ;;  %v5898_v16 = vstv %s5812_s28  ;;  %s5599_s28 = smov 1  }
  0x7a   :  { %9662 = vst [vmem:[#allocation19_spill] sm:$0xff] %v5898_v16 }
  0x7b   :  { %9658 = vst [vmem:[#allocation15_spill] sm:$0xff] %v5873_v6 }
  0x7d   :  { %381 = vperm.xlu1 %5414, %v135_v7   ;;  %222 = vperm.xlu0 %5416, %v138_v17   ;;  %v5876_v7 = vstv %s5799_s25  ;;  %s5598_s25 = smov 127  }
  0x81   :  { %389 = vperm.xlu1 %5414, %v137_v8   ;;  %232 = vperm.xlu0 %5416, %v140_v18   ;;  %v5879_v8 = vstv %s5801_s26 }
  0x82   :  { %9659 = vst [vmem:[#allocation16_spill] sm:$0xff] %v5879_v8 }
  0x85   :  { %397 = vperm.xlu1 %5414, %v139_v9   ;;  %v5882_v9 = vstv %s5804_s27 }
  0x86   :  { %9660 = vst [vmem:[#allocation17_spill] sm:$0xff] %v5882_v9 }
  0x89   :  { %405 = vperm.xlu1 %5414, %v141_v10   ;;  %v5885_v10 = vstv %s5806_s3 }
  0x8a   :  { %9661 = vst [vmem:[#allocation18_spill] sm:$0xff] %v5885_v10 }
  0x8d   :  { %5417 = vset.pattern.permute.xlu1 %v5593_v3  ;;  %v5864_v3 = vstv %s5788_s2  ;;  %s5607_s2 = smov 11  }
  0x8e   :  { %1872 = vperm.xlu1 %5417, %v143_v19  }
  0xa6   :  { %v5726_v20 = vpop.permute.xlu1 %172  ;;  %v5728_v21 = vpop.permute.xlu0 %261 }
  0xaa   :  { %v5730_v22 = vpop.permute.xlu1 %177  ;;  %v5732_v23 = vpop.permute.xlu0 %273 }
  0xab   :  { %v247_v11 = vsub.f32 %v5730_v22, %v5814_v52  ;;  %v331_v12 = vsub.f32 %v5732_v23, %v5816_v53 }
  0xad   :  { %v447_v48 = vmul.f32 %v331_v12, %v331_v12 }
  0xae   :  { %v5734_v24 = vpop.permute.xlu1 %187  ;;  %v5736_v25 = vpop.permute.xlu0 %281 }
  0xaf   :  { %v249_v13 = vsub.f32 %v5734_v24, %v5814_v52  ;;  %v333_v17 = vsub.f32 %v5736_v25, %v5816_v53  ;;  %v246_v25 = vsub.f32 %v5726_v20, %v5814_v52 }
  0xb1   :  { %v430_v8 = vmul.f32 %v246_v25, %v246_v25 }
  0xb2   :  { %v5738_v26 = vpop.permute.xlu1 %197  ;;  %v5740_v27 = vpop.permute.xlu0 %289 }
  0xb3   :  { %v251_v18 = vsub.f32 %v5738_v26, %v5814_v52  ;;  %v335_v19 = vsub.f32 %v5740_v27, %v5816_v53  ;;  %v5920_v26 = vstv %s5820_s29  ;;  %v5923_v27 = vstv %s5831_s12 }
  0xb4   :  { %9664 = vst [vmem:[#allocation21_spill] sm:$0xff] %v5920_v26  ;;  %9665 = vst [vmem:[#allocation22_spill] sm:$0xff] %v5923_v27 }
  0xb5   :  { %v435_v6 = vmul.f32 %v251_v18, %v251_v18  ;;  %v451_v46 = vmul.f32 %v335_v19, %v335_v19 }
  0xb6   :  { %v5742_v28 = vpop.permute.xlu1 %207  ;;  %v5744_v29 = vpop.permute.xlu0 %297 }
  0xb7   :  { %v253_v22 = vsub.f32 %v5742_v28, %v5814_v52  ;;  %v337_v23 = vsub.f32 %v5744_v29, %v5816_v53  ;;  %v328_v28 = vsub.f32 %v5728_v21, %v5816_v53  ;;  %v431_v29 = vmul.f32 %v247_v11, %v247_v11 }
  0xb8   :  { %v5938_v11 = vadd.s32 24, %v5770_v43 }
  0xb9   :  { %v437_v16 = vmul.f32 %v253_v22, %v253_v22  ;;  %v453_v20 = vmul.f32 %v337_v23, %v337_v23  ;;  %v444_v12 = vmul.f32 %v328_v28, %v328_v28 }
  0xba   :  { %v5746_v30 = vpop.permute.xlu1 %217  ;;  %v5748_v31 = vpop.permute.xlu0 %305  ;;  %vm553_vm5 = vcmp.lt.s32.totalorder %v5938_v11, %v5829_v56  ;;  %vm668_vm7 = vcmp.ne.s32.totalorder %v5938_v11, %v5824_v55 }
  0xbb   :  { %v255_v24 = vsub.f32 %v5746_v30, %v5814_v52  ;;  %v339_v40 = vsub.f32 %v5748_v31, %v5816_v53  ;;  %v433_v30 = vmul.f32 %v249_v13, %v249_v13  ;;  %v449_v31 = vmul.f32 %v333_v17, %v333_v17 }
  0xbc   :  { %v5940_v13 = vadd.f32 %v447_v48, %v431_v29 }
  0xbd   :  { %v439_v9 = vmul.f32 %v255_v24, %v255_v24  ;;  %v455_v26 = vmul.f32 %v339_v40, %v339_v40  ;;  %v5944_v19 = vadd.f32 %v449_v31, %v433_v30  ;;  %v5952_v24 = vadd.f32 %v453_v20, %v437_v16 }
  0xbe   :  { %v5750_v32 = vpop.permute.xlu1 %227  ;;  %v5752_v33 = vpop.permute.xlu0 %313 }
  0xbf   :  { %v257_v47 = vsub.f32 %v5750_v32, %v5814_v52  ;;  %v341_v21 = vsub.f32 %v5752_v33, %v5816_v53  ;;  %v5954_v40 = vadd.f32 %v455_v26, %v439_v9 }
  0xc2   :  { %v5754_v34 = vpop.permute.xlu1 %237  ;;  %v5756_v35 = vpop.permute.xlu0 %321 }
  0xc3   :  { %v259_v9 = vsub.f32 %v5754_v34, %v5814_v52  ;;  %v343_v26 = vsub.f32 %v5756_v35, %v5816_v53 }
  0xc7   :  { %v5758_v36 = vpop.permute.xlu1 %265  ;;  %v5760_v37 = vpop.permute.xlu0 %349 }
  0xc8   :  { %v329_v17 = vsub.f32 %v5758_v36, %v5816_v53  ;;  %v413_v32 = vsub.f32 %v5760_v37, %v5822_v54 }
  0xcb   :  { %v5762_v38 = vpop.permute.xlu1 %269  ;;  %v5764_v39 = vpop.permute.xlu0 %361 }
  0xcc   :  { %v330_v33 = vsub.f32 %v5762_v38, %v5816_v53  ;;  %v445_v38 = vmul.f32 %v329_v17, %v329_v17 }
  0xce   :  { %v446_v48 = vmul.f32 %v330_v33, %v330_v33 }
  0xcf   :  { %v5766_v41 = vpop.permute.xlu1 %277  ;;  %v5768_v42 = vpop.permute.xlu0 %369 }
  0xd0   :  { %v332_v37 = vsub.f32 %v5766_v41, %v5816_v53  ;;  %v418_v34 = vsub.f32 %v5768_v42, %v5822_v54 }
  0xd3   :  { %v5782_v44 = vpop.permute.xlu1 %285  ;;  %v5784_v45 = vpop.permute.xlu0 %377 }
  0xd4   :  { %v334_v35 = vsub.f32 %v5782_v44, %v5816_v53 }
  0xd7   :  { %v5808_v50 = vpop.permute.xlu1 %293  ;;  %v5810_v51 = vpop.permute.xlu0 %385 }
  0xd8   :  { %v336_v42 = vsub.f32 %v5808_v50, %v5816_v53 }
  0xdb   :  { %v5835_v57 = vpop.permute.xlu1 %301  ;;  %v5837_v58 = vpop.permute.xlu0 %393 }
  0xdc   :  { %v338_v50 = vsub.f32 %v5835_v57, %v5816_v53 }
  0xdf   :  { %v5893_v14 = vpop.permute.xlu1 %309  ;;  %v5895_v15 = vpop.permute.xlu0 %401 }
  0xe3   :  { %v5930_v49 = vpop.permute.xlu1 %317 }
  0xe4   :  { %v163_v10 = vpop.permute.xlu0 %162 }
  0xe5   :  { %v244_v27 = vsub.f32 %v163_v10, %v5814_v52  ;;  %v5946_v10 = vadd.f32 %v451_v46, %v435_v6  ;;  %v5960_v6 = vmul.f32 %v341_v21, %v341_v21  ;;  %v5965_v46 = vadd.s32 48, %v5770_v43 }
  0xe7   :  { %v428_v18 = vmul.f32 %v244_v27, %v244_v27  ;;  %v5958_v27 = vmul.f32 %v257_v47, %v257_v47  ;;  %9667 = vst [vmem:[#allocation24_spill] sm:$0xff] %v5965_v46  ;;  %v477_v47 = vmul.f32 %v413_v32, %v413_v32 }
  0xe8   :  { %v346_v22 = vpop.permute.xlu1 %345  ;;  %v168_v23 = vpop.permute.xlu0 %167 }
  0xe9   :  { %v412_v25 = vsub.f32 %v346_v22, %v5822_v54  ;;  %v245_v36 = vsub.f32 %v168_v23, %v5814_v52  ;;  %v460_v28 = vadd.f32 %v444_v12, %v428_v18  ;;  %v416_v12 = vsub.f32 %v5764_v39, %v5822_v54 }
  0xea   :  { %v448_v18 = vmul.f32 %v332_v37, %v332_v37  ;;  %v420_v39 = vsub.f32 %v5784_v45, %v5822_v54  ;;  %v450_v45 = vmul.f32 %v334_v35, %v334_v35 }
  0xeb   :  { %v476_v16 = vmul.f32 %v412_v25, %v412_v25  ;;  %v429_v29 = vmul.f32 %v245_v36, %v245_v36  ;;  %v5984_v25 = vmul.f32 %v259_v9, %v259_v9  ;;  %v5986_v36 = vmul.f32 %v343_v26, %v343_v26 }
  0xec   :  { %v354_v30 = vpop.permute.xlu1 %353  ;;  %v183_v31 = vpop.permute.xlu0 %182 }
  0xed   :  { %v5971_v20 = vadd.f32 %v476_v16, %v460_v28  ;;  %v461_v41 = vadd.f32 %v445_v38, %v429_v29  ;;  %v414_v21 = vsub.f32 %v354_v30, %v5822_v54  ;;  %v248_v17 = vsub.f32 %v183_v31, %v5814_v52 }
  0xee   :  { %v462_v38 = vadd.f32 %v446_v48, %v430_v8  ;;  %v480_v29 = vmul.f32 %v416_v12, %v416_v12  ;;  %v422_v48 = vsub.f32 %v5810_v51, %v5822_v54  ;;  %v484_v12 = vmul.f32 %v420_v39, %v420_v39 }
  0xef   :  { %v617_v32 = vmax.f32 %v5971_v20, 1e-12  ;;  %v5982_v33 = vadd.f32 %v477_v47, %v461_v41  ;;  %v478_v22 = vmul.f32 %v414_v21, %v414_v21  ;;  %v432_v23 = vmul.f32 %v248_v17, %v248_v17 }
  0xf0   :  { %v358_v37 = vpop.permute.xlu1 %357  ;;  %v193_v28 = vpop.permute.xlu0 %192  ;;  %v482_v47 = vmul.f32 %v418_v34, %v418_v34  ;;  %v424_v51 = vsub.f32 %v5837_v58, %v5822_v54  ;;  %v340_v39 = vsub.f32 %v5893_v14, %v5816_v53  ;;  %v9670_v14 = vmov 0 }
  0xf1   :  { %5418 = vrsqrt.f32 %v617_v32  ;;  %v618_v44 = vmax.f32 %v5982_v33, 1e-12  ;;  %v464_v16 = vadd.f32 %v448_v18, %v432_v23  ;;  %v5995_v9 = vadd.f32 %v478_v22, %v462_v38 }
  0xf2   :  { %v415_v26 = vsub.f32 %v358_v37, %v5822_v54  ;;  %v250_v8 = vsub.f32 %v193_v28, %v5814_v52  ;;  %v452_v18 = vmul.f32 %v336_v42, %v336_v42  ;;  %v486_v38 = vmul.f32 %v422_v48, %v422_v48 }
  0xf3   :  { %5420 = vrsqrt.f32 %v618_v44  ;;  %v6005_v30 = vadd.f32 %v480_v29, %v464_v16  ;;  %v619_v57 = vmax.f32 %v5995_v9, 1e-12  ;;  %v454_v37 = vmul.f32 %v338_v50, %v338_v50 }
  0xf4   :  { %v479_v31 = vmul.f32 %v415_v26, %v415_v26  ;;  %v434_v41 = vmul.f32 %v250_v8, %v250_v8  ;;  %v366_v21 = vpop.permute.xlu1 %365  ;;  %v203_v17 = vpop.permute.xlu0 %202  ;;  %v9671_v14 = vsel %vm6030_vm1, 4294967295, %v9670_v14  ;;  %v342_v50 = vsub.f32 %v5930_v49, %v5816_v53 }
  0xf5   :  { %v417_v34 = vsub.f32 %v366_v21, %v5822_v54  ;;  %v252_v35 = vsub.f32 %v203_v17, %v5814_v52  ;;  %v621_v42 = vmax.f32 %v6005_v30, 1e-12  ;;  %9672 = vst [vmem:[#allocation27_spill] sm:$0xff] %v9671_v14  ;;  %5422 = vrsqrt.f32 %v619_v57 }
  0xf6   :  { %v6013_v22 = vadd.f32 %v479_v31, %v5940_v13  ;;  %v466_v23 = vadd.f32 %v450_v45, %v434_v41  ;;  %v426_v53 = vsub.f32 %v5895_v15, %v5822_v54 }
  0xf7   :  { %v481_v28 = vmul.f32 %v417_v34, %v417_v34  ;;  %v436_v16 = vmul.f32 %v252_v35, %v252_v35  ;;  %v456_v35 = vmul.f32 %v340_v39, %v340_v39  ;;  %5424 = vrsqrt.f32 %v621_v42 }
  0xf8   :  { %v9526_v29 = vmax.f32 %v6013_v22, 1e-12  ;;  %v6019_v26 = vadd.f32 %v482_v47, %v466_v23  ;;  %v374_v58 = vpop.permute.xlu1 %373  ;;  %v213_v8 = vpop.permute.xlu0 %212  ;;  %v488_v47 = vmul.f32 %v424_v51, %v424_v51 }
  0xf9   :  { %v6022_v21 = vadd.f32 %v481_v28, %v5944_v19  ;;  %v468_v13 = vadd.f32 %v452_v18, %v436_v16  ;;  %v419_v45 = vsub.f32 %v374_v58, %v5822_v54  ;;  %v254_v48 = vsub.f32 %v213_v8, %v5814_v52 }
  0xfa   :  { %9668 = vst [vmem:[#allocation25_spill] sm:$0xff] %v6019_v26  ;;  %v9522_v19 = vmax.f32 %v6019_v26, 1e-12  ;;  %5426 = vrsqrt.f32 %v9526_v29  ;;  %v458_v58 = vmul.f32 %v342_v50, %v342_v50 }
  0xfb   :  { %9669 = vst [vmem:[#allocation26_spill] sm:$0xff] %v6022_v21  ;;  %v6039_v31 = vpop.eup %5418  ;;  %v9521_v41 = vmax.f32 %v6022_v21, 1e-12  ;;  %v6042_v17 = vadd.f32 %v484_v12, %v468_v13  ;;  %v483_v18 = vmul.f32 %v419_v45, %v419_v45  ;;  %v438_v34 = vmul.f32 %v254_v48, %v254_v48 }
  0xfc   :  { %v382_v49 = vpop.permute.xlu1 %381  ;;  %v223_v51 = vpop.permute.xlu0 %222  ;;  %v6053_v23 = vmul.f32 %v6039_v31, %v617_v32  ;;  %5428 = vrsqrt.f32 %v9522_v19 }
  0xfd   :  { %9673 = vst [vmem:[#allocation28_spill] sm:$0xff] %v6042_v17  ;;  %v9519_v12 = vmax.f32 %v6042_v17, 1e-12  ;;  %v6061_v15 = vadd.f32 %v483_v18, %v5946_v10  ;;  %v470_v28 = vadd.f32 %v454_v37, %v438_v34  ;;  %v6063_v16 = vpop.eup %5420  ;;  %v421_v20 = vsub.f32 %v382_v49, %v5822_v54 }
  0xfe   :  { %9675 = vst [vmem:[#allocation30_spill] sm:$0xff] %v6063_v16  ;;  %v256_v32 = vsub.f32 %v223_v51, %v5814_v52  ;;  %v6070_v39 = vmin.f32 %v6053_v23, 3.0  ;;  %5430 = vrsqrt.f32 %v9521_v41  ;;  %v490_v41 = vmul.f32 %v426_v53, %v426_v53 }
  0xff   :  { %9674 = vst [vmem:[#allocation29_spill] sm:$0xff] %v6061_v15  ;;  %v9520_v10 = vmax.f32 %v6061_v15, 1e-12  ;;  %v6077_v37 = vadd.f32 %v486_v38, %v470_v28  ;;  %5432 = vrsqrt.f32 %v9519_v12  ;;  %v485_v8 = vmul.f32 %v421_v20, %v421_v20  ;;  %v6101_v33 = vpop.eup %5422 }
 0x100   :  { %v440_v13 = vmul.f32 %v256_v32, %v256_v32  ;;  %v390_v45 = vpop.permute.xlu1 %389  ;;  %v233_v48 = vpop.permute.xlu0 %232  ;;  %v763_v18 = vmul.f32 2.0, %v6070_v39  ;;  %v650_v38 = vmul.f32 %v6063_v16, %v618_v44  ;;  %v845_v32 = vmul.f32 %v5843_v60, %v6070_v39  ;;  %9678 = vst [vmem:[#allocation33_spill] sm:$0xff] %v6101_v33 }
 0x101   :  { %9676 = vst [vmem:[#allocation31_spill] sm:$0xff] %v6077_v37  ;;  %v9525_v50 = vmax.f32 %v6077_v37, 1e-12  ;;  %v423_v34 = vsub.f32 %v390_v45, %v5822_v54  ;;  %v258_v49 = vsub.f32 %v233_v48, %v5814_v52  ;;  %v6091_v51 = vadd.f32 %v485_v8, %v5952_v24 }
 0x102   :  { %v472_v28 = vadd.f32 %v456_v35, %v440_v13  ;;  %v780_v20 = vsub.f32 %v5840_v59, %v763_v18  ;;  %5434 = vrsqrt.f32 %v9520_v10  ;;  %v1597_v52 = vmul.f32 0.33333334, %v6070_v39 }
 0x103   :  { %9677 = vst [vmem:[#allocation32_spill] sm:$0xff] %v6091_v51  ;;  %v487_v12 = vmul.f32 %v423_v34, %v423_v34  ;;  %v442_v45 = vmul.f32 %v258_v49, %v258_v49  ;;  %v9524_v24 = vmax.f32 %v6091_v51, 1e-12  ;;  %v861_v48 = vmul.f32 1.442695, %v845_v32 }
 0x104   :  { %v6104_v44 = vadd.f32 %v488_v47, %v472_v28  ;;  %v398_v35 = vpop.permute.xlu1 %397  ;;  %v796_v13 = vmul.f32 %v780_v20, %v6070_v39  ;;  %v1613_v49 = vmul.f32 %v1597_v52, %v1597_v52  ;;  %v6120_v28 = vpop.eup %5424  ;;  %v473_v10 = vadd.f32 %v5960_v6, %v5958_v27 }
 0x105   :  { %v6117_v18 = vadd.f32 %v487_v12, %v5954_v40  ;;  %v474_v34 = vadd.f32 %v458_v58, %v442_v45  ;;  %v425_v47 = vsub.f32 %v398_v35, %v5822_v54  ;;  %9683 = vst [vmem:[#allocation36_spill] sm:$0xff] %v6120_v28  ;;  %5436 = vrsqrt.f32 %v9525_v50  ;;  %v6135_v12 = vpop.eup %5426 }
 0x106   :  { %9679 = vst [vmem:[#allocation34_spill] sm:$0xff] %v6104_v44  ;;  %v812_v19 = vmul.f32 1.442695, %v796_v13  ;;  %9686 = vst [vmem:[#allocation37_spill] sm:$0xff] %v6135_v12  ;;  %v475_v58 = vadd.f32 %v5986_v36, %v5984_v25  ;;  %5438 = vrsqrt.f32 %v9524_v24  ;;  %v9523_v27 = vmax.f32 %v6104_v44, 1e-12  ;;  %v6152_v53 = vpop.eup %5428 }
 0x107   :  { %9682 = vst [vmem:[#allocation35_spill] sm:$0xff] %v6117_v18  ;;  %vm697_vm10 = vcmp.lt.f32.partialorder %v6053_v23, 3.0  ;;  %9689 = vst [vmem:[#allocation38_spill] sm:$0xff] %v6152_v53  ;;  %v6154_v20 = vadd.f32 %v490_v41, %v474_v34  ;;  %v1629_v36 = vsub.f32 1.0, %v1613_v49  ;;  %v1661_v32 = vmul.f32 -1.3333334, %v1597_v52 }
 0x108   :  { %v406_v25 = vpop.permute.xlu1 %405  ;;  %v6156_v45 = vmin.f32 %v650_v38, 3.0  ;;  %v6158_v35 = vpop.eup %5430  ;;  %v9527_v8 = vmax.f32 %v6117_v18, 1e-12  ;;  %v489_v13 = vmul.f32 %v425_v47, %v425_v47  ;;  %5440 = vpow2.f32 %v861_v48  ;;  %vm6173_vm13 = vmand %vm6147_vm9, %vm697_vm10 }
 0x109   :  { %9690 = vst [vmem:[#allocation39_spill] sm:$0xff] %v6154_v20  ;;  %9691 = vst [vmem:[#allocation40_spill] sm:$0xff] %v6158_v35  ;;  %vm698_vm12 = vcmp.lt.f32.partialorder %v650_v38, 3.0  ;;  %v6166_v41 = vpop.eup %5432  ;;  %v427_v34 = vsub.f32 %v406_v25, %v5822_v54  ;;  %5442 = vpow2.f32 %v812_v19  ;;  %v6177_v48 = vmul.f32 %v1661_v32, %v1629_v36 }
 0x10a   :  { %9692 = vst [vmem:[#allocation41_spill] sm:$0xff] %v6166_v41  ;;  %v6180_v47 = vadd.s32 40, %v5770_v43  ;;  %5444 = vrsqrt.f32 %v9523_v27  ;;  %v764_v61 = vmul.f32 2.0, %v6156_v45  ;;  %v6195_v19 = vadd.s32 64, %v5770_v43  ;;  %vm714_vm15 = vmand %vm682_vm11, %vm698_vm12 }
 0x10b   :  { %v6198_v23 = vadd.s32 56, %v5770_v43  ;;  %v846_v49 = vmul.f32 %v5843_v60, %v6156_v45  ;;  %v1598_v40 = vmul.f32 0.33333334, %v6156_v45  ;;  %v651_v6 = vmul.f32 %v6101_v33, %v619_v57  ;;  %vm6447_vm10 = vmand %vm553_vm5, %vm6030_vm1 }
 0x10c   :  { %9695 = vst [vmem:[#allocation42_spill] sm:$0xff] %v6180_v47  ;;  %9698 = vst [vmem:[#allocation43_spill] sm:$0xff] %v6195_v19  ;;  %v6207_v25 = vpop.eup %5434  ;;  %5446 = vrsqrt.f32 %v9527_v8  ;;  %v6211_v32 = vadd.f32 %v489_v13, %v473_v10  ;;  %v9528_v27 = vmov 0.0   ;;  %v781_v50 = vsub.f32 %v5840_v59, %v764_v61 }
 0x10d   :  { %9699 = vst [vmem:[#allocation44_spill] sm:$0xff] %v6198_v23  ;;  %9700 = vst [vmem:[#allocation45_spill] sm:$0xff] %v6207_v25  ;;  %v6216_v24 = vsel %vm6173_vm13, 1.0, %v9528_v27  ;;  %v491_v29 = vmul.f32 %v427_v34, %v427_v34  ;;  %v6219_v38 = vmul.f32 %v1629_v36, %v1629_v36  ;;  %v1614_v9 = vmul.f32 %v1598_v40, %v1598_v40  ;;  %v4591_v36 = vld [vmem:[%s9507_s8] ss:$0 sm:$0xff] }
 0x10e   :  { %9701 = vst [vmem:[#allocation46_spill] sm:$0xff] %v6211_v32  ;;  %vm699_vm2 = vcmp.lt.f32.partialorder %v651_v6, 3.0  ;;  %v6231_v10 = vsel %vm714_vm15, 1.0, %v9528_v27  ;;  %v797_v13 = vmul.f32 %v781_v50, %v6156_v45  ;;  %v6234_v52 = vmin.f32 %v651_v6, 3.0  ;;  %v1873_v50 = vpop.permute.xlu1 %1872  ;;  %vm6467_vm12 = vmand %vm668_vm7, %vm6447_vm10 }
 0x10f   :  { %v6242_v62 = vmul.f32 %v6120_v28, %v621_v42  ;;  %v6244_v34 = vpop.eup %5436  ;;  %v9705_v61 = vmax.f32 %v6154_v20, 1e-12  ;;  %v863_v54 = vmul.f32 1.442695, %v846_v49  ;;  %v1630_v8 = vsub.f32 1.0, %v1614_v9  ;;  %vm715_vm3 = vmand %vm6226_vm0, %vm699_vm2 }
 0x110   :  { %9704 = vst [vmem:[#allocation47_spill] sm:$0xff] %v6244_v34  ;;  %v1662_v27 = vmul.f32 -1.3333334, %v1598_v40  ;;  %v6248_v16 = vpop.eup %5438  ;;  %v814_v18 = vmul.f32 1.442695, %v797_v13  ;;  %v765_v30 = vmul.f32 2.0, %v6234_v52  ;;  %v847_v42 = vmul.f32 %v5843_v60, %v6234_v52 }
 0x111   :  { %5448 = vrsqrt.f32 %v9705_v61  ;;  %9706 = vst [vmem:[#allocation48_spill] sm:$0xff] %v6248_v16  ;;  %v6257_v28 = vadd.f32 %v491_v29, %v475_v58  ;;  %v1599_v40 = vmul.f32 0.33333334, %v6234_v52  ;;  %v9708_v9 = vmax.f32 %v6013_v22, 1e-12 }
 0x112   :  { %v6259_v49 = vmul.f32 %v1662_v27, %v1630_v8  ;;  %v6267_v6 = vpop.eup %5440  ;;  %5450 = vpow2.f32 %v814_v18  ;;  %v782_v57 = vsub.f32 %v5840_v59, %v765_v30  ;;  %v6270_v13 = vadd.f32 %v4591_v36, %v1873_v50 }
 0x113   :  { %9707 = vst [vmem:[#allocation49_spill] sm:$0xff] %v6257_v28  ;;  %v6265_v61 = vmul.f32 %v6135_v12, %v9708_v9  ;;  %v6273_v33 = vmin.f32 %v6242_v62, 3.0  ;;  %v5443_v29 = vpop.eup %5442  ;;  %5452 = vpow2.f32 %v863_v54  ;;  %v9711_v58 = vmov 0.0  }
 0x114   :  { %v6276_v27 = vsel %vm715_vm3, 1.0, %v9711_v58  ;;  %v865_v20 = vmul.f32 1.442695, %v847_v42  ;;  %v1615_v22 = vmul.f32 %v1599_v40, %v1599_v40  ;;  %v6278_v44 = vpop.eup %5444  ;;  %v895_v9 = vmul.f32 %v5443_v29, %v5852_v63 }
 0x115   :  { %9709 = vst [vmem:[#allocation50_spill] sm:$0xff] %v6265_v61  ;;  %9710 = vst [vmem:[#allocation51_spill] sm:$0xff] %v6273_v33  ;;  %v961_v18 = vmul.f32 %v5443_v29, %v6267_v6  ;;  %v798_v30 = vmul.f32 %v782_v57, %v6234_v52  ;;  %v1663_v36 = vmul.f32 -1.3333334, %v1599_v40  ;;  %v929_v50 = vmul.f32 %v5443_v29, %v5855_v0 }
 0x116   :  { %9712 = vst [vmem:[#allocation52_spill] sm:$0xff] %v6276_v27  ;;  %9713 = vst [vmem:[#allocation53_spill] sm:$0xff] %v6278_v44  ;;  %v1631_v12 = vsub.f32 1.0, %v1615_v22  ;;  %v767_v16 = vmul.f32 2.0, %v6273_v33  ;;  %v849_v54 = vmul.f32 %v5843_v60, %v6273_v33  ;;  %v6287_v51 = vpop.eup %5446  ;;  %v6292_v32 = vmul.f32 %v1630_v8, %v1630_v8 }
 0x117   :  { %9714 = vst [vmem:[#allocation54_spill] sm:$0xff] %v6287_v51  ;;  %v979_v42 = vmul.f32 %v5858_v1, %v961_v18  ;;  %v1013_v44 = vmul.f32 %v5861_v2, %v961_v18  ;;  %v1045_v43 = vmul.f32 %v6267_v6, %v961_v18  ;;  %v816_v28 = vmul.f32 1.442695, %v798_v30 }
 0x118   :  { %v6294_v40 = vmul.f32 %v1663_v36, %v1631_v12  ;;  %v784_v57 = vsub.f32 %v5840_v59, %v767_v16  ;;  %v869_v29 = vmul.f32 1.442695, %v849_v54  ;;  %v1601_v8 = vmul.f32 0.33333334, %v6273_v33 }
 0x119   :  { %v995_v22 = vadd.f32 %v979_v42, %v895_v9  ;;  %v1029_v34 = vadd.f32 %v1013_v44, %v929_v50  ;;  %v1063_v37 = vmul.f32 %v5864_v3, %v1045_v43  ;;  %v1097_v51 = vmul.f32 %v5867_v4, %v1045_v43 }
 0x11a   :  { %v1129_v19 = vmul.f32 %v6267_v6, %v1045_v43  ;;  %5454 = vpow2.f32 %v816_v28  ;;  %v800_v18 = vmul.f32 %v784_v57, %v6273_v33  ;;  %v6305_v16 = vmin.f32 %v6265_v61, 3.0 }
 0x11b   :  { %v6299_v23 = vpop.eup %5448  ;;  %v1079_v30 = vadd.f32 %v1063_v37, %v995_v22  ;;  %v1113_v36 = vadd.f32 %v1097_v51, %v1029_v34  ;;  %5456 = vpow2.f32 %v865_v20  ;;  %v6310_v54 = vmul.f32 %v1631_v12, %v1631_v12  ;;  %v9716_v20 = vld [vmem:[#allocation16_spill] sm:$0xff]  ;;  %v9717_v22 = vld [vmem:[#allocation17_spill] sm:$0xff] }
 0x11c   :  { %9715 = vst [vmem:[#allocation55_spill] sm:$0xff] %v6299_v23  ;;  %v1147_v44 = vmul.f32 %v5870_v5, %v1129_v19  ;;  %v1181_v9 = vmul.f32 %v5876_v7, %v1129_v19  ;;  %v1213_v50 = vmul.f32 %v6267_v6, %v1129_v19  ;;  %v5451_v43 = vpop.eup %5450  ;;  %v820_v28 = vmul.f32 1.442695, %v800_v18 }
 0x11d   :  { %5458 = vpow2.f32 %v869_v29  ;;  %v1617_v42 = vmul.f32 %v1601_v8, %v1601_v8  ;;  %v1665_v57 = vmul.f32 -1.3333334, %v1601_v8  ;;  %v6312_v23 = vpop.eup %5452  ;;  %v896_v41 = vmul.f32 %v5451_v43, %v5852_v63 }
 0x11e   :  { %v1163_v37 = vadd.f32 %v1147_v44, %v1079_v30  ;;  %v1197_v51 = vadd.f32 %v1181_v9, %v1113_v36  ;;  %v1231_v34 = vmul.f32 %v9716_v20, %v1213_v50  ;;  %v1265_v25 = vmul.f32 %v9717_v22, %v1213_v50  ;;  %v9719_v30 = vld [vmem:[#allocation18_spill] sm:$0xff]  ;;  %v9720_v44 = vld [vmem:[#allocation19_spill] sm:$0xff] }
 0x11f   :  { %v1297_v15 = vmul.f32 %v6267_v6, %v1213_v50  ;;  %v962_v12 = vmul.f32 %v6312_v23, %v5451_v43  ;;  %v6320_v19 = vmul.f32 2.0, %v6305_v16  ;;  %v930_v8 = vmul.f32 %v5451_v43, %v5855_v0 }
 0x120   :  { %v1247_v29 = vadd.f32 %v1231_v34, %v1163_v37  ;;  %v1281_v18 = vadd.f32 %v1265_v25, %v1197_v51  ;;  %v6323_v17 = vsub.f32 1.0, %v1617_v42  ;;  %5460 = vpow2.f32 %v820_v28  ;;  %v9722_v42 = vld [vmem:[#allocation20_spill] sm:$0xff]  ;;  %v9723_v34 = vld [vmem:[#allocation21_spill] sm:$0xff] }
 0x121   :  { %v1315_v36 = vmul.f32 %v9719_v30, %v1297_v15  ;;  %v1349_v9 = vmul.f32 %v9720_v44, %v1297_v15  ;;  %v1381_v33 = vmul.f32 %v6267_v6, %v1297_v15  ;;  %v980_v50 = vmul.f32 %v5858_v1, %v962_v12 }
 0x122   :  { %9718 = vst [vmem:[#allocation16_spill] sm:$0xff] %v6323_v17  ;;  %v1014_v58 = vmul.f32 %v5861_v2, %v962_v12  ;;  %v1046_v35 = vmul.f32 %v6312_v23, %v962_v12  ;;  %v6332_v37 = vmul.f32 %v1665_v57, %v6323_v17  ;;  %vm701_vm8 = vcmp.lt.f32.partialorder %v6242_v62, 3.0 }
 0x123   :  { %v1331_v25 = vadd.f32 %v1315_v36, %v1247_v29  ;;  %v1365_v43 = vadd.f32 %v1349_v9, %v1281_v18  ;;  %v1399_v51 = vmul.f32 %v9722_v42, %v1381_v33  ;;  %v1433_v21 = vmul.f32 %v9723_v34, %v1381_v33  ;;  %v9724_v18 = vld [vmem:[#allocation22_spill] sm:$0xff]  ;;  %v9725_v9 = vld [vmem:[#allocation23_spill] sm:$0xff] }
 0x124   :  { %9721 = vst [vmem:[#allocation17_spill] sm:$0xff] %v6332_v37  ;;  %v5455_v47 = vpop.eup %5454  ;;  %v1465_v53 = vmul.f32 %v6267_v6, %v1381_v33  ;;  %v996_v15 = vadd.f32 %v980_v50, %v896_v41  ;;  %v1030_v26 = vadd.f32 %v1014_v58, %v930_v8  ;;  %v1064_v46 = vmul.f32 %v5864_v3, %v1046_v35 }
 0x125   :  { %v6338_v61 = vpop.eup %5456  ;;  %v1415_v12 = vadd.f32 %v1399_v51, %v1331_v25  ;;  %v1449_v28 = vadd.f32 %v1433_v21, %v1365_v43  ;;  %v1098_v57 = vmul.f32 %v5867_v4, %v1046_v35  ;;  %v1130_v29 = vmul.f32 %v6312_v23, %v1046_v35 }
 0x126   :  { %v1483_v36 = vmul.f32 %v9724_v18, %v1465_v53  ;;  %v1517_v37 = vmul.f32 %v9725_v9, %v1465_v53  ;;  %v1080_v17 = vadd.f32 %v1064_v46, %v996_v15  ;;  %v897_v27 = vmul.f32 %v5455_v47, %v5852_v63 }
 0x127   :  { %v6345_v33 = vpop.eup %5458  ;;  %v1114_v41 = vadd.f32 %v1098_v57, %v1030_v26  ;;  %v1148_v6 = vmul.f32 %v5870_v5, %v1130_v29  ;;  %v1182_v58 = vmul.f32 %v5876_v7, %v1130_v29  ;;  %v1214_v21 = vmul.f32 %v6312_v23, %v1130_v29 }
 0x128   :  { %v1499_v8 = vadd.f32 %v1483_v36, %v1415_v12  ;;  %v1533_v50 = vadd.f32 %v1517_v37, %v1449_v28  ;;  %v931_v35 = vmul.f32 %v5455_v47, %v5855_v0  ;;  %v963_v25 = vmul.f32 %v6338_v61, %v5455_v47 }
 0x129   :  { %v1164_v43 = vadd.f32 %v1148_v6, %v1080_v17  ;;  %v1198_v53 = vadd.f32 %v1182_v58, %v1114_v41  ;;  %v1232_v46 = vmul.f32 %v9716_v20, %v1214_v21  ;;  %v1266_v51 = vmul.f32 %v9717_v22, %v1214_v21 }
 0x12a   :  { %v1549_v26 = vmul.f32 %v1499_v8, %v6070_v39  ;;  %v1693_v15 = vmul.f32 %v6219_v38, %v1499_v8  ;;  %v1741_v57 = vmul.f32 %v6177_v48, %v1499_v8  ;;  %v1298_v29 = vmul.f32 %v6312_v23, %v1214_v21  ;;  %v5461_v17 = vpop.eup %5460 }
 0x12b   :  { %v1248_v12 = vadd.f32 %v1232_v46, %v1164_v43  ;;  %v1282_v37 = vadd.f32 %v1266_v51, %v1198_v53  ;;  %v981_v28 = vmul.f32 %v5858_v1, %v963_v25  ;;  %v1015_v47 = vmul.f32 %v5861_v2, %v963_v25 }
 0x12c   :  { %v1565_v36 = vsub.f32 %v1533_v50, %v1549_v26  ;;  %v1709_v41 = vmul.f32 %v1693_v15, %v6216_v24  ;;  %v1316_v6 = vmul.f32 %v9719_v30, %v1298_v29  ;;  %v1350_v39 = vmul.f32 %v9720_v44, %v1298_v29 }
 0x12d   :  { %v1382_v58 = vmul.f32 %v6312_v23, %v1298_v29  ;;  %v1031_v14 = vadd.f32 %v1015_v47, %v931_v35  ;;  %v1047_v48 = vmul.f32 %v6338_v61, %v963_v25  ;;  %v6367_v21 = vmul.f32 %v5843_v60, %v6305_v16 }
 0x12e   :  { %v1581_v8 = vmul.f32 4.0, %v1565_v36  ;;  %1805 = vadd.xlane.f32.xlu0 %v1709_v41  ;;  %v1332_v43 = vadd.f32 %v1316_v6, %v1248_v12  ;;  %v1366_v53 = vadd.f32 %v1350_v39, %v1282_v37  ;;  %v997_v50 = vadd.f32 %v981_v28, %v897_v27 }
 0x12f   :  { %v1400_v46 = vmul.f32 %v9722_v42, %v1382_v58  ;;  %v1434_v51 = vmul.f32 %v9723_v34, %v1382_v58  ;;  %v1466_v26 = vmul.f32 %v6312_v23, %v1382_v58  ;;  %v1065_v15 = vmul.f32 %v5864_v3, %v1047_v48 }
 0x130   :  { %v1725_v35 = vmul.f32 %v6219_v38, %v1581_v8  ;;  %v1099_v25 = vmul.f32 %v5867_v4, %v1047_v48  ;;  %v1131_v29 = vmul.f32 %v6338_v61, %v1047_v48  ;;  %v899_v47 = vmul.f32 %v5461_v17, %v5852_v63 }
 0x131   :  { %v1416_v36 = vadd.f32 %v1400_v46, %v1332_v43  ;;  %v1450_v12 = vadd.f32 %v1434_v51, %v1366_v53  ;;  %v1484_v27 = vmul.f32 %v9724_v18, %v1466_v26  ;;  %v1518_v37 = vmul.f32 %v9725_v9, %v1466_v26 }
 0x132   :  { %v1757_v28 = vadd.f32 %v1741_v57, %v1725_v35  ;;  %v1081_v41 = vadd.f32 %v1065_v15, %v997_v50  ;;  %v1115_v6 = vadd.f32 %v1099_v25, %v1031_v14  ;;  %v1149_v23 = vmul.f32 %v5870_v5, %v1131_v29  ;;  %v9726_v35 = vld [vmem:[#allocation15_spill] sm:$0xff] }
 0x133   :  { %v1500_v39 = vadd.f32 %v1484_v27, %v1416_v36  ;;  %v1534_v58 = vadd.f32 %v1518_v37, %v1450_v12  ;;  %v1183_v38 = vmul.f32 %v5876_v7, %v1131_v29  ;;  %v1215_v8 = vmul.f32 %v6338_v61, %v1131_v29 }
 0x134   :  { %v1773_v48 = vmul.f32 %v1757_v28, %v6216_v24  ;;  %v1165_v63 = vadd.f32 %v1149_v23, %v1081_v41  ;;  %v933_v43 = vmul.f32 %v5461_v17, %v5855_v0  ;;  %v965_v53 = vmul.f32 %v5461_v17, %v6345_v33 }
 0x135   :  { %v1550_v46 = vmul.f32 %v1500_v39, %v6156_v45  ;;  %v1694_v57 = vmul.f32 %v6292_v32, %v1500_v39  ;;  %v1742_v14 = vmul.f32 %v6259_v49, %v1500_v39  ;;  %v1199_v50 = vadd.f32 %v1183_v38, %v1115_v6 }
 0x136   :  { %v1233_v51 = vmul.f32 %v9716_v20, %v1215_v8  ;;  %v1267_v26 = vmul.f32 %v9717_v22, %v1215_v8  ;;  %v1299_v15 = vmul.f32 %v6338_v61, %v1215_v8  ;;  %v1972_v24 = vmul.f32 %v6270_v13, %v1773_v48 }
 0x137   :  { %vm554_vm4 = vcmp.lt.s32.totalorder %v9726_v35, %v5829_v56  ;;  %v1566_v25 = vsub.f32 %v1534_v58, %v1550_v46  ;;  %v1710_v17 = vmul.f32 %v1694_v57, %v6231_v10  ;;  %v983_v45 = vmul.f32 %v5858_v1, %v965_v53 }
 0x138   :  { %v1017_v29 = vmul.f32 %v5861_v2, %v965_v53  ;;  %v1249_v49 = vadd.f32 %v1233_v51, %v1165_v63  ;;  %v1283_v36 = vadd.f32 %v1267_v26, %v1199_v50  ;;  %v1317_v12 = vmul.f32 %v9719_v30, %v1299_v15  ;;  %vm605_vm9 = vmand %vm554_vm4, %vm6030_vm1 }
 0x139   :  { %v1351_v27 = vmul.f32 %v9720_v44, %v1299_v15  ;;  %v1582_v13 = vmul.f32 4.0, %v1566_v25  ;;  %1807 = vadd.xlane.f32.xlu1 %v1710_v17  ;;  %v1383_v37 = vmul.f32 %v6338_v61, %v1299_v15  ;;  %v6403_v28 = vmul.f32 %v6039_v31, %v1972_v24 }
 0x13a   :  { %vm669_vm6 = vcmp.ne.s32.totalorder %v9726_v35, %v5824_v55  ;;  %v999_v41 = vadd.f32 %v983_v45, %v899_v47  ;;  %v1333_v63 = vadd.f32 %v1317_v12, %v1249_v49  ;;  %v1033_v23 = vadd.f32 %v1017_v29, %v933_v43  ;;  %v9750_v35 = vld [vmem:[#allocation17_spill] sm:$0xff] }
 0x13b   :  { %9727 = vst [vmem:[#allocation18_spill] sm:$0xff] %v6403_v28  ;;  %v1367_v6 = vadd.f32 %v1351_v27, %v1283_v36  ;;  %v1049_v39 = vmul.f32 %v6345_v33, %v965_v53  ;;  %v1726_v58 = vmul.f32 %v6292_v32, %v1582_v13  ;;  %v1401_v38 = vmul.f32 %v9722_v42, %v1383_v37  ;;  %vm6455_vm11 = vmand %vm669_vm6, %vm605_vm9 }
 0x13c   :  { %v1435_v8 = vmul.f32 %v9723_v34, %v1383_v37  ;;  %v1467_v48 = vmul.f32 %v6338_v61, %v1383_v37  ;;  %v783_v32 = vsub.f32 %v5840_v59, %v6320_v19  ;;  %v867_v49 = vmul.f32 1.442695, %v6367_v21  ;;  %vm717_vm15 = vmand %vm6455_vm11, %vm701_vm8 }
 0x13d   :  { %v1067_v31 = vmul.f32 %v5864_v3, %v1049_v39  ;;  %v1101_v47 = vmul.f32 %v5867_v4, %v1049_v39  ;;  %v1133_v43 = vmul.f32 %v6345_v33, %v1049_v39  ;;  %v1758_v53 = vadd.f32 %v1742_v14, %v1726_v58 }
 0x13e   :  { %v1417_v46 = vadd.f32 %v1401_v38, %v1333_v63  ;;  %v1451_v57 = vadd.f32 %v1435_v8, %v1367_v6  ;;  %v1485_v50 = vmul.f32 %v9724_v18, %v1467_v48  ;;  %v1519_v61 = vmul.f32 %v9725_v9, %v1467_v48 }
 0x13f   :  { %v1083_v51 = vadd.f32 %v1067_v31, %v999_v41  ;;  %v1117_v26 = vadd.f32 %v1101_v47, %v1033_v23  ;;  %v1151_v15 = vmul.f32 %v5870_v5, %v1133_v43  ;;  %v6424_v24 = vmul.f32 %v1758_v53, %v6231_v10 }
 0x140   :  { %v1501_v25 = vadd.f32 %v1485_v50, %v1417_v46  ;;  %v1185_v17 = vmul.f32 %v5876_v7, %v1133_v43  ;;  %v1217_v45 = vmul.f32 %v6345_v33, %v1133_v43  ;;  %v1535_v19 = vadd.f32 %v1519_v61, %v1451_v57  ;;  %v9737_v57 = vld [vmem:[#allocation50_spill] sm:$0xff]  ;;  %v9738_v50 = vld [vmem:[#allocation24_spill] sm:$0xff]  ;;  %v9739_v61 = vld [vmem:[#allocation25_spill] sm:$0xff] }
 0x141   :  { %9728 = vst [vmem:[#allocation19_spill] sm:$0xff] %v6424_v24  ;;  %v1167_v14 = vadd.f32 %v1151_v15, %v1083_v51  ;;  %v799_v29 = vmul.f32 %v783_v32, %v6305_v16  ;;  %5462 = vpow2.f32 %v867_v49  ;;  %v1600_v39 = vmul.f32 0.33333334, %v6305_v16  ;;  %v9742_v49 = vld [vmem:[#allocation42_spill] sm:$0xff] }
 0x142   :  { %v1551_v36 = vmul.f32 %v1501_v25, %v6234_v52  ;;  %v1695_v12 = vmul.f32 %v6310_v54, %v1501_v25  ;;  %v1743_v27 = vmul.f32 %v6294_v40, %v1501_v25  ;;  %v1201_v10 = vadd.f32 %v1185_v17, %v1117_v26  ;;  %v9730_v52 = vld [vmem:[#allocation52_spill] sm:$0xff]  ;;  %v9741_v26 = vld [vmem:[#allocation38_spill] sm:$0xff] }
 0x143   :  { %v1235_v37 = vmul.f32 %v9716_v20, %v1217_v45  ;;  %v1269_v41 = vmul.f32 %v9717_v22, %v1217_v45  ;;  %v1301_v63 = vmul.f32 %v6345_v33, %v1217_v45  ;;  %v818_v21 = vmul.f32 1.442695, %v799_v29 }
 0x144   :  { %v1567_v6 = vsub.f32 %v1535_v19, %v1551_v36  ;;  %v1711_v23 = vmul.f32 %v1695_v12, %v9730_v52  ;;  %v1616_v32 = vmul.f32 %v1600_v39, %v1600_v39  ;;  %vm700_vm13 = vcmp.lt.f32.partialorder %v9737_v57, 3.0  ;;  %v9745_v36 = vld [vmem:[#allocation40_spill] sm:$0xff] }
 0x145   :  { %v1251_v38 = vadd.f32 %v1235_v37, %v1167_v14  ;;  %v1285_v8 = vadd.f32 %v1269_v41, %v1201_v10  ;;  %v1319_v48 = vmul.f32 %v9719_v30, %v1301_v63  ;;  %v1353_v31 = vmul.f32 %v9720_v44, %v1301_v63  ;;  %vm716_vm2 = vmand %vm6467_vm12, %vm700_vm13 }
 0x146   :  { %v1583_v47 = vmul.f32 4.0, %v1567_v6  ;;  %1809 = vadd.xlane.f32.xlu0 %v1711_v23  ;;  %v1385_v43 = vmul.f32 %v6345_v33, %v1301_v63  ;;  %5464 = vpow2.f32 %v818_v21  ;;  %vm556_vm14 = vcmp.lt.s32.totalorder %v9738_v50, %v5829_v56  ;;  %v9747_v23 = vld [vmem:[#allocation16_spill] sm:$0xff] }
 0x147   :  { %v1335_v53 = vadd.f32 %v1319_v48, %v1251_v38  ;;  %v1369_v46 = vadd.f32 %v1353_v31, %v1285_v8  ;;  %v9740_v51 = vmax.f32 %v9739_v61, 1e-12  ;;  %v6487_v19 = vsub.f32 1.0, %v1616_v32  ;;  %v9749_v32 = vld [vmem:[#allocation51_spill] sm:$0xff]  ;;  %vm6547_vm6 = vmand %vm556_vm14, %vm6030_vm1 }
 0x148   :  { %v1727_v25 = vmul.f32 %v6310_v54, %v1583_v47  ;;  %v1403_v11 = vmul.f32 %v9722_v42, %v1385_v43  ;;  %v1437_v17 = vmul.f32 %v9723_v34, %v1385_v43  ;;  %v1469_v45 = vmul.f32 %v6345_v33, %v1385_v43  ;;  %v9743_v54 = vld [vmem:[#allocation26_spill] sm:$0xff] }
 0x149   :  { %v6477_v15 = vmul.f32 %v9741_v26, %v9740_v51  ;;  %v1664_v14 = vmul.f32 -1.3333334, %v1600_v39  ;;  %vm555_vm0 = vcmp.lt.s32.totalorder %v9742_v49, %v5829_v56  ;;  %v9744_v62 = vmax.f32 %v9743_v54, 1e-12 }
 0x14a   :  { %v1759_v10 = vadd.f32 %v1743_v27, %v1727_v25  ;;  %v1419_v37 = vadd.f32 %v1403_v11, %v1335_v53  ;;  %v1453_v41 = vadd.f32 %v1437_v17, %v1369_v46  ;;  %v1487_v63 = vmul.f32 %v9724_v18, %v1469_v45  ;;  %vm606_vm7 = vmand %vm555_vm0, %vm6030_vm1 }
 0x14b   :  { %v6490_v29 = vmin.f32 %v6477_v15, 3.0  ;;  %v6497_v12 = vmul.f32 %v9745_v36, %v9744_v62  ;;  %vm671_vm3 = vcmp.ne.s32.totalorder %v9738_v50, %v5824_v55  ;;  %v9746_v33 = vmov 0.0   ;;  %v9757_v50 = vld [vmem:[#allocation28_spill] sm:$0xff] }
 0x14c   :  { %v733_v21 = vsel %vm717_vm15, 1.0, %v9746_v33  ;;  %v1521_v6 = vmul.f32 %v9725_v9, %v1469_v45  ;;  %v1649_v40 = vmul.f32 %v9747_v23, %v9747_v23  ;;  %v6511_v27 = vmul.f32 %v1664_v14, %v6487_v19  ;;  %vm687_vm8 = vmand %vm671_vm3, %vm6547_vm6 }
 0x14d   :  { %v6514_v39 = vmul.f32 %v1759_v10, %v9730_v52  ;;  %v1503_v58 = vadd.f32 %v1487_v63, %v1419_v37  ;;  %v769_v38 = vmul.f32 2.0, %v6490_v29  ;;  %v851_v8 = vmul.f32 %v5843_v60, %v6490_v29  ;;  %v6528_v52 = vpop.eup %5462  ;;  %v9752_v10 = vld [vmem:[#allocation14_spill] sm:$0xff] }
 0x14e   :  { %vm670_vm4 = vcmp.ne.s32.totalorder %v9742_v49, %v5824_v55  ;;  %v1537_v48 = vadd.f32 %v1521_v6, %v1453_v41  ;;  %v6522_v31 = vsel %vm716_vm2, 1.0, %v9746_v33  ;;  %v1603_v47 = vmul.f32 0.33333334, %v6490_v29 }
 0x14f   :  { %9748 = vst [vmem:[#allocation20_spill] sm:$0xff] %v6514_v39  ;;  %v6526_v43 = vmin.f32 %v6497_v12, 3.0  ;;  %v1553_v53 = vmul.f32 %v1503_v58, %v9749_v32  ;;  %v1697_v46 = vmul.f32 %v1649_v40, %v1503_v58  ;;  %v1745_v57 = vmul.f32 %v9750_v35, %v1503_v58  ;;  %vm6580_vm10 = vmand %vm670_vm4, %vm606_vm7 }
 0x150   :  { %v786_v61 = vsub.f32 %v5840_v59, %v769_v38  ;;  %v6534_v51 = vand.u32 4294901760, %v6403_v28  ;;  %vm703_vm5 = vcmp.lt.f32.partialorder %v6477_v15, 3.0  ;;  %v873_v25 = vmul.f32 1.442695, %v851_v8  ;;  %v5465_v17 = vpop.eup %5464 }
 0x151   :  { %v1619_v11 = vmul.f32 %v1603_v47, %v1603_v47  ;;  %v1569_v45 = vsub.f32 %v1537_v48, %v1553_v53  ;;  %v1713_v14 = vmul.f32 %v1697_v46, %v733_v21  ;;  %v768_v62 = vmul.f32 2.0, %v6526_v43  ;;  %vm719_vm11 = vmand %vm687_vm8, %vm703_vm5 }
 0x152   :  { %9751 = vst [vmem:[#allocation21_spill] sm:$0xff] %v6534_v51  ;;  %v802_v54 = vmul.f32 %v786_v61, %v6490_v29  ;;  %v898_v37 = vmul.f32 %v5465_v17, %v9752_v10  ;;  %v932_v41 = vmul.f32 %v5465_v17, %v5855_v0  ;;  %v964_v63 = vmul.f32 %v5465_v17, %v6528_v52 }
 0x153   :  { %v1667_v6 = vmul.f32 -1.3333334, %v1603_v47  ;;  %v1585_v23 = vmul.f32 4.0, %v1569_v45  ;;  %1813 = vadd.xlane.f32.xlu1 %v1713_v14  ;;  %v6551_v8 = vsub.f32 1.0, %v1619_v11  ;;  %v785_v48 = vsub.f32 %v5840_v59, %v768_v62 }
 0x154   :  { %v824_v38 = vmul.f32 1.442695, %v802_v54  ;;  %v982_v32 = vmul.f32 %v5858_v1, %v964_v63  ;;  %v1016_v47 = vmul.f32 %v5861_v2, %v964_v63  ;;  %v1048_v53 = vmul.f32 %v6528_v52, %v964_v63 }
 0x155   :  { %5466 = vpow2.f32 %v873_v25  ;;  %v1729_v46 = vmul.f32 %v1649_v40, %v1585_v23  ;;  %v6558_v35 = vmul.f32 %v1667_v6, %v6551_v8  ;;  %v850_v61 = vmul.f32 %v5843_v60, %v6526_v43 }
 0x156   :  { %5468 = vpow2.f32 %v824_v38  ;;  %v998_v11 = vadd.f32 %v982_v32, %v898_v37  ;;  %v1032_v17 = vadd.f32 %v1016_v47, %v932_v41  ;;  %v1066_v45 = vmul.f32 %v5864_v3, %v1048_v53 }
 0x157   :  { %v1100_v25 = vmul.f32 %v5867_v4, %v1048_v53  ;;  %v1761_v40 = vadd.f32 %v1745_v57, %v1729_v46  ;;  %v1132_v14 = vmul.f32 %v6528_v52, %v1048_v53  ;;  %vm702_vm9 = vcmp.lt.f32.partialorder %v6497_v12, 3.0  ;;  %v9759_v57 = vld [vmem:[#allocation41_spill] sm:$0xff] }
 0x158   :  { %v801_v54 = vmul.f32 %v785_v48, %v6526_v43  ;;  %v1082_v62 = vadd.f32 %v1066_v45, %v998_v11  ;;  %v1602_v63 = vmul.f32 0.33333334, %v6526_v43  ;;  %v9758_v6 = vmax.f32 %v9757_v50, 1e-12  ;;  %vm718_vm12 = vmand %vm6580_vm10, %vm702_vm9 }
 0x159   :  { %v1116_v37 = vadd.f32 %v1100_v25, %v1032_v17  ;;  %v6590_v58 = vmul.f32 %v1761_v40, %v733_v21  ;;  %v1150_v38 = vmul.f32 %v5870_v5, %v1132_v14  ;;  %v1184_v48 = vmul.f32 %v5876_v7, %v1132_v14 }
 0x15a   :  { %v6588_v23 = vmul.f32 %v9759_v57, %v9758_v6  ;;  %v1216_v32 = vmul.f32 %v6528_v52, %v1132_v14  ;;  %v6599_v49 = vmul.f32 %v6487_v19, %v6487_v19  ;;  %v822_v47 = vmul.f32 1.442695, %v801_v54 }
 0x15b   :  { %9760 = vst [vmem:[#allocation22_spill] sm:$0xff] %v6590_v58  ;;  %v871_v53 = vmul.f32 1.442695, %v850_v61  ;;  %v1618_v46 = vmul.f32 %v1602_v63, %v1602_v63  ;;  %v1166_v11 = vadd.f32 %v1150_v38, %v1082_v62  ;;  %v1200_v17 = vadd.f32 %v1184_v48, %v1116_v37 }
 0x15c   :  { %v1234_v21 = vmul.f32 %v9716_v20, %v1216_v32  ;;  %v1268_v45 = vmul.f32 %v9717_v22, %v1216_v32  ;;  %v1300_v15 = vmul.f32 %v6528_v52, %v1216_v32  ;;  %v6609_v25 = vsel %vm719_vm11, 1.0, %v9746_v33 }
 0x15d   :  { %5470 = vpow2.f32 %v822_v47  ;;  %v6611_v19 = vsub.f32 1.0, %v1618_v46  ;;  %v1666_v14 = vmul.f32 -1.3333334, %v1602_v63  ;;  %v6614_v54 = vmin.f32 %v6588_v23, 3.0 }
 0x15e   :  { %v1250_v61 = vadd.f32 %v1234_v21, %v1166_v11  ;;  %v1284_v40 = vadd.f32 %v1268_v45, %v1200_v17  ;;  %v1318_v12 = vmul.f32 %v9719_v30, %v1300_v15  ;;  %v1352_v37 = vmul.f32 %v9720_v44, %v1300_v15 }
 0x15f   :  { %9761 = vst [vmem:[#allocation23_spill] sm:$0xff] %v6614_v54  ;;  %v6616_v62 = vpop.eup %5466  ;;  %v1384_v41 = vmul.f32 %v6528_v52, %v1300_v15  ;;  %v6622_v50 = vsel %vm718_vm12, 1.0, %v9746_v33  ;;  %5472 = vpow2.f32 %v871_v53  ;;  %v6625_v38 = vmul.f32 %v1666_v14, %v6611_v19 }
 0x160   :  { %v5469_v6 = vpop.eup %5468  ;;  %v771_v63 = vmul.f32 2.0, %v6614_v54  ;;  %v853_v48 = vmul.f32 %v5843_v60, %v6614_v54  ;;  %v1334_v32 = vadd.f32 %v1318_v12, %v1250_v61  ;;  %v1368_v47 = vadd.f32 %v1352_v37, %v1284_v40 }
 0x161   :  { %v1402_v46 = vmul.f32 %v9722_v42, %v1384_v41  ;;  %v1436_v11 = vmul.f32 %v9723_v34, %v1384_v41  ;;  %v1468_v17 = vmul.f32 %v6528_v52, %v1384_v41  ;;  %v901_v21 = vmul.f32 %v5469_v6, %v9752_v10 }
 0x162   :  { %v935_v53 = vmul.f32 %v5469_v6, %v5855_v0  ;;  %v967_v45 = vmul.f32 %v5469_v6, %v6616_v62  ;;  %v788_v57 = vsub.f32 %v5840_v59, %v771_v63  ;;  %v877_v26 = vmul.f32 1.442695, %v853_v48 }
 0x163   :  { %v1418_v15 = vadd.f32 %v1402_v46, %v1334_v32  ;;  %v1452_v14 = vadd.f32 %v1436_v11, %v1368_v47  ;;  %v1486_v61 = vmul.f32 %v9724_v18, %v1468_v17  ;;  %v1520_v40 = vmul.f32 %v9725_v9, %v1468_v17 }
 0x164   :  { %v985_v12 = vmul.f32 %v5858_v1, %v967_v45  ;;  %v1019_v37 = vmul.f32 %v5861_v2, %v967_v45  ;;  %v1051_v52 = vmul.f32 %v6616_v62, %v967_v45  ;;  %v804_v41 = vmul.f32 %v788_v57, %v6614_v54 }
 0x165   :  { %5474 = vpow2.f32 %v877_v26  ;;  %v6644_v6 = vmul.f32 0.33333334, %v6614_v54  ;;  %v1502_v32 = vadd.f32 %v1486_v61, %v1418_v15  ;;  %v1536_v47 = vadd.f32 %v1520_v40, %v1452_v14 }
 0x166   :  { %v1001_v63 = vadd.f32 %v985_v12, %v901_v21  ;;  %v1035_v48 = vadd.f32 %v1019_v37, %v935_v53  ;;  %v1069_v11 = vmul.f32 %v5864_v3, %v1051_v52  ;;  %v1103_v17 = vmul.f32 %v5867_v4, %v1051_v52 }
 0x167   :  { %v5471_v46 = vpop.eup %5470  ;;  %v1135_v24 = vmul.f32 %v6616_v62, %v1051_v52  ;;  %v828_v58 = vmul.f32 1.442695, %v804_v41  ;;  %v1552_v45 = vmul.f32 %v1502_v32, %v6305_v16  ;;  %v1696_v57 = vmul.f32 %v6599_v49, %v1502_v32 }
 0x168   :  { %v1744_v26 = vmul.f32 %v6511_v27, %v1502_v32  ;;  %v900_v36 = vmul.f32 %v5471_v46, %v9752_v10  ;;  %v1085_v15 = vadd.f32 %v1069_v11, %v1001_v63  ;;  %v1119_v14 = vadd.f32 %v1103_v17, %v1035_v48 }
 0x169   :  { %v1153_v21 = vmul.f32 %v5870_v5, %v1135_v24  ;;  %v1187_v53 = vmul.f32 %v5876_v7, %v1135_v24  ;;  %v6655_v61 = vpop.eup %5472  ;;  %v1568_v40 = vsub.f32 %v1536_v47, %v1552_v45  ;;  %v1712_v12 = vmul.f32 %v1696_v57, %v6522_v31 }
 0x16a   :  { %v1219_v37 = vmul.f32 %v6616_v62, %v1135_v24  ;;  %v934_v16 = vmul.f32 %v5471_v46, %v5855_v0  ;;  %v966_v27 = vmul.f32 %v6655_v61, %v5471_v46  ;;  %5476 = vpow2.f32 %v828_v58 }
 0x16b   :  { %v1169_v52 = vadd.f32 %v1153_v21, %v1085_v15  ;;  %v1203_v41 = vadd.f32 %v1187_v53, %v1119_v14  ;;  %v1584_v32 = vmul.f32 4.0, %v1568_v40  ;;  %1811 = vadd.xlane.f32.xlu0 %v1712_v12  ;;  %v1621_v45 = vmul.f32 %v6644_v6, %v6644_v6 }
 0x16c   :  { %v1237_v63 = vmul.f32 %v9716_v20, %v1219_v37  ;;  %v1271_v48 = vmul.f32 %v9717_v22, %v1219_v37  ;;  %v1303_v11 = vmul.f32 %v6616_v62, %v1219_v37  ;;  %v984_v47 = vmul.f32 %v5858_v1, %v966_v27 }
 0x16d   :  { %v1018_v17 = vmul.f32 %v5861_v2, %v966_v27  ;;  %v1050_v24 = vmul.f32 %v6655_v61, %v966_v27  ;;  %v1728_v46 = vmul.f32 %v6599_v49, %v1584_v32  ;;  %vm705_vm3 = vcmp.lt.f32.partialorder %v6588_v23, 3.0  ;;  %v9778_v23 = vld [vmem:[#allocation12_spill] sm:$0xff] }
 0x16e   :  { %v1253_v58 = vadd.f32 %v1237_v63, %v1169_v52  ;;  %v1287_v57 = vadd.f32 %v1271_v48, %v1203_v41  ;;  %v1321_v15 = vmul.f32 %v9719_v30, %v1303_v11  ;;  %v1355_v21 = vmul.f32 %v9720_v44, %v1303_v11 }
 0x16f   :  { %v6671_v14 = vpop.eup %5474  ;;  %v1387_v53 = vmul.f32 %v6616_v62, %v1303_v11  ;;  %v1000_v40 = vadd.f32 %v984_v47, %v900_v36  ;;  %v1034_v12 = vadd.f32 %v1018_v17, %v934_v16  ;;  %v1760_v37 = vadd.f32 %v1744_v26, %v1728_v46 }
 0x170   :  { %v1337_v39 = vadd.f32 %v1321_v15, %v1253_v58  ;;  %v1068_v27 = vmul.f32 %v5864_v3, %v1050_v24  ;;  %v1102_v54 = vmul.f32 %v5867_v4, %v1050_v24  ;;  %v1371_v33 = vadd.f32 %v1355_v21, %v1287_v57 }
 0x171   :  { %v1405_v49 = vmul.f32 %v9722_v42, %v1387_v53  ;;  %v1439_v52 = vmul.f32 %v9723_v34, %v1387_v53  ;;  %v1471_v41 = vmul.f32 %v6616_v62, %v1387_v53  ;;  %v6681_v32 = vmul.f32 %v1760_v37, %v6522_v31 }
 0x172   :  { %v1084_v63 = vadd.f32 %v1068_v27, %v1000_v40  ;;  %v1118_v48 = vadd.f32 %v1102_v54, %v1034_v12  ;;  %v1134_v36 = vmul.f32 %v6655_v61, %v1050_v24  ;;  %v1651_v17 = vmul.f32 %v6551_v8, %v6551_v8  ;;  %v9765_v24 = vld [vmem:[#allocation45_spill] sm:$0xff] }
 0x173   :  { %9762 = vst [vmem:[#allocation15_spill] sm:$0xff] %v6681_v32  ;;  %v1421_v26 = vadd.f32 %v1405_v49, %v1337_v39  ;;  %v1455_v16 = vadd.f32 %v1439_v52, %v1371_v33  ;;  %v1489_v11 = vmul.f32 %v9724_v18, %v1471_v41  ;;  %v1523_v47 = vmul.f32 %v9725_v9, %v1471_v41  ;;  %v9763_v39 = vld [vmem:[#allocation29_spill] sm:$0xff] }
 0x174   :  { %v1152_v46 = vmul.f32 %v5870_v5, %v1134_v36  ;;  %v1186_v62 = vmul.f32 %v5876_v7, %v1134_v36  ;;  %v1218_v31 = vmul.f32 %v6655_v61, %v1134_v36  ;;  %v5477_v58 = vpop.eup %5476  ;;  %v6691_v15 = vsub.f32 1.0, %v1621_v45 }
 0x175   :  { %v1505_v57 = vadd.f32 %v1489_v11, %v1421_v26  ;;  %v1539_v54 = vadd.f32 %v1523_v47, %v1455_v16  ;;  %v9764_v33 = vmax.f32 %v9763_v39, 1e-12  ;;  %v6705_v36 = vmul.f32 %v6611_v19, %v6611_v19 }
 0x176   :  { %v1168_v53 = vadd.f32 %v1152_v46, %v1084_v63  ;;  %v1202_v40 = vadd.f32 %v1186_v62, %v1118_v48  ;;  %v1236_v8 = vmul.f32 %v9716_v20, %v1218_v31  ;;  %v1270_v12 = vmul.f32 %v9717_v22, %v1218_v31 }
 0x177   :  { %v6696_v21 = vmul.f32 %v9765_v24, %v9764_v33  ;;  %v1555_v37 = vmul.f32 %v1505_v57, %v6490_v29  ;;  %v1699_v27 = vmul.f32 %v1651_v17, %v1505_v57  ;;  %v1747_v49 = vmul.f32 %v6558_v35, %v1505_v57 }
 0x178   :  { %v1302_v52 = vmul.f32 %v6655_v61, %v1218_v31  ;;  %v1252_v45 = vadd.f32 %v1236_v8, %v1168_v53  ;;  %v1286_v41 = vadd.f32 %v1270_v12, %v1202_v40  ;;  %v1669_v63 = vmul.f32 -1.3333334, %v6644_v6  ;;  %v9766_v31 = vld [vmem:[#allocation43_spill] sm:$0xff] }
 0x179   :  { %v1571_v48 = vsub.f32 %v1539_v54, %v1555_v37  ;;  %v1715_v26 = vmul.f32 %v1699_v27, %v6609_v25  ;;  %v903_v35 = vmul.f32 %v5477_v58, %v9752_v10  ;;  %v969_v47 = vmul.f32 %v5477_v58, %v6671_v14 }
 0x17a   :  { %v1320_v16 = vmul.f32 %v9719_v30, %v1302_v52  ;;  %v1354_v29 = vmul.f32 %v9720_v44, %v1302_v52  ;;  %v1386_v11 = vmul.f32 %v6655_v61, %v1302_v52  ;;  %v6715_v46 = vmul.f32 %v1669_v63, %v6691_v15 }
 0x17b   :  { %v1587_v19 = vmul.f32 4.0, %v1571_v48  ;;  %1817 = vadd.xlane.f32.xlu1 %v1715_v26  ;;  %vm558_vm13 = vcmp.lt.s32.totalorder %v9766_v31, %v5829_v56  ;;  %v937_v57 = vmul.f32 %v5477_v58, %v5855_v0  ;;  %v987_v53 = vmul.f32 %v5858_v1, %v969_v47  ;;  %v9767_v48 = vld [vmem:[#allocation44_spill] sm:$0xff] }
 0x17c   :  { %v1336_v62 = vadd.f32 %v1320_v16, %v1252_v45  ;;  %v1370_v6 = vadd.f32 %v1354_v29, %v1286_v41  ;;  %v1404_v54 = vmul.f32 %v9722_v42, %v1386_v11  ;;  %v1438_v39 = vmul.f32 %v9723_v34, %v1386_v11  ;;  %vm609_vm2 = vmand %vm558_vm13, %vm6030_vm1 }
 0x17d   :  { %v1470_v33 = vmul.f32 %v6655_v61, %v1386_v11  ;;  %v1731_v40 = vmul.f32 %v1651_v17, %v1587_v19  ;;  %v1021_v8 = vmul.f32 %v5861_v2, %v969_v47  ;;  %v1053_v12 = vmul.f32 %v6671_v14, %v969_v47 }
 0x17e   :  { %v6727_v37 = vmin.f32 %v6696_v21, 3.0  ;;  %v1420_v27 = vadd.f32 %v1404_v54, %v1336_v62  ;;  %v1454_v52 = vadd.f32 %v1438_v39, %v1370_v6  ;;  %vm673_vm14 = vcmp.ne.s32.totalorder %v9766_v31, %v5824_v55 }
 0x17f   :  { %v1488_v58 = vmul.f32 %v9724_v18, %v1470_v33  ;;  %v1522_v45 = vmul.f32 %v9725_v9, %v1470_v33  ;;  %v1763_v61 = vadd.f32 %v1747_v49, %v1731_v40  ;;  %v1003_v41 = vadd.f32 %v987_v53, %v903_v35  ;;  %vm6772_vm4 = vmand %vm673_vm14, %vm609_vm2 }
 0x180   :  { %v1037_v63 = vadd.f32 %v1021_v8, %v937_v57  ;;  %v1071_v17 = vmul.f32 %v5864_v3, %v1053_v12  ;;  %vm557_vm15 = vcmp.lt.s32.totalorder %v9767_v48, %v5829_v56  ;;  %v1105_v29 = vmul.f32 %v5867_v4, %v1053_v12  ;;  %vm721_vm6 = vmand %vm6772_vm4, %vm705_vm3 }
 0x181   :  { %v1504_v26 = vadd.f32 %v1488_v58, %v1420_v27  ;;  %v1538_v16 = vadd.f32 %v1522_v45, %v1454_v52  ;;  %v1137_v11 = vmul.f32 %v6671_v14, %v1053_v12  ;;  %v6739_v47 = vmul.f32 %v1763_v61, %v6609_v25  ;;  %vm608_vm5 = vmand %vm557_vm15, %vm6030_vm1 }
 0x182   :  { %v1087_v19 = vadd.f32 %v1071_v17, %v1003_v41  ;;  %v770_v62 = vmul.f32 2.0, %v6727_v37  ;;  %v852_v49 = vmul.f32 %v5843_v60, %v6727_v37  ;;  %v1121_v54 = vadd.f32 %v1105_v29, %v1037_v63 }
 0x183   :  { %9768 = vst [vmem:[#allocation27_spill] sm:$0xff] %v6739_v47  ;;  %v1554_v35 = vmul.f32 %v1504_v26, %v6526_v43  ;;  %v1698_v6 = vmul.f32 %v6705_v36, %v1504_v26  ;;  %v1746_v57 = vmul.f32 %v6625_v38, %v1504_v26  ;;  %vm672_vm0 = vcmp.ne.s32.totalorder %v9767_v48, %v5824_v55 }
 0x184   :  { %v1155_v39 = vmul.f32 %v5870_v5, %v1137_v11  ;;  %v1189_v25 = vmul.f32 %v5876_v7, %v1137_v11  ;;  %v1221_v33 = vmul.f32 %v6671_v14, %v1137_v11  ;;  %v787_v53 = vsub.f32 %v5840_v59, %v770_v62  ;;  %vm688_vm7 = vmand %vm672_vm0, %vm608_vm5 }
 0x185   :  { %v1570_v40 = vsub.f32 %v1538_v16, %v1554_v35  ;;  %v1714_v8 = vmul.f32 %v1698_v6, %v6622_v50  ;;  %v875_v43 = vmul.f32 1.442695, %v852_v49  ;;  %v1604_v12 = vmul.f32 0.33333334, %v6727_v37 }
 0x186   :  { %v1171_v27 = vadd.f32 %v1155_v39, %v1087_v19  ;;  %v1205_v38 = vadd.f32 %v1189_v25, %v1121_v54  ;;  %v1239_v52 = vmul.f32 %v9716_v20, %v1221_v33  ;;  %v1273_v58 = vmul.f32 %v9717_v22, %v1221_v33  ;;  %v9771_v54 = vld [vmem:[#allocation31_spill] sm:$0xff] }
 0x187   :  { %v1586_v45 = vmul.f32 4.0, %v1570_v40  ;;  %1815 = vadd.xlane.f32.xlu0 %v1714_v8  ;;  %v1305_v61 = vmul.f32 %v6671_v14, %v1221_v33  ;;  %v803_v41 = vmul.f32 %v787_v53, %v6727_v37  ;;  %5478 = vpow2.f32 %v875_v43  ;;  %v9773_v25 = vld [vmem:[#allocation47_spill] sm:$0xff] }
 0x188   :  { %v1255_v63 = vadd.f32 %v1239_v52, %v1171_v27  ;;  %v1289_v17 = vadd.f32 %v1273_v58, %v1205_v38  ;;  %v1620_v26 = vmul.f32 %v1604_v12, %v1604_v12  ;;  %v1668_v6 = vmul.f32 -1.3333334, %v1604_v12  ;;  %v9774_v12 = vld [vmem:[#allocation46_spill] sm:$0xff] }
 0x189   :  { %v1730_v16 = vmul.f32 %v6705_v36, %v1586_v45  ;;  %v1323_v29 = vmul.f32 %v9719_v30, %v1305_v61  ;;  %v1357_v11 = vmul.f32 %v9720_v44, %v1305_v61  ;;  %v1389_v19 = vmul.f32 %v6671_v14, %v1305_v61 }
 0x18a   :  { %v826_v49 = vmul.f32 1.442695, %v803_v41  ;;  %v1636_v35 = vsub.f32 1.0, %v1620_v26  ;;  %v9772_v39 = vmax.f32 %v9771_v54, 1e-12  ;;  %vm704_vm8 = vcmp.lt.f32.partialorder %v6696_v21, 3.0 }
 0x18b   :  { %v1762_v33 = vadd.f32 %v1746_v57, %v1730_v16  ;;  %v1339_v53 = vadd.f32 %v1323_v29, %v1255_v63  ;;  %v1373_v40 = vadd.f32 %v1357_v11, %v1289_v17  ;;  %v1407_v8 = vmul.f32 %v9722_v42, %v1389_v19  ;;  %vm6818_vm9 = vmand %vm688_vm7, %vm704_vm8 }
 0x18c   :  { %v6779_v36 = vmul.f32 %v9773_v25, %v9772_v39  ;;  %v1441_v31 = vmul.f32 %v9723_v34, %v1389_v19  ;;  %v1473_v43 = vmul.f32 %v6671_v14, %v1389_v19  ;;  %5480 = vpow2.f32 %v826_v49  ;;  %v9785_v39 = vld [vmem:[#allocation48_spill] sm:$0xff] }
 0x18d   :  { %v9775_v27 = vmax.f32 %v9774_v12, 1e-12  ;;  %v6792_v57 = vmul.f32 %v1762_v33, %v6622_v50  ;;  %v1423_v38 = vadd.f32 %v1407_v8, %v1339_v53  ;;  %v6798_v52 = vmul.f32 %v1668_v6, %v1636_v35  ;;  %v9777_v50 = vld [vmem:[#allocation49_spill] sm:$0xff]  ;;  %v9783_v6 = vld [vmem:[#allocation32_spill] sm:$0xff] }
 0x18e   :  { %v1457_v58 = vadd.f32 %v1441_v31, %v1373_v40  ;;  %v1491_v45 = vmul.f32 %v9724_v18, %v1473_v43  ;;  %v1525_v14 = vmul.f32 %v9725_v9, %v1473_v43  ;;  %v9572_v61 = vmax.f32 %v9777_v50, 1e-12  ;;  %v9786_v40 = vld [vmem:[#allocation23_spill] sm:$0xff] }
 0x18f   :  { %5482 = vrsqrt.f32 %v9775_v27  ;;  %9776 = vst [vmem:[#allocation52_spill] sm:$0xff] %v6792_v57  ;;  %v521_v41 = vadd.s32 80, %v9778_v23  ;;  %v6809_v63 = vmin.f32 %v6779_v36, 3.0  ;;  %v6813_v17 = vsub.f32 %v6403_v28, %v6534_v51 }
 0x190   :  { %v9780_v26 = vmov 0.0   ;;  %v1507_v29 = vadd.f32 %v1491_v45, %v1423_v38  ;;  %v1541_v11 = vadd.f32 %v1525_v14, %v1457_v58  ;;  %v1653_v48 = vmul.f32 %v6691_v15, %v6691_v15 }
 0x191   :  { %9779 = vst [vmem:[#allocation50_spill] sm:$0xff] %v6813_v17  ;;  %v737_v16 = vsel %vm721_vm6, 1.0, %v9780_v26  ;;  %v773_v19 = vmul.f32 2.0, %v6809_v63  ;;  %v855_v62 = vmul.f32 %v5843_v60, %v6809_v63  ;;  %v1607_v49 = vmul.f32 0.33333334, %v6809_v63  ;;  %v6831_v53 = vpop.eup %5478 }
 0x192   :  { %v9784_v54 = vmax.f32 %v9783_v6, 1e-12  ;;  %v1557_v15 = vmul.f32 %v1507_v29, %v9786_v40  ;;  %v1701_v8 = vmul.f32 %v1653_v48, %v1507_v29  ;;  %v1749_v31 = vmul.f32 %v6715_v46, %v1507_v29 }
 0x193   :  { %v9573_v43 = vand.u32 4294901760, %v6813_v17  ;;  %vm560_vm10 = vcmp.lt.s32.totalorder %v521_v41, %v5829_v56  ;;  %v790_v27 = vsub.f32 %v5840_v59, %v773_v19  ;;  %v881_v38 = vmul.f32 1.442695, %v855_v62 }
 0x194   :  { %v6829_v33 = vmul.f32 %v9785_v39, %v9784_v54  ;;  %v1623_v58 = vmul.f32 %v1607_v49, %v1607_v49  ;;  %5484 = vrsqrt.f32 %v9572_v61  ;;  %v1573_v45 = vsub.f32 %v1541_v11, %v1557_v15  ;;  %vm6855_vm12 = vmand %vm560_vm10, %vm6030_vm1  ;;  %v9791_v11 = vld [vmem:[#allocation34_spill] sm:$0xff] }
 0x195   :  { %v1717_v14 = vmul.f32 %v1701_v8, %v737_v16  ;;  %v6843_v6 = vsel %vm6818_vm9, 1.0, %v9780_v26  ;;  %4984 = vmatprep.mubr.f32.mxu0 %v9573_v43  ;;  %v6847_v46 = vmul.f32 %v1636_v35, %v1636_v35  ;;  %vm675_vm11 = vcmp.ne.s32.totalorder %v521_v41, %v5824_v55 }
 0x196   :  { %v806_v29 = vmul.f32 %v790_v27, %v6809_v63  ;;  %v1639_v19 = vsub.f32 1.0, %v1623_v58  ;;  %v5481_v62 = vpop.eup %5480  ;;  %v1589_v54 = vmul.f32 4.0, %v1573_v45  ;;  %vm707_vm13 = vcmp.lt.f32.partialorder %v6779_v36, 3.0  ;;  %vm691_vm14 = vmand %vm675_vm11, %vm6855_vm12 }
 0x197   :  { %1821 = vadd.xlane.f32.xlu1 %v1717_v14  ;;  %v1671_v35 = vmul.f32 -1.3333334, %v1607_v49  ;;  %v6861_v21 = vmin.f32 %v6829_v33, 3.0  ;;  %v968_v15 = vmul.f32 %v5481_v62, %v6831_v53  ;;  %5486 = vpow2.f32 %v881_v38  ;;  %vm723_vm15 = vmand %vm691_vm14, %vm707_vm13 }
 0x198   :  { %v832_v8 = vmul.f32 1.442695, %v806_v29  ;;  %v6867_v27 = vadd.s32 72, %v9778_v23  ;;  %v1733_v58 = vmul.f32 %v1653_v48, %v1589_v54  ;;  %v902_v45 = vmul.f32 %v5481_v62, %v9752_v10 }
 0x199   :  { %v6863_v40 = vpop.eup %5482  ;;  %v936_v14 = vmul.f32 %v5481_v62, %v5855_v0  ;;  %v6871_v61 = vmul.f32 %v1671_v35, %v1639_v19  ;;  %v986_v49 = vmul.f32 %v5858_v1, %v968_v15  ;;  %v1020_v43 = vmul.f32 %v5861_v2, %v968_v15 }
 0x19a   :  { %9789 = vst [vmem:[#allocation24_spill] sm:$0xff] %v6863_v40  ;;  %v1052_v51 = vmul.f32 %v6831_v53, %v968_v15  ;;  %5488 = vpow2.f32 %v832_v8  ;;  %v1765_v38 = vadd.f32 %v1749_v31, %v1733_v58  ;;  %v772_v48 = vmul.f32 2.0, %v6861_v21  ;;  %v9793_v58 = vld [vmem:[#allocation53_spill] sm:$0xff] }
 0x19b   :  { %v854_v29 = vmul.f32 %v5843_v60, %v6861_v21  ;;  %v1606_v62 = vmul.f32 0.33333334, %v6861_v21  ;;  %v1002_v54 = vadd.f32 %v986_v49, %v902_v45  ;;  %v1036_v35 = vadd.f32 %v1020_v43, %v936_v14 }
 0x19c   :  { %v1070_v25 = vmul.f32 %v5864_v3, %v1052_v51  ;;  %v1104_v15 = vmul.f32 %v5867_v4, %v1052_v51  ;;  %v6886_v39 = vmul.f32 %v1765_v38, %v737_v16  ;;  %v1136_v41 = vmul.f32 %v6831_v53, %v1052_v51 }
 0x19d   :  { %v789_v31 = vsub.f32 %v5840_v59, %v772_v48  ;;  %v9792_v8 = vmax.f32 %v9791_v11, 1e-12  ;;  %v879_v14 = vmul.f32 1.442695, %v854_v29  ;;  %v1622_v49 = vmul.f32 %v1606_v62, %v1606_v62 }
 0x19e   :  { %9790 = vst [vmem:[#allocation25_spill] sm:$0xff] %v6886_v39  ;;  %v1086_v45 = vadd.f32 %v1070_v25, %v1002_v54  ;;  %v1120_v43 = vadd.f32 %v1104_v15, %v1036_v35  ;;  %v6897_v24 = vpop.eup %5484  ;;  %v1154_v16 = vmul.f32 %v5870_v5, %v1136_v41  ;;  %v1188_v51 = vmul.f32 %v5876_v7, %v1136_v41 }
 0x19f   :  { %v6895_v47 = vmul.f32 %v9793_v58, %v9792_v8  ;;  %9794 = vst [vmem:[#allocation42_spill] sm:$0xff] %v6897_v24  ;;  %v1220_v36 = vmul.f32 %v6831_v53, %v1136_v41  ;;  %v805_v38 = vmul.f32 %v789_v31, %v6861_v21  ;;  %v6904_v48 = vsel %vm723_vm15, 1.0, %v9780_v26 }
 0x1a0   :  { %v6906_v11 = vsub.f32 1.0, %v1622_v49  ;;  %v1670_v8 = vmul.f32 -1.3333334, %v1606_v62  ;;  %v6909_v25 = vadd.s32 96, %v9778_v23  ;;  %v1170_v29 = vadd.f32 %v1154_v16, %v1086_v45 }
 0x1a1   :  { %v1204_v54 = vadd.f32 %v1188_v51, %v1120_v43  ;;  %v1238_v35 = vmul.f32 %v9716_v20, %v1220_v36  ;;  %v1272_v15 = vmul.f32 %v9717_v22, %v1220_v36  ;;  %v6913_v58 = vpop.eup %5486  ;;  %v1304_v41 = vmul.f32 %v6831_v53, %v1220_v36 }
 0x1a2   :  { %v6916_v31 = vmul.f32 %v1639_v19, %v1639_v19  ;;  %v830_v39 = vmul.f32 1.442695, %v805_v38  ;;  %v6919_v49 = vmul.f32 %v1670_v8, %v6906_v11  ;;  %5490 = vpow2.f32 %v879_v14 }
 0x1a3   :  { %v1254_v62 = vadd.f32 %v1238_v35, %v1170_v29  ;;  %v1288_v57 = vadd.f32 %v1272_v15, %v1204_v54  ;;  %v6922_v45 = vmin.f32 %v6895_v47, 3.0  ;;  %v1322_v16 = vmul.f32 %v9719_v30, %v1304_v41 }
 0x1a4   :  { %v5489_v43 = vpop.eup %5488  ;;  %v1356_v51 = vmul.f32 %v9720_v44, %v1304_v41  ;;  %v1388_v32 = vmul.f32 %v6831_v53, %v1304_v41  ;;  %5492 = vpow2.f32 %v830_v39  ;;  %vm559_vm0 = vcmp.lt.s32.totalorder %v6867_v27, %v5829_v56 }
 0x1a5   :  { %9795 = vst [vmem:[#allocation26_spill] sm:$0xff] %v6922_v45  ;;  %v905_v19 = vmul.f32 %v5489_v43, %v9752_v10  ;;  %v939_v36 = vmul.f32 %v5489_v43, %v5855_v0  ;;  %v971_v38 = vmul.f32 %v5489_v43, %v6913_v58  ;;  %v775_v8 = vmul.f32 2.0, %v6922_v45  ;;  %vm610_vm4 = vmand %vm559_vm0, %vm6030_vm1 }
 0x1a6   :  { %v1338_v14 = vadd.f32 %v1322_v16, %v1254_v62  ;;  %v1372_v29 = vadd.f32 %v1356_v51, %v1288_v57  ;;  %v1406_v54 = vmul.f32 %v9722_v42, %v1388_v32  ;;  %v1440_v35 = vmul.f32 %v9723_v34, %v1388_v32 }
 0x1a7   :  { %v1472_v15 = vmul.f32 %v6831_v53, %v1388_v32  ;;  %v989_v39 = vmul.f32 %v5858_v1, %v971_v38  ;;  %v1023_v41 = vmul.f32 %v5861_v2, %v971_v38  ;;  %v1055_v28 = vmul.f32 %v6913_v58, %v971_v38 }
 0x1a8   :  { %v1422_v43 = vadd.f32 %v1406_v54, %v1338_v14  ;;  %v1456_v24 = vadd.f32 %v1440_v35, %v1372_v29  ;;  %v792_v62 = vsub.f32 %v5840_v59, %v775_v8  ;;  %v857_v57 = vmul.f32 %v5843_v60, %v6922_v45 }
 0x1a9   :  { %v1490_v16 = vmul.f32 %v9724_v18, %v1472_v15  ;;  %v1524_v51 = vmul.f32 %v9725_v9, %v1472_v15  ;;  %v1005_v50 = vadd.f32 %v989_v39, %v905_v19  ;;  %v1039_v40 = vadd.f32 %v1023_v41, %v939_v36 }
 0x1aa   :  { %vm674_vm2 = vcmp.ne.s32.totalorder %v6867_v27, %v5824_v55  ;;  %v1073_v32 = vmul.f32 %v5864_v3, %v1055_v28  ;;  %v1107_v53 = vmul.f32 %v5867_v4, %v1055_v28  ;;  %v1139_v38 = vmul.f32 %v6913_v58, %v1055_v28 }
 0x1ab   :  { %v808_v8 = vmul.f32 %v792_v62, %v6922_v45  ;;  %v1506_v14 = vadd.f32 %v1490_v16, %v1422_v43  ;;  %v1540_v29 = vadd.f32 %v1524_v51, %v1456_v24  ;;  %v885_v54 = vmul.f32 1.442695, %v857_v57  ;;  %vm690_vm5 = vmand %vm674_vm2, %vm610_vm4 }
 0x1ac   :  { %v1609_v35 = vmul.f32 0.33333334, %v6922_v45  ;;  %v1089_v12 = vadd.f32 %v1073_v32, %v1005_v50  ;;  %v1123_v15 = vadd.f32 %v1107_v53, %v1039_v40  ;;  %v1157_v19 = vmul.f32 %v5870_v5, %v1139_v38  ;;  %v6954_v39 = vpop.eup %5490 }
 0x1ad   :  { %v1191_v36 = vmul.f32 %v5876_v7, %v1139_v38  ;;  %vm706_vm3 = vcmp.lt.f32.partialorder %v6829_v33, 3.0  ;;  %v1556_v41 = vmul.f32 %v1506_v14, %v6727_v37  ;;  %v1700_v28 = vmul.f32 %v6847_v46, %v1506_v14 }
 0x1ae   :  { %v1748_v43 = vmul.f32 %v6798_v52, %v1506_v14  ;;  %v1223_v24 = vmul.f32 %v6913_v58, %v1139_v38  ;;  %v5493_v62 = vpop.eup %5492  ;;  %v1173_v57 = vadd.f32 %v1157_v19, %v1089_v12  ;;  %v836_v40 = vmul.f32 1.442695, %v808_v8  ;;  %vm722_vm6 = vmand %vm690_vm5, %vm706_vm3 }
 0x1af   :  { %v1207_v50 = vadd.f32 %v1191_v36, %v1123_v15  ;;  %5494 = vpow2.f32 %v885_v54  ;;  %v1572_v16 = vsub.f32 %v1540_v29, %v1556_v41  ;;  %v1716_v51 = vmul.f32 %v1700_v28, %v6843_v6 }
 0x1b0   :  { %v1241_v32 = vmul.f32 %v9716_v20, %v1223_v24  ;;  %v1275_v53 = vmul.f32 %v9717_v22, %v1223_v24  ;;  %v1307_v37 = vmul.f32 %v6913_v58, %v1223_v24  ;;  %v904_v45 = vmul.f32 %v5493_v62, %v9752_v10 }
 0x1b1   :  { %v938_v52 = vmul.f32 %v5493_v62, %v5855_v0  ;;  %v970_v38 = vmul.f32 %v5493_v62, %v6954_v39  ;;  %v1588_v14 = vmul.f32 4.0, %v1572_v16  ;;  %1819 = vadd.xlane.f32.xlu0 %v1716_v51  ;;  %5496 = vpow2.f32 %v836_v40 }
 0x1b2   :  { %v1257_v12 = vadd.f32 %v1241_v32, %v1173_v57  ;;  %v1291_v8 = vadd.f32 %v1275_v53, %v1207_v50  ;;  %v1325_v29 = vmul.f32 %v9719_v30, %v1307_v37  ;;  %v1359_v54 = vmul.f32 %v9720_v44, %v1307_v37 }
 0x1b3   :  { %v1391_v15 = vmul.f32 %v6913_v58, %v1307_v37  ;;  %v988_v19 = vmul.f32 %v5858_v1, %v970_v38  ;;  %v1732_v36 = vmul.f32 %v6847_v46, %v1588_v14  ;;  %v1022_v41 = vmul.f32 %v5861_v2, %v970_v38 }
 0x1b4   :  { %v1054_v28 = vmul.f32 %v6954_v39, %v970_v38  ;;  %v1625_v24 = vmul.f32 %v1609_v35, %v1609_v35  ;;  %v1341_v62 = vadd.f32 %v1325_v29, %v1257_v12  ;;  %v1375_v57 = vadd.f32 %v1359_v54, %v1291_v8 }
 0x1b5   :  { %v1409_v50 = vmul.f32 %v9722_v42, %v1391_v15  ;;  %v1443_v40 = vmul.f32 %v9723_v34, %v1391_v15  ;;  %v1764_v16 = vadd.f32 %v1748_v43, %v1732_v36  ;;  %v1475_v51 = vmul.f32 %v6913_v58, %v1391_v15 }
 0x1b6   :  { %v1004_v32 = vadd.f32 %v988_v19, %v904_v45  ;;  %v1038_v46 = vadd.f32 %v1022_v41, %v938_v52  ;;  %v1072_v38 = vmul.f32 %v5864_v3, %v1054_v28  ;;  %v1106_v14 = vmul.f32 %v5867_v4, %v1054_v28 }
 0x1b7   :  { %v1425_v53 = vadd.f32 %v1409_v50, %v1341_v62  ;;  %v1459_v37 = vadd.f32 %v1443_v40, %v1375_v57  ;;  %v6988_v12 = vmul.f32 %v1764_v16, %v6843_v6  ;;  %v1493_v8 = vmul.f32 %v9724_v18, %v1475_v51 }
 0x1b8   :  { %v1527_v29 = vmul.f32 %v9725_v9, %v1475_v51  ;;  %v1138_v27 = vmul.f32 %v6954_v39, %v1054_v28  ;;  %v1088_v45 = vadd.f32 %v1072_v38, %v1004_v32  ;;  %v1122_v43 = vadd.f32 %v1106_v14, %v1038_v46 }
 0x1b9   :  { %9796 = vst [vmem:[#allocation16_spill] sm:$0xff] %v6988_v12  ;;  %v6995_v58 = vpop.eup %5494  ;;  %v1641_v52 = vsub.f32 1.0, %v1625_v24  ;;  %v1673_v54 = vmul.f32 -1.3333334, %v1609_v35  ;;  %v1509_v15 = vadd.f32 %v1493_v8, %v1425_v53  ;;  %v7000_v41 = vsel %vm722_vm6, 1.0, %v9780_v26 }
 0x1ba   :  { %v1543_v19 = vadd.f32 %v1527_v29, %v1459_v37  ;;  %v1156_v6 = vmul.f32 %v5870_v5, %v1138_v27  ;;  %v1190_v36 = vmul.f32 %v5876_v7, %v1138_v27  ;;  %v1222_v33 = vmul.f32 %v6954_v39, %v1138_v27 }
 0x1bb   :  { %v7003_v62 = vmul.f32 %v1673_v54, %v1641_v52  ;;  %v9797_v28 = vand.u32 4294901760, %v6813_v17  ;;  %v5497_v50 = vpop.eup %5496  ;;  %v1559_v35 = vmul.f32 %v1509_v15, %v6809_v63  ;;  %v1703_v24 = vmul.f32 %v6916_v31, %v1509_v15 }
 0x1bc   :  { %v1751_v40 = vmul.f32 %v6871_v61, %v1509_v15  ;;  %v1172_v16 = vadd.f32 %v1156_v6, %v1088_v45  ;;  %v1206_v51 = vadd.f32 %v1190_v36, %v1122_v43  ;;  %v1240_v32 = vmul.f32 %v9716_v20, %v1222_v33 }
 0x1bd   :  { %v2168_v57 = vsub.f32 %v6813_v17, %v9797_v28  ;;  %v1274_v46 = vmul.f32 %v9717_v22, %v1222_v33  ;;  %v1306_v53 = vmul.f32 %v6954_v39, %v1222_v33  ;;  %v1575_v37 = vsub.f32 %v1543_v19, %v1559_v35 }
 0x1be   :  { %v1719_v38 = vmul.f32 %v1703_v24, %v6904_v48  ;;  %v7017_v14 = vmul.f32 %v6906_v11, %v6906_v11  ;;  %v907_v63 = vmul.f32 %v5497_v50, %v9752_v10  ;;  %v1256_v8 = vadd.f32 %v1240_v32, %v1172_v16 }
 0x1bf   :  { %v1290_v29 = vadd.f32 %v1274_v46, %v1206_v51  ;;  %v1324_v61 = vmul.f32 %v9719_v30, %v1306_v53  ;;  %v1358_v27 = vmul.f32 %v9720_v44, %v1306_v53  ;;  %v1591_v45 = vmul.f32 4.0, %v1575_v37  ;;  %v9798_v51 = vld [vmem:[#allocation35_spill] sm:$0xff]  ;;  %v9800_v46 = vld [vmem:[#allocation54_spill] sm:$0xff] }
 0x1c0   :  { %1825 = vadd.xlane.f32.xlu1 %v1719_v38  ;;  %v1390_v43 = vmul.f32 %v6954_v39, %v1306_v53  ;;  %v973_v54 = vmul.f32 %v5497_v50, %v6995_v58  ;;  %v2169_v15 = vand.u32 4294901760, %v2168_v57  ;;  %v941_v11 = vmul.f32 %v5497_v50, %v5855_v0 }
 0x1c1   :  { %v1340_v19 = vadd.f32 %v1324_v61, %v1256_v8  ;;  %v1374_v6 = vadd.f32 %v1358_v27, %v1290_v29  ;;  %v7026_v36 = vadd.s32 88, %v9778_v23  ;;  %v1735_v33 = vmul.f32 %v6916_v31, %v1591_v45 }
 0x1c2   :  { %v1408_v28 = vmul.f32 %v9722_v42, %v1390_v43  ;;  %v1442_v35 = vmul.f32 %v9723_v34, %v1390_v43  ;;  %v1474_v24 = vmul.f32 %v6954_v39, %v1390_v43  ;;  %vm562_vm7 = vcmp.lt.s32.totalorder %v6909_v25, %v5829_v56  ;;  %4816 = vmatprep.mubr.f32.mxu1 %v2169_v15 }
 0x1c3   :  { %v991_v57 = vmul.f32 %v5858_v1, %v973_v54  ;;  %v1025_v16 = vmul.f32 %v5861_v2, %v973_v54  ;;  %v1057_v50 = vmul.f32 %v6995_v58, %v973_v54  ;;  %v9799_v32 = vmax.f32 %v9798_v51, 1e-12  ;;  %vm613_vm11 = vmand %vm562_vm7, %vm6030_vm1 }
 0x1c4   :  { %v1767_v53 = vadd.f32 %v1751_v40, %v1735_v33  ;;  %v1424_v37 = vadd.f32 %v1408_v28, %v1340_v19  ;;  %v1458_v38 = vadd.f32 %v1442_v35, %v1374_v6  ;;  %v1492_v39 = vmul.f32 %v9724_v18, %v1474_v24 }
 0x1c5   :  { %v7040_v31 = vmul.f32 %v9800_v46, %v9799_v32  ;;  %v1526_v8 = vmul.f32 %v9725_v9, %v1474_v24  ;;  %v1007_v29 = vadd.f32 %v991_v57, %v907_v63  ;;  %v1041_v61 = vadd.f32 %v1025_v16, %v941_v11 }
 0x1c6   :  { %v1075_v27 = vmul.f32 %v5864_v3, %v1057_v50  ;;  %v7046_v45 = vmul.f32 %v1767_v53, %v6904_v48  ;;  %v1508_v43 = vadd.f32 %v1492_v39, %v1424_v37  ;;  %v1109_v54 = vmul.f32 %v5867_v4, %v1057_v50 }
 0x1c7   :  { %v1141_v15 = vmul.f32 %v6995_v58, %v1057_v50  ;;  %v1542_v51 = vadd.f32 %v1526_v8, %v1458_v38  ;;  %vm677_vm8 = vcmp.ne.s32.totalorder %v6909_v25, %v5824_v55  ;;  %v7052_v19 = vmul.f32 %v1641_v52, %v1641_v52 }
 0x1c8   :  { %9801 = vst [vmem:[#allocation51_spill] sm:$0xff] %v7046_v45  ;;  %v1091_v40 = vadd.f32 %v1075_v27, %v1007_v29  ;;  %v1558_v63 = vmul.f32 %v1508_v43, %v6861_v21  ;;  %v1702_v6 = vmul.f32 %v7017_v14, %v1508_v43  ;;  %v1750_v11 = vmul.f32 %v6919_v49, %v1508_v43  ;;  %vm693_vm14 = vmand %vm677_vm8, %vm613_vm11 }
 0x1c9   :  { %vm709_vm9 = vcmp.lt.f32.partialorder %v6895_v47, 3.0  ;;  %v1125_v48 = vadd.f32 %v1109_v54, %v1041_v61  ;;  %v1159_v33 = vmul.f32 %v5870_v5, %v1141_v15  ;;  %v1193_v28 = vmul.f32 %v5876_v7, %v1141_v15 }
 0x1ca   :  { %v1225_v35 = vmul.f32 %v6995_v58, %v1141_v15  ;;  %v7062_v24 = vmin.f32 %v7040_v31, 3.0  ;;  %v1574_v52 = vsub.f32 %v1542_v51, %v1558_v63  ;;  %v1718_v57 = vmul.f32 %v1702_v6, %v7000_v41  ;;  %vm7108_vm0 = vmand %vm693_vm14, %vm709_vm9 }
 0x1cb   :  { %vm561_vm10 = vcmp.lt.s32.totalorder %v7026_v36, %v5829_v56  ;;  %v525_v21 = vadd.s32 112, %v9778_v23  ;;  %v1175_v49 = vadd.f32 %v1159_v33, %v1091_v40  ;;  %v1209_v16 = vadd.f32 %v1193_v28, %v1125_v48 }
 0x1cc   :  { %v1243_v50 = vmul.f32 %v9716_v20, %v1225_v35  ;;  %v1277_v32 = vmul.f32 %v9717_v22, %v1225_v35  ;;  %v1590_v53 = vmul.f32 4.0, %v1574_v52  ;;  %1823 = vadd.xlane.f32.xlu0 %v1718_v57  ;;  %v1309_v37 = vmul.f32 %v6995_v58, %v1225_v35  ;;  %vm612_vm15 = vmand %vm561_vm10, %vm6030_vm1 }
 0x1cd   :  { %v774_v38 = vmul.f32 2.0, %v7062_v24  ;;  %v856_v39 = vmul.f32 %v5843_v60, %v7062_v24  ;;  %vm676_vm12 = vcmp.ne.s32.totalorder %v7026_v36, %v5824_v55  ;;  %v1608_v61 = vmul.f32 0.33333334, %v7062_v24 }
 0x1ce   :  { %v1259_v8 = vadd.f32 %v1243_v50, %v1175_v49  ;;  %v1293_v29 = vadd.f32 %v1277_v32, %v1209_v16  ;;  %v1734_v27 = vmul.f32 %v7017_v14, %v1590_v53  ;;  %v1327_v43 = vmul.f32 %v9719_v30, %v1309_v37  ;;  %v9803_v16 = vld [vmem:[#allocation39_spill] sm:$0xff]  ;;  %vm7117_vm2 = vmand %vm676_vm12, %vm612_vm15 }
 0x1cf   :  { %v1361_v54 = vmul.f32 %v9720_v44, %v1309_v37  ;;  %v1393_v15 = vmul.f32 %v6995_v58, %v1309_v37  ;;  %v791_v51 = vsub.f32 %v5840_v59, %v774_v38  ;;  %v883_v40 = vmul.f32 1.442695, %v856_v39  ;;  %v9805_v32 = vld [vmem:[#allocation55_spill] sm:$0xff] }
 0x1d0   :  { %v1624_v63 = vmul.f32 %v1608_v61, %v1608_v61  ;;  %vm564_vm13 = vcmp.lt.s32.totalorder %v525_v21, %v5829_v56  ;;  %v1766_v6 = vadd.f32 %v1750_v11, %v1734_v27  ;;  %v1343_v48 = vadd.f32 %v1327_v43, %v1259_v8  ;;  %v9810_v43 = vld [vmem:[#allocation46_spill] sm:$0xff] }
 0x1d1   :  { %v1377_v33 = vadd.f32 %v1361_v54, %v1293_v29  ;;  %v1411_v14 = vmul.f32 %v9722_v42, %v1393_v15  ;;  %v1445_v28 = vmul.f32 %v9723_v34, %v1393_v15  ;;  %v1477_v35 = vmul.f32 %v6995_v58, %v1393_v15  ;;  %vm615_vm5 = vmand %vm564_vm13, %vm6030_vm1  ;;  %v9812_v15 = vld [vmem:[#allocation24_spill] sm:$0xff] }
 0x1d2   :  { %v807_v11 = vmul.f32 %v791_v51, %v7062_v24  ;;  %v1672_v52 = vmul.f32 -1.3333334, %v1608_v61  ;;  %v7101_v25 = vmul.f32 %v1766_v6, %v7000_v41  ;;  %v1640_v49 = vsub.f32 1.0, %v1624_v63  ;;  %v9813_v63 = vld [vmem:[#allocation26_spill] sm:$0xff] }
 0x1d3   :  { %v1427_v57 = vadd.f32 %v1411_v14, %v1343_v48  ;;  %v9804_v50 = vmax.f32 %v9803_v16, 1e-12  ;;  %v1461_v37 = vadd.f32 %v1445_v28, %v1377_v33  ;;  %v1495_v38 = vmul.f32 %v9724_v18, %v1477_v35 }
 0x1d4   :  { %9802 = vst [vmem:[#allocation17_spill] sm:$0xff] %v7101_v25  ;;  %v1529_v39 = vmul.f32 %v9725_v9, %v1477_v35  ;;  %v834_v8 = vmul.f32 1.442695, %v807_v11  ;;  %vm708_vm3 = vcmp.lt.f32.partialorder %v7040_v31, 3.0  ;;  %5498 = vpow2.f32 %v883_v40  ;;  %v88_v25 = vld [vmem:[%s9508_s9 + $0x60] sm:$0xff] }
 0x1d5   :  { %v663_v53 = vmul.f32 %v9805_v32, %v9804_v50  ;;  %v7122_v47 = vmul.f32 %v1672_v52, %v1640_v49  ;;  %vm679_vm4 = vcmp.ne.s32.totalorder %v525_v21, %v5824_v55  ;;  %v1511_v29 = vadd.f32 %v1495_v38, %v1427_v57  ;;  %vm7145_vm6 = vmand %vm7117_vm2, %vm708_vm3  ;;  %v86_v32 = vld [vmem:[%s9508_s9 + $0x50] sm:$0xff] }
 0x1d6   :  { %v1545_v61 = vadd.f32 %v1529_v39, %v1461_v37  ;;  %5500 = vpow2.f32 %v834_v8  ;;  %v524_v27 = vadd.s32 104, %v9778_v23  ;;  %v9811_v54 = vmax.f32 %v9810_v43, 1e-12  ;;  %vm7149_vm7 = vmand %vm679_vm4, %vm615_vm5 }
 0x1d7   :  { %v7129_v36 = vmin.f32 %v663_v53, 3.0  ;;  %v741_v40 = vsel %vm7108_vm0, 1.0, %v9780_v26  ;;  %v1561_v6 = vmul.f32 %v1511_v29, %v9813_v63  ;;  %v1705_v48 = vmul.f32 %v7052_v19, %v1511_v29 }
 0x1d8   :  { %v662_v51 = vmul.f32 %v9812_v15, %v9811_v54  ;;  %v1753_v33 = vmul.f32 %v7003_v62, %v1511_v29  ;;  %vm563_vm8 = vcmp.lt.s32.totalorder %v524_v27, %v5829_v56  ;;  %vm711_vm9 = vcmp.lt.f32.partialorder %v663_v53, 3.0  ;;  %v85_v15 = vld [vmem:[%s9508_s9 + $0x48] sm:$0xff] }
 0x1d9   :  { %v777_v28 = vmul.f32 2.0, %v7129_v36  ;;  %v859_v35 = vmul.f32 %v5843_v60, %v7129_v36  ;;  %v1611_v11 = vmul.f32 0.33333334, %v7129_v36  ;;  %v1577_v62 = vsub.f32 %v1545_v61, %v1561_v6  ;;  %vm614_vm10 = vmand %vm563_vm8, %vm6030_vm1 }
 0x1da   :  { %v1721_v31 = vmul.f32 %v1705_v48, %v741_v40  ;;  %vm678_vm11 = vcmp.ne.s32.totalorder %v524_v27, %v5824_v55  ;;  %vm710_vm13 = vcmp.lt.f32.partialorder %v662_v51, 3.0  ;;  %v7165_v58 = vsel %vm7145_vm6, 1.0, %v9780_v26  ;;  %vm7173_vm14 = vmand %vm7149_vm7, %vm711_vm9 }
 0x1db   :  { %v794_v52 = vsub.f32 %v5840_v59, %v777_v28  ;;  %v889_v57 = vmul.f32 1.442695, %v859_v35  ;;  %v1627_v16 = vmul.f32 %v1611_v11, %v1611_v11  ;;  %vm694_vm12 = vmand %vm678_vm11, %vm614_vm10  ;;  %v1593_v50 = vmul.f32 4.0, %v1577_v62 }
 0x1dc   :  { %1829 = vadd.xlane.f32.xlu1 %v1721_v31  ;;  %v7167_v37 = vmul.f32 %v1640_v49, %v1640_v49  ;;  %v7169_v53 = vmin.f32 %v662_v51, 3.0  ;;  %v1675_v41 = vmul.f32 -1.3333334, %v1611_v11  ;;  %v7179_v29 = vadd.s32 120, %v9778_v23  ;;  %vm7182_vm15 = vmand %vm694_vm12, %vm710_vm13  ;;  %v9822_v23 = vld [vmem:[#allocation49_spill] sm:$0xff] }
 0x1dd   :  { %v810_v39 = vmul.f32 %v794_v52, %v7129_v36  ;;  %v1643_v8 = vsub.f32 1.0, %v1627_v16  ;;  %v1737_v61 = vmul.f32 %v7052_v19, %v1593_v50  ;;  %5502 = vpow2.f32 %v889_v57  ;;  %v9824_v19 = vld [vmem:[#allocation42_spill] sm:$0xff] }
 0x1de   :  { %v776_v27 = vmul.f32 2.0, %v7169_v53  ;;  %v858_v43 = vmul.f32 %v5843_v60, %v7169_v53  ;;  %v1610_v54 = vmul.f32 0.33333334, %v7169_v53  ;;  %v7190_v51 = vpop.eup %5498  ;;  %v9823_v48 = vmax.f32 %v9822_v23, 1e-12 }
 0x1df   :  { %v840_v63 = vmul.f32 1.442695, %v810_v39  ;;  %v7192_v6 = vmul.f32 %v1675_v41, %v1643_v8  ;;  %v1769_v28 = vadd.f32 %v1753_v33, %v1737_v61  ;;  %v7204_v52 = vsel %vm7173_vm14, 1.0, %v9780_v26 }
 0x1e0   :  { %v7197_v21 = vmul.f32 %v9824_v19, %v9823_v48  ;;  %v5501_v14 = vpop.eup %5500  ;;  %v793_v35 = vsub.f32 %v5840_v59, %v776_v27  ;;  %v887_v11 = vmul.f32 1.442695, %v858_v43  ;;  %v1626_v62 = vmul.f32 %v1610_v54, %v1610_v54  ;;  %v83_v19 = vld [vmem:[%s9508_s9 + $0x38] sm:$0xff] }
 0x1e1   :  { %v972_v31 = vmul.f32 %v5501_v14, %v7190_v51  ;;  %5504 = vpow2.f32 %v840_v63  ;;  %v7209_v57 = vsel %vm7182_vm15, 1.0, %v9780_v26  ;;  %v7211_v16 = vmul.f32 %v1769_v28, %v741_v40 }
 0x1e2   :  { %9825 = vst [vmem:[#allocation14_spill] sm:$0xff] %v7197_v21  ;;  %v906_v33 = vmul.f32 %v5501_v14, %v9752_v10  ;;  %v809_v50 = vmul.f32 %v793_v35, %v7169_v53  ;;  %v7215_v39 = vsub.f32 1.0, %v1626_v62  ;;  %v940_v41 = vmul.f32 %v5501_v14, %v5855_v0  ;;  %v76_v14 = vld [vmem:[%s9508_s9] sm:$0xff]  ;;  %v77_v35 = vld [vmem:[%s9508_s9 + $0x8] sm:$0xff]  ;;  %v79_v62 = vld [vmem:[%s9508_s9 + $0x18] sm:$0xff] }
 0x1e3   :  { %9826 = vst [vmem:[#allocation28_spill] sm:$0xff] %v7211_v16  ;;  %v990_v38 = vmul.f32 %v5858_v1, %v972_v31  ;;  %v1024_v61 = vmul.f32 %v5861_v2, %v972_v31  ;;  %v1056_v27 = vmul.f32 %v7190_v51, %v972_v31  ;;  %5506 = vpow2.f32 %v887_v11  ;;  %v80_v11 = vld [vmem:[%s9508_s9 + $0x20] sm:$0xff] }
 0x1e4   :  { %v838_v43 = vmul.f32 1.442695, %v809_v50  ;;  %v1674_v49 = vmul.f32 -1.3333334, %v1610_v54  ;;  %v7222_v40 = vmin.f32 %v7197_v21, 3.0  ;;  %v78_v54 = vld [vmem:[%s9508_s9 + $0x10] sm:$0xff]  ;;  %v7273_v16 = vmul.f32 %v1643_v8, %v1643_v8 }
 0x1e5   :  { %v1006_v63 = vadd.f32 %v990_v38, %v906_v33  ;;  %v1040_v23 = vadd.f32 %v1024_v61, %v940_v41  ;;  %v1074_v48 = vmul.f32 %v5864_v3, %v1056_v27  ;;  %v1108_v28 = vmul.f32 %v5867_v4, %v1056_v27  ;;  %v82_v41 = vld [vmem:[%s9508_s9 + $0x30] sm:$0xff]  ;;  %v81_v38 = vld [vmem:[%s9508_s9 + $0x28] sm:$0xff]  ;;  %v84_v61 = vld [vmem:[%s9508_s9 + $0x40] sm:$0xff] }
 0x1e6   :  { %v1140_v31 = vmul.f32 %v7190_v51, %v1056_v27  ;;  %5508 = vpow2.f32 %v838_v43  ;;  %v7243_v33 = vmul.f32 %v1674_v49, %v7215_v39  ;;  %v778_v50 = vmul.f32 2.0, %v7222_v40 }
 0x1e7   :  { %v1090_v17 = vadd.f32 %v1074_v48, %v1006_v63  ;;  %v1124_v27 = vadd.f32 %v1108_v28, %v1040_v23  ;;  %v860_v43 = vmul.f32 %v5843_v60, %v7222_v40  ;;  %v1612_v49 = vmul.f32 0.33333334, %v7222_v40  ;;  %v7271_v28 = vpop.eup %5502 }
 0x1e8   :  { %v1158_v63 = vmul.f32 %v5870_v5, %v1140_v31  ;;  %v1192_v23 = vmul.f32 %v5876_v7, %v1140_v31  ;;  %v1224_v60 = vmul.f32 %v7190_v51, %v1140_v31  ;;  %v795_v48 = vsub.f32 %v5840_v59, %v778_v50 }
 0x1e9   :  { %v891_v46 = vmul.f32 1.442695, %v860_v43  ;;  %v1628_v45 = vmul.f32 %v1612_v49, %v1612_v49  ;;  %vm92_vm0 = vcmask 7168   ;;  %vm565_vm2 = vcmp.lt.s32.totalorder %v7179_v29, %v5829_v56 }
 0x1ea   :  { %v1174_v12 = vadd.f32 %v1158_v63, %v1090_v17  ;;  %v1208_v26 = vadd.f32 %v1192_v23, %v1124_v27  ;;  %v1242_v21 = vmul.f32 %v9716_v20, %v1224_v60  ;;  %v1276_v55 = vmul.f32 %v9717_v22, %v1224_v60  ;;  %93 = vst.msk [vmem:[#allocation2] sm:$0xff] %vm92_vm0, %v76_v14  ;;  %vm7449_vm3 = vmand %vm565_vm2, %vm6030_vm1 }
 0x1eb   :  { %94 = vst.msk [vmem:[#allocation2 + $0x8] sm:$0xff] %vm92_vm0, %v77_v35  ;;  %95 = vst.msk [vmem:[#allocation2 + $0x10] sm:$0xff] %vm92_vm0, %v78_v54  ;;  %v5505_v59 = vpop.eup %5504  ;;  %v1308_v17 = vmul.f32 %v7190_v51, %v1224_v60  ;;  %v811_v8 = vmul.f32 %v795_v48, %v7222_v40  ;;  %v7294_v14 = vsub.f32 1.0, %v1628_v45  ;;  %v1676_v35 = vmul.f32 -1.3333334, %v1612_v49  ;;  %v7299_v54 = vld [vmem:[%s9505_s6] sm:$0xff] }
 0x1ec   :  { %97 = vst.msk [vmem:[#allocation2 + $0x20] sm:$0xff] %vm92_vm0, %v80_v11  ;;  %96 = vst.msk [vmem:[#allocation2 + $0x18] sm:$0xff] %vm92_vm0, %v79_v62  ;;  %v1292_v11 = vadd.f32 %v1276_v55, %v1208_v26  ;;  %5510 = vpow2.f32 %v891_v46  ;;  %v975_v45 = vmul.f32 %v5505_v59, %v7271_v28  ;;  %v943_v50 = vmul.f32 %v5505_v59, %v5855_v0 }
 0x1ed   :  { %99 = vst.msk [vmem:[#allocation2 + $0x30] sm:$0xff] %vm92_vm0, %v82_v41  ;;  %98 = vst.msk [vmem:[#allocation2 + $0x28] sm:$0xff] %vm92_vm0, %v81_v38  ;;  %v1392_v62 = vmul.f32 %v7190_v51, %v1308_v17  ;;  %v7306_v31 = vpop.eup %5506  ;;  %v842_v41 = vmul.f32 1.442695, %v811_v8  ;;  %v7310_v38 = vmul.f32 %v1676_v35, %v7294_v14  ;;  %vm109_vm7 = vcmask 23552  }
 0x1ee   :  { %101 = vst.msk [vmem:[#allocation2 + $0x40] sm:$0xff] %vm92_vm0, %v84_v61  ;;  %100 = vst.msk [vmem:[#allocation2 + $0x38] sm:$0xff] %vm92_vm0, %v83_v19  ;;  %v1258_v19 = vadd.f32 %v1242_v21, %v1174_v12  ;;  %v993_v43 = vmul.f32 %v5858_v1, %v975_v45  ;;  %v1027_v49 = vmul.f32 %v5861_v2, %v975_v45  ;;  %vm4366_vm8 = vcmask 31744  }
 0x1ef   :  { %103 = vst.msk [vmem:[#allocation2 + $0x50] sm:$0xff] %vm92_vm0, %v86_v32  ;;  %102 = vst.msk [vmem:[#allocation2 + $0x48] sm:$0xff] %vm92_vm0, %v85_v15  ;;  %v909_v32 = vmul.f32 %v5505_v59, %v9752_v10  ;;  %v1360_v15 = vmul.f32 %v9720_v44, %v1308_v17  ;;  %v1410_v46 = vmul.f32 %v9722_v42, %v1392_v62  ;;  %5512 = vpow2.f32 %v842_v41 }
 0x1f0   :  { %105 = vst.msk [vmem:[#allocation2 + $0x60] sm:$0xff] %vm92_vm0, %v88_v25  ;;  %v1326_v25 = vmul.f32 %v9719_v30, %v1308_v17  ;;  %9827 = vst [vmem:[#allocation29_spill] sm:$0xff] %v7310_v38  ;;  %v1444_v21 = vmul.f32 %v9723_v34, %v1392_v62  ;;  %v5509_v61 = vpop.eup %5508  ;;  %v1476_v27 = vmul.f32 %v7190_v51, %v1392_v62  ;;  %v1806_v17 = vpop.xlane.xlu0 %1805  ;;  %vm4383_vm9 = vcmask 39936  }
 0x1f1   :  { %v1376_v12 = vadd.f32 %v1360_v15, %v1292_v11  ;;  %v1059_v63 = vmul.f32 %v7271_v28, %v975_v45  ;;  %v908_v48 = vmul.f32 %v5509_v61, %v9752_v10  ;;  %v942_v59 = vmul.f32 %v5509_v61, %v5855_v0  ;;  %v1789_v8 = vld [vmem:[#allocation2] sm:$0xff] }
 0x1f2   :  { %v1342_v26 = vadd.f32 %v1326_v25, %v1258_v19  ;;  %v1494_v35 = vmul.f32 %v9724_v18, %v1476_v27  ;;  %v1528_v19 = vmul.f32 %v9725_v9, %v1476_v27  ;;  %v1009_v11 = vadd.f32 %v993_v43, %v909_v32 }
 0x1f3   :  { %v1460_v60 = vadd.f32 %v1444_v21, %v1376_v12  ;;  %v1043_v51 = vadd.f32 %v1027_v49, %v943_v50  ;;  %v1077_v25 = vmul.f32 %v5864_v3, %v1059_v63  ;;  %v1111_v15 = vmul.f32 %v5867_v4, %v1059_v63 }
 0x1f4   :  { %v1426_v23 = vadd.f32 %v1410_v46, %v1342_v26  ;;  %v1143_v62 = vmul.f32 %v7271_v28, %v1059_v63  ;;  %v974_v45 = vmul.f32 %v5509_v61, %v7306_v31  ;;  %v1837_v46 = vadd.f32 %v1806_v17, %v1789_v8  ;;  %v1808_v17 = vpop.xlane.xlu1 %1807  ;;  %v1790_v8 = vld [vmem:[#allocation2 + $0x8] sm:$0xff] }
 0x1f5   :  { %v1544_v12 = vadd.f32 %v1528_v19, %v1460_v60  ;;  %v1093_v21 = vadd.f32 %v1077_v25, %v1009_v11  ;;  %v1127_v55 = vadd.f32 %v1111_v15, %v1043_v51  ;;  %v1791_v15 = vld [vmem:[#allocation2 + $0x10] sm:$0xff]  ;;  %vm4400_vm10 = vcmask 48128  }
 0x1f6   :  { %v1510_v26 = vadd.f32 %v1494_v35, %v1426_v23  ;;  %v1161_v38 = vmul.f32 %v5870_v5, %v1143_v62  ;;  %v1195_v27 = vmul.f32 %v5876_v7, %v1143_v62  ;;  %v7329_v32 = vpop.eup %5510  ;;  %v1227_v61 = vmul.f32 %v7271_v28, %v1143_v62  ;;  %1854 = vst.msk [vmem:[#allocation2] sm:$0xff] %vm92_vm0, %v1837_v46 }
 0x1f7   :  { %v992_v23 = vmul.f32 %v5858_v1, %v974_v45  ;;  %v1026_v60 = vmul.f32 %v5861_v2, %v974_v45  ;;  %vm4417_vm11 = vcmask 56320   ;;  %vm4434_vm12 = vcmask 64512  }
 0x1f8   :  { %v1560_v50 = vmul.f32 %v1510_v26, %v7062_v24  ;;  %v1704_v43 = vmul.f32 %v7167_v37, %v1510_v26  ;;  %v1752_v49 = vmul.f32 %v7122_v47, %v1510_v26  ;;  %v1177_v41 = vadd.f32 %v1161_v38, %v1093_v21 }
 0x1f9   :  { %v1211_v63 = vadd.f32 %v1195_v27, %v1127_v55  ;;  %v1245_v24 = vmul.f32 %v9716_v20, %v1227_v61  ;;  %v1279_v11 = vmul.f32 %v9717_v22, %v1227_v61  ;;  %v1311_v47 = vmul.f32 %v7271_v28, %v1227_v61  ;;  %v1810_v55 = vpop.xlane.xlu0 %1809 }
 0x1fa   :  { %v1576_v35 = vsub.f32 %v1544_v12, %v1560_v50  ;;  %v1720_v19 = vmul.f32 %v1704_v43, %v7165_v58  ;;  %v1008_v51 = vadd.f32 %v992_v23, %v908_v48  ;;  %v1042_v25 = vadd.f32 %v1026_v60, %v942_v59 }
 0x1fb   :  { %v1058_v38 = vmul.f32 %v7306_v31, %v974_v45  ;;  %v1261_v26 = vadd.f32 %v1245_v24, %v1177_v41  ;;  %v1295_v46 = vadd.f32 %v1279_v11, %v1211_v63  ;;  %v1838_v21 = vadd.f32 %v1808_v17, %v1790_v8  ;;  %v5513_v17 = vpop.eup %5512 }
 0x1fc   :  { %v1592_v62 = vmul.f32 4.0, %v1576_v35  ;;  %1827 = vadd.xlane.f32.xlu0 %v1720_v19  ;;  %v1329_v12 = vmul.f32 %v9719_v30, %v1311_v47  ;;  %v1363_v27 = vmul.f32 %v9720_v44, %v1311_v47  ;;  %v1395_v50 = vmul.f32 %v7271_v28, %v1311_v47 }
 0x1fd   :  { %v1076_v43 = vmul.f32 %v5864_v3, %v1058_v38  ;;  %v1110_v59 = vmul.f32 %v5867_v4, %v1058_v38  ;;  %v1142_v45 = vmul.f32 %v7306_v31, %v1058_v38  ;;  %1855 = vst.msk [vmem:[#allocation2 + $0x8] sm:$0xff] %vm92_vm0, %v1838_v21  ;;  %v1839_v61 = vadd.f32 %v1810_v55, %v1791_v15 }
 0x1fe   :  { %v1736_v48 = vmul.f32 %v7167_v37, %v1592_v62  ;;  %v1345_v41 = vadd.f32 %v1329_v12, %v1261_v26  ;;  %v1379_v63 = vadd.f32 %v1363_v27, %v1295_v46  ;;  %v1413_v23 = vmul.f32 %v9722_v42, %v1395_v50  ;;  %v1792_v26 = vld [vmem:[#allocation2 + $0x18] sm:$0xff] }
 0x1ff   :  { %v1447_v60 = vmul.f32 %v9723_v34, %v1395_v50  ;;  %v1479_v35 = vmul.f32 %v7271_v28, %v1395_v50  ;;  %v1092_v19 = vadd.f32 %v1076_v43, %v1008_v51  ;;  %v1126_v24 = vadd.f32 %v1110_v59, %v1042_v25  ;;  %1856 = vst.msk [vmem:[#allocation2 + $0x10] sm:$0xff] %vm92_vm0, %v1839_v61  ;;  %v1814_v28 = vpop.xlane.xlu1 %1813  ;;  %v1793_v51 = vld [vmem:[#allocation2 + $0x20] sm:$0xff]  ;;  %v1812_v25 = vpop.xlane.xlu0 %1811 }
 0x200   :  { %v1768_v8 = vadd.f32 %v1752_v49, %v1736_v48  ;;  %v1429_v37 = vadd.f32 %v1413_v23, %v1345_v41  ;;  %v1160_v47 = vmul.f32 %v5870_v5, %v1142_v45  ;;  %v1194_v38 = vmul.f32 %v5876_v7, %v1142_v45 }
 0x201   :  { %v1463_v11 = vadd.f32 %v1447_v60, %v1379_v63  ;;  %v1497_v15 = vmul.f32 %v9724_v18, %v1479_v35  ;;  %v1531_v62 = vmul.f32 %v9725_v9, %v1479_v35  ;;  %v1226_v49 = vmul.f32 %v7306_v31, %v1142_v45 }
 0x202   :  { %v7358_v55 = vmul.f32 %v1768_v8, %v7165_v58  ;;  %v1176_v46 = vadd.f32 %v1160_v47, %v1092_v19  ;;  %v1210_v21 = vadd.f32 %v1194_v38, %v1126_v24  ;;  %v910_v12 = vmul.f32 %v5513_v17, %v9752_v10 }
 0x203   :  { %v944_v27 = vmul.f32 %v5513_v17, %v5855_v0  ;;  %v1513_v50 = vadd.f32 %v1497_v15, %v1429_v37  ;;  %v1547_v43 = vadd.f32 %v1531_v62, %v1463_v11  ;;  %v1244_v58 = vmul.f32 %v9716_v20, %v1226_v49  ;;  %v87_v62 = vld [vmem:[%s9508_s9 + $0x58] sm:$0xff] }
 0x204   :  { %v1278_v48 = vmul.f32 %v9717_v22, %v1226_v49  ;;  %v1310_v59 = vmul.f32 %v7306_v31, %v1226_v49  ;;  %v976_v45 = vmul.f32 %v5513_v17, %v7329_v32  ;;  %v1841_v61 = vadd.f32 %v1814_v28, %v1793_v51  ;;  %104 = vst.msk [vmem:[#allocation2 + $0x58] sm:$0xff] %vm92_vm0, %v87_v62 }
 0x205   :  { %v1840_v41 = vadd.f32 %v1812_v25, %v1792_v26  ;;  %v1563_v63 = vmul.f32 %v1513_v50, %v7129_v36  ;;  %v1707_v23 = vmul.f32 %v7273_v16, %v1513_v50  ;;  %v1755_v10 = vmul.f32 %v7192_v6, %v1513_v50  ;;  %v7383_v6 = vld [vmem:[%s9505_s6 + $0x8] sm:$0xff] }
 0x206   :  { %v1260_v60 = vadd.f32 %v1244_v58, %v1176_v46  ;;  %v1294_v0 = vadd.f32 %v1278_v48, %v1210_v21  ;;  %v1328_v8 = vmul.f32 %v9719_v30, %v1310_v59  ;;  %v1362_v35 = vmul.f32 %v9720_v44, %v1310_v59  ;;  %1858 = vst.msk [vmem:[#allocation2 + $0x20] sm:$0xff] %vm92_vm0, %v1841_v61 }
 0x207   :  { %v1394_v19 = vmul.f32 %v7306_v31, %v1310_v59  ;;  %1857 = vst.msk [vmem:[#allocation2 + $0x18] sm:$0xff] %vm92_vm0, %v1840_v41  ;;  %v1579_v17 = vsub.f32 %v1547_v43, %v1563_v63  ;;  %v1723_v24 = vmul.f32 %v1707_v23, %v7204_v52  ;;  %v994_v36 = vmul.f32 %v5858_v1, %v976_v45  ;;  %v1795_v63 = vld [vmem:[#allocation2 + $0x30] sm:$0xff] }
 0x208   :  { %v1028_v37 = vmul.f32 %v5861_v2, %v976_v45  ;;  %v1344_v11 = vadd.f32 %v1328_v8, %v1260_v60  ;;  %v1378_v47 = vadd.f32 %v1362_v35, %v1294_v0  ;;  %v1060_v26 = vmul.f32 %v7329_v32, %v976_v45  ;;  %v1818_v41 = vpop.xlane.xlu1 %1817  ;;  %v7420_v8 = vld [vmem:[%s9505_s6 + $0x18] sm:$0xff] }
 0x209   :  { %v1412_v38 = vmul.f32 %v9722_v42, %v1394_v19  ;;  %v1446_v15 = vmul.f32 %v9723_v34, %v1394_v19  ;;  %v1595_v49 = vmul.f32 4.0, %v1579_v17  ;;  %1833 = vadd.xlane.f32.xlu1 %v1723_v24  ;;  %v1478_v1 = vmul.f32 %v7306_v31, %v1394_v19  ;;  %v7402_v31 = vld [vmem:[%s9505_s6 + $0x10] sm:$0xff] }
 0x20a   :  { %v1010_v2 = vadd.f32 %v994_v36, %v910_v12  ;;  %v1044_v28 = vadd.f32 %v1028_v37, %v944_v27  ;;  %v2088_v46 = vand.u32 4294901760, %v7383_v6  ;;  %v1658_v58 = vmul.f32 %v7215_v39, %v7215_v39 }
 0x20b   :  { %v1428_v51 = vadd.f32 %v1412_v38, %v1344_v11  ;;  %v1462_v25 = vadd.f32 %v1446_v15, %v1378_v47  ;;  %v1739_v21 = vmul.f32 %v7273_v16, %v1595_v49  ;;  %v1496_v50 = vmul.f32 %v9724_v18, %v1478_v1 }
 0x20c   :  { %v1530_v43 = vmul.f32 %v9725_v9, %v1478_v1  ;;  %v1078_v12 = vmul.f32 %v5864_v3, %v1060_v26  ;;  %v1112_v27 = vmul.f32 %v5867_v4, %v1060_v26  ;;  %v1144_v48 = vmul.f32 %v7329_v32, %v1060_v26 }
 0x20d   :  { %v9828_v16 = vand.u32 4294901760, %v7299_v54  ;;  %v1771_v45 = vadd.f32 %v1755_v10, %v1739_v21  ;;  %v1512_v61 = vadd.f32 %v1496_v50, %v1428_v51  ;;  %v2091_v23 = vand.u32 4294901760, %v7402_v31  ;;  %v7469_v50 = vld [vmem:[%s9506_s7 + $0x10] sm:$0xff] }
 0x20e   :  { %v1546_v39 = vadd.f32 %v1530_v43, %v1462_v25  ;;  %v1094_v60 = vadd.f32 %v1078_v12, %v1010_v2  ;;  %v1128_v0 = vadd.f32 %v1112_v27, %v1044_v28  ;;  %v1162_v3 = vmul.f32 %v5870_v5, %v1144_v48  ;;  %v9831_v2 = vld [vmem:[#allocation13_spill] sm:$0xff]  ;;  %9832 = vst [vmem:[#allocation43_spill] sm:$0xff] %v7469_v50 }
 0x20f   :  { %v7411_v59 = vpack.c.bf16 %v2088_v46, %v9828_v16  ;;  %v1196_v4 = vmul.f32 %v5876_v7, %v1144_v48  ;;  %v7423_v10 = vmul.f32 %v1771_v45, %v7204_v52  ;;  %v1562_v35 = vmul.f32 %v1512_v61, %v7169_v53  ;;  %v1794_v43 = vld [vmem:[#allocation2 + $0x28] sm:$0xff] }
 0x210   :  { %v1706_v19 = vmul.f32 %v1658_v58, %v1512_v61  ;;  %v1754_v17 = vmul.f32 %v7243_v33, %v1512_v61  ;;  %v1178_v5 = vadd.f32 %v1162_v3, %v1094_v60  ;;  %v1228_v7 = vmul.f32 %v7329_v32, %v1144_v48  ;;  %v7489_v61 = vld [vmem:[%s9506_s7 + $0x18] sm:$0xff] }
 0x211   :  { %5217 = vmatprep.subr.bf16.mxu0 %v7411_v59  ;;  %v1212_v24 = vadd.f32 %v1196_v4, %v1128_v0  ;;  %v1843_v36 = vadd.f32 %v1818_v41, %v1795_v63  ;;  %5121 = vmatprep.subr.bf16.mxu1 %v7411_v59  ;;  %v1578_v37 = vsub.f32 %v1546_v39, %v1562_v35  ;;  %v2094_v52 = vand.u32 4294901760, %v7420_v8  ;;  %v89_v4 = vld [vmem:[%s9508_s9 + $0x68] sm:$0xff] }
 0x212   :  { %5219 = vmatpush3.bf16.msra.mxu0 %v7411_v59  ;;  %v1722_v11 = vmul.f32 %v1706_v19, %v7209_v57  ;;  %5123 = vmatpush3.bf16.msra.mxu1 %v7411_v59  ;;  %v1246_v53 = vmul.f32 %v9716_v20, %v1228_v7  ;;  %v1280_v33 = vmul.f32 %v9717_v22, %v1228_v7  ;;  %v9835_v63 = vmov 0.0   ;;  %v7509_v19 = vld [vmem:[%s9506_s7 + $0x28] sm:$0xff] }
 0x213   :  { %v1312_v47 = vmul.f32 %v7329_v32, %v1228_v7  ;;  %1860 = vst.msk [vmem:[#allocation2 + $0x30] sm:$0xff] %vm92_vm0, %v1843_v36  ;;  %v1594_v38 = vmul.f32 4.0, %v1578_v37  ;;  %v7443_v15 = vpack.c.bf16 %v2094_v52, %v2091_v23  ;;  %vm680_vm4 = vcmp.ne.s32.totalorder %v7179_v29, %v9831_v2  ;;  %106 = vst.msk [vmem:[#allocation2 + $0x68] sm:$0xff] %vm92_vm0, %v89_v4  ;;  %v1797_v37 = vld [vmem:[#allocation2 + $0x40] sm:$0xff] }
 0x214   :  { %1831 = vadd.xlane.f32.xlu0 %v1722_v11  ;;  %v1262_v62 = vadd.f32 %v1246_v53, %v1178_v5  ;;  %v1296_v49 = vadd.f32 %v1280_v33, %v1212_v24  ;;  %vm696_vm1 = vmand %vm680_vm4, %vm7449_vm3  ;;  %v1660_v29 = vmul.f32 %v7294_v14, %v7294_v14  ;;  %v7499_v14 = vld [vmem:[%s9506_s7 + $0x20] sm:$0xff]  ;;  %9837 = vst [vmem:[#allocation31_spill] sm:$0xff] %v7509_v19  ;;  %v7519_v5 = vld [vmem:[%s9505_s6 + $0x28] sm:$0xff]  ;;  %vm4451_vm13 = vcmask 72704  }
 0x215   :  { %v1330_v56 = vmul.f32 %v9719_v30, %v1312_v47  ;;  %v1364_v20 = vmul.f32 %v9720_v44, %v1312_v47  ;;  %v1738_v1 = vmul.f32 %v1658_v58, %v1594_v38  ;;  %v1396_v28 = vmul.f32 %v7329_v32, %v1312_v47  ;;  %5221 = vmatprep.subr.bf16.mxu0 %v7443_v15  ;;  %v90_v44 = vld [vmem:[%s9508_s9 + $0x70] sm:$0xff]  ;;  %v91_v38 = vld [vmem:[%s9508_s9 + $0x78] sm:$0xff] }
 0x216   :  { %5125 = vmatprep.subr.bf16.mxu1 %v7443_v15  ;;  %5223 = vmatpush3.bf16.msra.mxu0 %v7443_v15  ;;  %107 = vst.msk [vmem:[#allocation2 + $0x70] sm:$0xff] %vm92_vm0, %v90_v44  ;;  %v9833_v58 = vld [vmem:[#allocation14_spill] sm:$0xff]  ;;  %9836 = vst [vmem:[#allocation44_spill] sm:$0xff] %v7499_v14  ;;  %v2100_v7 = vand.u32 4294901760, %v7519_v5  ;;  %vm4468_vm14 = vcmask 80896   ;;  %vm4485_vm15 = vcmask 89088  }
 0x217   :  { %v1346_v51 = vadd.f32 %v1330_v56, %v1262_v62  ;;  %v1380_v30 = vadd.f32 %v1364_v20, %v1296_v49  ;;  %5127 = vmatpush3.bf16.msra.mxu1 %v7443_v15  ;;  %v1770_v13 = vadd.f32 %v1754_v17, %v1738_v1  ;;  %v1414_v25 = vmul.f32 %v9722_v42, %v1396_v28  ;;  %v1816_v42 = vpop.xlane.xlu0 %1815  ;;  %v7514_v17 = vld [vmem:[%s9505_s6 + $0x20] sm:$0xff]  ;;  %v7535_v33 = vld [vmem:[%s9506_s7 + $0x30] sm:$0xff]  ;;  %v7550_v49 = vld [vmem:[%s9506_s7 + $0x38] sm:$0xff] }
 0x218   :  { %v1448_v26 = vmul.f32 %v9723_v34, %v1396_v28  ;;  %v1480_v21 = vmul.f32 %v7329_v32, %v1396_v28  ;;  %vm712_vm5 = vcmp.lt.f32.partialorder %v9833_v58, 3.0  ;;  %v1842_v16 = vadd.f32 %v1816_v42, %v1794_v43  ;;  %9838 = vst [vmem:[#allocation12_spill] sm:$0xff] %v7535_v33  ;;  %108 = vst.msk [vmem:[#allocation2 + $0x78] sm:$0xff] %vm92_vm0, %v91_v38  ;;  %v7555_v56 = vld [vmem:[%s9505_s6 + $0x30] sm:$0xff]  ;;  %v7560_v20 = vld [vmem:[%s9505_s6 + $0x38] sm:$0xff] }
 0x219   :  { %v7479_v34 = vmul.f32 %v1770_v13, %v7209_v57  ;;  %v1430_v32 = vadd.f32 %v1414_v25, %v1346_v51  ;;  %vm728_vm6 = vmand %vm696_vm1, %vm712_vm5  ;;  %v2097_v24 = vand.u32 4294901760, %v7514_v17  ;;  %9839 = vst [vmem:[#allocation32_spill] sm:$0xff] %v7550_v49  ;;  %v2103_v1 = vand.u32 4294901760, %v7555_v56  ;;  %v7574_v28 = vld [vmem:[%s9506_s7 + $0x40] sm:$0xff]  ;;  %v7612_v43 = vld [vmem:[%s9505_s6 + $0x58] sm:$0xff] }
 0x21a   :  { %v1464_v12 = vadd.f32 %v1448_v26, %v1380_v30  ;;  %v1498_v27 = vmul.f32 %v9724_v18, %v1480_v21  ;;  %v1532_v48 = vmul.f32 %v9725_v9, %v1480_v21  ;;  %1882 = vperm.xlu1 %5417, %v7469_v50   ;;  %1859 = vst.msk [vmem:[#allocation2 + $0x28] sm:$0xff] %vm92_vm0, %v1842_v16  ;;  %v9834_v9 = vld [vmem:[#allocation29_spill] sm:$0xff]  ;;  %v744_v60 = vsel %vm728_vm6, 1.0, %v9835_v63  ;;  %v7579_v51 = vld [vmem:[%s9505_s6 + $0x40] sm:$0xff]  ;;  %v7607_v21 = vld [vmem:[%s9505_s6 + $0x50] sm:$0xff] }
 0x21b   :  { %v7528_v11 = vpack.c.bf16 %v2100_v7, %v2097_v24  ;;  %v2106_v22 = vand.u32 4294901760, %v7560_v20  ;;  %9841 = vst [vmem:[#allocation34_spill] sm:$0xff] %v7574_v28  ;;  %v7584_v30 = vld [vmem:[%s9505_s6 + $0x48] sm:$0xff]  ;;  %v9593_v44 = vand.u32 4294901760, %v7579_v51  ;;  %v9591_v42 = vand.u32 4294901760, %v7607_v21 }
 0x21c   :  { %v1514_v45 = vadd.f32 %v1498_v27, %v1430_v32  ;;  %v1548_v57 = vadd.f32 %v1532_v48, %v1464_v12  ;;  %v9592_v13 = vand.u32 4294901760, %v7584_v30  ;;  %v7602_v26 = vld [vmem:[%s9506_s7 + $0x48] sm:$0xff]  ;;  %v9590_v32 = vand.u32 4294901760, %v7612_v43  ;;  %v7636_v27 = vld [vmem:[%s9506_s7 + $0x58] sm:$0xff]  ;;  %v7641_v48 = vld [vmem:[%s9505_s6 + $0x60] sm:$0xff] }
 0x21d   :  { %5225 = vmatprep.subr.bf16.mxu0 %v7528_v11  ;;  %5129 = vmatprep.subr.bf16.mxu1 %v7528_v11  ;;  %v7569_v2 = vpack.c.bf16 %v2106_v22, %v2103_v1  ;;  %9843 = vst [vmem:[#allocation39_spill] sm:$0xff] %v7602_v26  ;;  %v7617_v58 = vld [vmem:[%s9506_s7 + $0x8] sm:$0xff]  ;;  %9845 = vst [vmem:[#allocation26_spill] sm:$0xff] %v7636_v27  ;;  %v7721_v38 = vsub.f32 %v7383_v6, %v2088_v46  ;;  %vm4502_vm2 = vcmask 97280   ;;  %vm4519_vm3 = vcmask 105472  }
 0x21e   :  { %v1564_v18 = vmul.f32 %v1514_v45, %v7222_v40  ;;  %v1708_v39 = vmul.f32 %v1660_v29, %v1514_v45  ;;  %v1756_v41 = vmul.f32 %v9834_v9, %v1514_v45  ;;  %1887 = vperm.xlu1 %5417, %v7489_v61   ;;  %5227 = vmatpush3.bf16.msra.mxu0 %v7528_v11  ;;  %v7646_v16 = vld [vmem:[%s9505_s6 + $0x68] sm:$0xff]  ;;  %v7651_v45 = vld [vmem:[%s9506_s7 + $0x50] sm:$0xff]  ;;  %vm4553_vm4 = vcmask 130048  }
 0x21f   :  { %5131 = vmatpush3.bf16.msra.mxu1 %v7528_v11  ;;  %9840 = vst [vmem:[#allocation23_spill] sm:$0xff] %v7569_v2  ;;  %5229 = vmatprep.subr.bf16.mxu0 %v7569_v2  ;;  %v7597_v25 = vpack.c.bf16 %v9592_v13, %v9593_v44  ;;  %v7630_v12 = vpack.c.bf16 %v9590_v32, %v9591_v42  ;;  %9846 = vst [vmem:[#allocation49_spill] sm:$0xff] %v7651_v45  ;;  %v7675_v9 = vld [vmem:[%s9505_s6 + $0x70] sm:$0xff] }
 0x220   :  { %v1580_v0 = vsub.f32 %v1548_v57, %v1564_v18  ;;  %v1724_v3 = vmul.f32 %v1708_v39, %v744_v60  ;;  %5133 = vmatprep.subr.bf16.mxu1 %v7569_v2  ;;  %v9588_v57 = vand.u32 4294901760, %v7646_v16  ;;  %v7670_v39 = vld [vmem:[%s9506_s7 + $0x68] sm:$0xff] }
 0x221   :  { %9842 = vst [vmem:[#allocation35_spill] sm:$0xff] %v7597_v25  ;;  %9844 = vst [vmem:[#allocation46_spill] sm:$0xff] %v7630_v12 }
 0x222   :  { %v1596_v35 = vmul.f32 4.0, %v1580_v0  ;;  %1835 = vadd.xlane.f32.xlu0 %v1724_v3  ;;  %1892 = vperm.xlu1 %5417, %v7499_v14   ;;  %9848 = vst [vmem:[#allocation14_spill] sm:$0xff] %v7670_v39  ;;  %v9587_v0 = vand.u32 4294901760, %v7675_v9 }
 0x223   :  { %5231 = vmatpush3.bf16.msra.mxu0 %v7569_v2  ;;  %5135 = vmatpush3.bf16.msra.mxu1 %v7569_v2 }
 0x224   :  { %v1740_v40 = vmul.f32 %v1660_v29, %v1596_v35  ;;  %v1822_v47 = vpop.xlane.xlu1 %1821  ;;  %5233 = vmatprep.subr.bf16.mxu0 %v7597_v25  ;;  %5137 = vmatprep.subr.bf16.mxu1 %v7597_v25  ;;  %v9589_v29 = vand.u32 4294901760, %v7641_v48  ;;  %v7704_v35 = vld [vmem:[%s9506_s7 + $0x78] sm:$0xff] }
 0x225   :  { %v1845_v62 = vadd.f32 %v1822_v47, %v1797_v37  ;;  %9851 = vst [vmem:[#allocation57_spill] sm:$0xff] %v7704_v35  ;;  %v9853_v37 = vand.u32 4294901760, %v7299_v54 }
 0x226   :  { %v1772_v36 = vadd.f32 %v1756_v41, %v1740_v40  ;;  %1897 = vperm.xlu1 %5417, %v7509_v19   ;;  %v7664_v18 = vpack.c.bf16 %v9588_v57, %v9589_v29  ;;  %v7680_v41 = vld [vmem:[%s9505_s6 + $0x78] sm:$0xff]  ;;  %v2335_v57 = vand.u32 4294901760, %v7721_v38  ;;  %v9894_v19 = vld [vmem:[#allocation24_spill] sm:$0xff] }
 0x227   :  { %1862 = vst.msk [vmem:[#allocation2 + $0x40] sm:$0xff] %vm92_vm0, %v1845_v62  ;;  %5235 = vmatpush3.bf16.msra.mxu0 %v7597_v25  ;;  %5139 = vmatpush3.bf16.msra.mxu1 %v7597_v25  ;;  %v9586_v3 = vand.u32 4294901760, %v7680_v41  ;;  %v1796_v40 = vld [vmem:[#allocation2 + $0x38] sm:$0xff]  ;;  %v7716_v47 = vsub.f32 %v7299_v54, %v9853_v37  ;;  %v7737_v37 = vsub.f32 %v7402_v31, %v2091_v23 }
 0x228   :  { %v7530_v53 = vmul.f32 %v1772_v36, %v744_v60  ;;  %5237 = vmatprep.subr.bf16.mxu0 %v7630_v12  ;;  %5141 = vmatprep.subr.bf16.mxu1 %v7630_v12  ;;  %9847 = vst [vmem:[#allocation13_spill] sm:$0xff] %v7664_v18  ;;  %v7685_v60 = vld [vmem:[%s9506_s7 + $0x60] sm:$0xff]  ;;  %v7709_v36 = vld [vmem:[%s9506_s7 + $0x70] sm:$0xff]  ;;  %v2336_v46 = vsub.f32 %v7721_v38, %v2335_v57 }
 0x229   :  { %9849 = vst [vmem:[#allocation29_spill] sm:$0xff] %v7685_v60  ;;  %v7698_v4 = vpack.c.bf16 %v9586_v3, %v9587_v0  ;;  %9852 = vst [vmem:[#allocation58_spill] sm:$0xff] %v7709_v36  ;;  %v2328_v0 = vand.u32 4294901760, %v7716_v47  ;;  %v2342_v29 = vand.u32 4294901760, %v7737_v37  ;;  %v7753_v31 = vsub.f32 %v7514_v17, %v2097_v24 }
 0x22a   :  { %1902 = vperm.xlu1 %5417, %v7535_v33   ;;  %v7758_v23 = vsub.f32 %v7519_v5, %v2100_v7  ;;  %v7773_v5 = vsub.f32 %v7555_v56, %v2103_v1  ;;  %v1799_v7 = vld [vmem:[#allocation2 + $0x50] sm:$0xff]  ;;  %v9854_v1 = vand.u32 4294901760, %v7579_v51 }
 0x22b   :  { %5239 = vmatpush3.bf16.msra.mxu0 %v7630_v12  ;;  %5143 = vmatpush3.bf16.msra.mxu1 %v7630_v12  ;;  %9850 = vst [vmem:[#allocation56_spill] sm:$0xff] %v7698_v4  ;;  %v7730_v54 = vpack.c.bf16 %v2335_v57, %v2328_v0  ;;  %v2329_v6 = vsub.f32 %v7716_v47, %v2328_v0 }
 0x22c   :  { %5241 = vmatprep.subr.bf16.mxu0 %v7664_v18  ;;  %5145 = vmatprep.subr.bf16.mxu1 %v7664_v18  ;;  %v2343_v57 = vsub.f32 %v7737_v37, %v2342_v29  ;;  %v2370_v13 = vand.u32 4294901760, %v7773_v5 }
 0x22e   :  { %1907 = vperm.xlu1 %5417, %v7550_v49   ;;  %v2371_v56 = vsub.f32 %v7773_v5, %v2370_v13 }
 0x22f   :  { %5243 = vmatpush3.bf16.msra.mxu0 %v7664_v18  ;;  %5147 = vmatpush3.bf16.msra.mxu1 %v7664_v18 }
 0x230   :  { %5245 = vmatprep.subr.bf16.mxu0 %v7698_v4  ;;  %5149 = vmatprep.subr.bf16.mxu1 %v7698_v4 }
 0x232   :  { %1912 = vperm.xlu1 %5417, %v7574_v28   ;;  %v9858_v28 = vand.u32 4294901760, %v7641_v48 }
 0x233   :  { %5247 = vmatpush3.bf16.msra.mxu0 %v7698_v4  ;;  %5151 = vmatpush3.bf16.msra.mxu1 %v7698_v4 }
 0x234   :  { %5249 = vmatprep.subr.bf16.mxu0 %v7730_v54 }
 0x236   :  { %1917 = vperm.xlu1 %5417, %v7602_v26   ;;  %v9891_v26 = vld [vmem:[#allocation54_spill] sm:$0xff] }
 0x238   :  { %1877 = vperm.xlu0 %5416, %v7617_v58  }
 0x23a   :  { %1927 = vperm.xlu1 %5417, %v7636_v27  }
 0x23c   :  { %1922 = vperm.xlu0 %5416, %v7651_v45  }
 0x23e   :  { %1937 = vperm.xlu1 %5417, %v7670_v39   ;;  %v1820_v62 = vpop.xlane.xlu0 %1819 }
 0x23f   :  { %v1844_v3 = vadd.f32 %v1820_v62, %v1796_v40  ;;  %v7742_v40 = vsub.f32 %v7420_v8, %v2094_v52  ;;  %v2330_v62 = vand.u32 4294901760, %v2329_v6  ;;  %v2344_v6 = vand.u32 4294901760, %v2343_v57 }
 0x240   :  { %1932 = vperm.xlu0 %5416, %v7685_v60  }
 0x241   :  { %1861 = vst.msk [vmem:[#allocation2 + $0x38] sm:$0xff] %vm92_vm0, %v1844_v3  ;;  %v2337_v3 = vand.u32 4294901760, %v2336_v46  ;;  %v2349_v0 = vand.u32 4294901760, %v7742_v40  ;;  %v2356_v46 = vand.u32 4294901760, %v7753_v31 }
 0x242   :  { %1947 = vperm.xlu1 %5417, %v7704_v35  }
 0x243   :  { %v7747_v32 = vpack.c.bf16 %v2337_v3, %v2330_v62  ;;  %v7760_v8 = vpack.c.bf16 %v2349_v0, %v2342_v29  ;;  %v2350_v52 = vsub.f32 %v7742_v40, %v2349_v0  ;;  %v2363_v62 = vand.u32 4294901760, %v7758_v23 }
 0x244   :  { %1942 = vperm.xlu0 %5416, %v7709_v36   ;;  %v2357_v17 = vsub.f32 %v7753_v31, %v2356_v46  ;;  %v7780_v0 = vsub.f32 %v7560_v20, %v2106_v22  ;;  %v9855_v22 = vand.u32 4294901760, %v7584_v30  ;;  %v9856_v36 = vand.u32 4294901760, %v7607_v21 }
 0x245   :  { %5153 = vmatprep.subr.bf16.mxu1 %v7747_v32  ;;  %v2351_v3 = vand.u32 4294901760, %v2350_v52  ;;  %v7766_v42 = vpack.c.bf16 %v2363_v62, %v2356_v46  ;;  %v2364_v24 = vsub.f32 %v7758_v23, %v2363_v62 }
 0x246   :  { %v2358_v57 = vand.u32 4294901760, %v2357_v17  ;;  %v2377_v62 = vand.u32 4294901760, %v7780_v0  ;;  %v2390_v17 = vsub.f32 %v7584_v30, %v9855_v22  ;;  %v2397_v60 = vsub.f32 %v7607_v21, %v9856_v36  ;;  %v1798_v36 = vld [vmem:[#allocation2 + $0x48] sm:$0xff] }
 0x247   :  { %v7775_v29 = vpack.c.bf16 %v2351_v3, %v2344_v6  ;;  %v2365_v52 = vand.u32 4294901760, %v2364_v24  ;;  %v2383_v6 = vsub.f32 %v7579_v51, %v9854_v1  ;;  %v2372_v24 = vand.u32 4294901760, %v2371_v56 }
 0x248   :  { %v7790_v3 = vpack.c.bf16 %v2377_v62, %v2370_v13  ;;  %v2378_v20 = vsub.f32 %v7780_v0, %v2377_v62  ;;  %v9857_v51 = vand.u32 4294901760, %v7612_v43  ;;  %v2411_v21 = vsub.f32 %v7641_v48, %v9858_v28 }
 0x249   :  { %v7784_v63 = vpack.c.bf16 %v2365_v52, %v2358_v57  ;;  %v2391_v52 = vand.u32 4294901760, %v2390_v17  ;;  %v9860_v28 = vand.u32 4294901760, %v7675_v9 }
 0x24a   :  { %v2379_v57 = vand.u32 4294901760, %v2378_v20  ;;  %v2404_v13 = vsub.f32 %v7612_v43, %v9857_v51  ;;  %v9859_v43 = vand.u32 4294901760, %v7646_v16 }
 0x24b   :  { %v2392_v30 = vsub.f32 %v2390_v17, %v2391_v52  ;;  %v2425_v48 = vsub.f32 %v7675_v9, %v9860_v28 }
 0x24c   :  { %v7803_v62 = vpack.c.bf16 %v2379_v57, %v2372_v24  ;;  %v2405_v56 = vand.u32 4294901760, %v2404_v13  ;;  %v2418_v24 = vsub.f32 %v7646_v16, %v9859_v43  ;;  %v9861_v16 = vand.u32 4294901760, %v7680_v41 }
 0x24d   :  { %v1826_v46 = vpop.xlane.xlu1 %1825  ;;  %v2393_v45 = vand.u32 4294901760, %v2392_v30 }
 0x24e   :  { %v1847_v44 = vadd.f32 %v1826_v46, %v1799_v7  ;;  %v2384_v7 = vand.u32 4294901760, %v2383_v6  ;;  %v2406_v4 = vsub.f32 %v2404_v13, %v2405_v56  ;;  %v2419_v51 = vand.u32 4294901760, %v2418_v24 }
 0x250   :  { %1864 = vst.msk [vmem:[#allocation2 + $0x50] sm:$0xff] %vm92_vm0, %v1847_v44  ;;  %v2385_v46 = vsub.f32 %v2383_v6, %v2384_v7  ;;  %v7805_v1 = vpack.c.bf16 %v2391_v52, %v2384_v7  ;;  %v2398_v44 = vand.u32 4294901760, %v2397_v60  ;;  %v2407_v57 = vand.u32 4294901760, %v2406_v4 }
 0x251   :  { %v2412_v52 = vand.u32 4294901760, %v2411_v21  ;;  %v2420_v33 = vsub.f32 %v2418_v24, %v2419_v51 }
 0x252   :  { %v2386_v22 = vand.u32 4294901760, %v2385_v46  ;;  %v7807_v20 = vpack.c.bf16 %v2405_v56, %v2398_v44  ;;  %v2399_v35 = vsub.f32 %v2397_v60, %v2398_v44 }
 0x253   :  { %v7819_v44 = vpack.c.bf16 %v2419_v51, %v2412_v52  ;;  %v2413_v56 = vsub.f32 %v2411_v21, %v2412_v52 }
 0x254   :  { %v7812_v39 = vpack.c.bf16 %v2393_v45, %v2386_v22  ;;  %v2400_v7 = vand.u32 4294901760, %v2399_v35  ;;  %v2432_v45 = vsub.f32 %v7680_v41, %v9861_v16  ;;  %v2421_v35 = vand.u32 4294901760, %v2420_v33 }
 0x255   :  { %v2414_v4 = vand.u32 4294901760, %v2413_v56  ;;  %v2426_v22 = vand.u32 4294901760, %v2425_v48  ;;  %v7837_v41 = vpack.c.bf16 %v7721_v38, %v7716_v47  ;;  %v7841_v16 = vpack.c.bf16 %v7742_v40, %v7737_v37 }
 0x256   :  { %v7817_v18 = vpack.c.bf16 %v2407_v57, %v2400_v7  ;;  %v9862_v57 = vld [vmem:[#allocation18_spill] sm:$0xff]  ;;  %v7854_v47 = vpack.c.bf16 %v2404_v13, %v2397_v60  ;;  %v7856_v38 = vpack.c.bf16 %v2418_v24, %v2411_v21  ;;  %v7858_v40 = vpack.c.bf16 %v2432_v45, %v2425_v48  ;;  %v7865_v60 = vld [vmem:[%s9507_s8] ss:$0 sm:$0xff]  ;;  %v1802_v13 = vld [vmem:[#allocation2 + $0x68] sm:$0xff]  ;;  %s5596_s8 = smov 4  }
 0x257   :  { %v7828_v43 = vpack.c.bf16 %v2421_v35, %v2414_v4  ;;  %v2427_v7 = vsub.f32 %v2425_v48, %v2426_v22  ;;  %v7846_v4 = vpack.c.bf16 %v7758_v23, %v7753_v31  ;;  %v7850_v35 = vpack.c.bf16 %v7780_v0, %v7773_v5  ;;  %v9870_v48 = vld [vmem:[#allocation33_spill] sm:$0xff] }
 0x258   :  { %9866 = vst [vmem:[#allocation61_spill] sm:$0xff] %v7854_v47  ;;  %9867 = vst [vmem:[#allocation62_spill] sm:$0xff] %v7856_v38 }
 0x259   :  { %v1824_v46 = vpop.xlane.xlu0 %1823  ;;  %v2428_v51 = vand.u32 4294901760, %v2427_v7  ;;  %9863 = vst [vmem:[#allocation18_spill] sm:$0xff] %v7846_v4  ;;  %9864 = vst [vmem:[#allocation59_spill] sm:$0xff] %v7850_v35 }
 0x25a   :  { %v1846_v30 = vadd.f32 %v1824_v46, %v1798_v36  ;;  %v2433_v36 = vand.u32 4294901760, %v2432_v45  ;;  %9868 = vst [vmem:[#allocation63_spill] sm:$0xff] %v7858_v40 }
 0x25c   :  { %1863 = vst.msk [vmem:[#allocation2 + $0x48] sm:$0xff] %vm92_vm0, %v1846_v30  ;;  %v7831_v52 = vpack.c.bf16 %v2433_v36, %v2426_v22  ;;  %v2434_v46 = vsub.f32 %v2432_v45, %v2433_v36  ;;  %v1801_v30 = vld [vmem:[#allocation2 + $0x60] sm:$0xff]  ;;  %v7852_v22 = vpack.c.bf16 %v2390_v17, %v2383_v6  ;;  %v1800_v36 = vld [vmem:[#allocation2 + $0x58] sm:$0xff] }
 0x25d   :  { %v9869_v6 = vld [vmem:[#allocation20_spill] sm:$0xff] }
 0x25e   :  { %v2435_v9 = vand.u32 4294901760, %v2434_v46  ;;  %9865 = vst [vmem:[#allocation60_spill] sm:$0xff] %v7852_v22 }
 0x260   :  { %v7833_v28 = vpack.c.bf16 %v2435_v9, %v2428_v51  ;;  %v9871_v9 = vld [vmem:[#allocation15_spill] sm:$0xff] }
 0x263   :  { %2004 = vadd.xlane.f32.xlu0 %v9862_v57  ;;  %v1803_v57 = vld [vmem:[#allocation2 + $0x70] sm:$0xff] }
 0x269   :  { %v1830_v33 = vpop.xlane.xlu1 %1829 }
 0x26a   :  { %v1849_v56 = vadd.f32 %v1830_v33, %v1801_v30 }
 0x26c   :  { %1866 = vst.msk [vmem:[#allocation2 + $0x60] sm:$0xff] %vm92_vm0, %v1849_v56  ;;  %v9872_v56 = vld [vmem:[#allocation37_spill] sm:$0xff] }
 0x289   :  { %v1828_v7 = vpop.xlane.xlu0 %1827 }
 0x28a   :  { %v1848_v37 = vadd.f32 %v1828_v7, %v1800_v36 }
 0x28c   :  { %1865 = vst.msk [vmem:[#allocation2 + $0x58] sm:$0xff] %vm92_vm0, %v1848_v37 }
 0x296   :  { %v1834_v31 = vpop.xlane.xlu1 %1833 }
 0x297   :  { %v1851_v23 = vadd.f32 %v1834_v31, %v1803_v57  ;;  %v9873_v57 = vld [vmem:[#allocation52_spill] sm:$0xff] }
 0x299   :  { %1868 = vst.msk [vmem:[#allocation2 + $0x70] sm:$0xff] %vm92_vm0, %v1851_v23 }
 0x29a   :  { %v1883_v5 = vpop.permute.xlu1 %1882 }
 0x29b   :  { %v1958_v0 = vadd.f32 %v7865_v60, %v1883_v5  ;;  %v9874_v5 = vld [vmem:[#allocation40_spill] sm:$0xff] }
 0x29d   :  { %v1974_v17 = vmul.f32 %v1958_v0, %v9869_v6  ;;  %v1804_v6 = vld [vmem:[#allocation2 + $0x78] sm:$0xff] }
 0x29e   :  { %v1888_v21 = vpop.permute.xlu1 %1887 }
 0x29f   :  { %v1959_v24 = vadd.f32 %v7865_v60, %v1888_v21  ;;  %v1990_v45 = vmul.f32 %v9870_v48, %v1974_v17 }
 0x2a1   :  { %v1832_v46 = vpop.xlane.xlu0 %1831  ;;  %v1975_v30 = vmul.f32 %v1959_v24, %v9871_v9  ;;  %2008 = vadd.xlane.f32.xlu0 %v1990_v45  ;;  %v9876_v9 = vld [vmem:[#allocation22_spill] sm:$0xff] }
 0x2a2   :  { %v1850_v51 = vadd.f32 %v1832_v46, %v1802_v13  ;;  %v1893_v33 = vpop.permute.xlu1 %1892  ;;  %v9875_v46 = vld [vmem:[#allocation16_spill] sm:$0xff] }
 0x2a3   :  { %v1991_v36 = vmul.f32 %v9872_v56, %v1975_v30  ;;  %v1960_v13 = vadd.f32 %v7865_v60, %v1893_v33 }
 0x2a4   :  { %1867 = vst.msk [vmem:[#allocation2 + $0x68] sm:$0xff] %vm92_vm0, %v1850_v51 }
 0x2a5   :  { %2010 = vadd.xlane.f32.xlu0 %v1991_v36  ;;  %v1976_v30 = vmul.f32 %v1960_v13, %v9876_v9  ;;  %v9881_v9 = vld [vmem:[#allocation19_spill] sm:$0xff] }
 0x2a6   :  { %v1898_v7 = vpop.permute.xlu1 %1897 }
 0x2a7   :  { %v1961_v37 = vadd.f32 %v7865_v60, %v1898_v7 }
 0x2a9   :  { %v1977_v31 = vmul.f32 %v1961_v37, %v9873_v57  ;;  %v9877_v57 = vld [vmem:[#allocation45_spill] sm:$0xff] }
 0x2aa   :  { %v1903_v23 = vpop.permute.xlu1 %1902 }
 0x2ab   :  { %v1993_v0 = vmul.f32 %v9874_v5, %v1977_v31  ;;  %v1962_v56 = vadd.f32 %v7865_v60, %v1903_v23  ;;  %v7885_v5 = vand.u32 4294901760, %v1990_v45 }
 0x2ad   :  { %2014 = vadd.xlane.f32.xlu0 %v1993_v0  ;;  %v7896_v27 = vand.u32 4294901760, %v1993_v0 }
 0x2ae   :  { %v1908_v21 = vpop.permute.xlu1 %1907 }
 0x2af   :  { %v1836_v17 = vpop.xlane.xlu0 %1835  ;;  %v1963_v48 = vadd.f32 %v7865_v60, %v1908_v21  ;;  %v9879_v21 = vld [vmem:[#allocation36_spill] sm:$0xff] }
 0x2b0   :  { %v1852_v24 = vadd.f32 %v1836_v17, %v1804_v6  ;;  %v9878_v6 = vld [vmem:[#allocation27_spill] sm:$0xff]  ;;  %v1992_v40 = vmul.f32 %v9879_v21, %v1976_v30  ;;  %v7901_v30 = vsub.f32 %v1990_v45, %v7885_v5 }
 0x2b1   :  { %v1979_v51 = vmul.f32 %v1963_v48, %v9875_v46  ;;  %v1978_v17 = vmul.f32 %v1962_v56, %v9878_v6  ;;  %v9880_v46 = vld [vmem:[#allocation25_spill] sm:$0xff]  ;;  %v9884_v56 = vld [vmem:[#allocation38_spill] sm:$0xff] }
 0x2b2   :  { %1869 = vst.msk [vmem:[#allocation2 + $0x78] sm:$0xff] %vm92_vm0, %v1852_v24  ;;  %v1913_v7 = vpop.permute.xlu1 %1912  ;;  %v7898_v12 = vand.u32 4294901760, %v1992_v40  ;;  %9883 = vst [vmem:[#allocation20_spill] sm:$0xff] %v7901_v30 }
 0x2b3   :  { %v1964_v37 = vadd.f32 %v7865_v60, %v1913_v7  ;;  %v1995_v31 = vmul.f32 %v9877_v57, %v1979_v51  ;;  %v7893_v7 = vand.u32 4294901760, %v1991_v36  ;;  %v9882_v51 = vld [vmem:[#allocation17_spill] sm:$0xff] }
 0x2b5   :  { %2018 = vadd.xlane.f32.xlu0 %v1995_v31  ;;  %v1980_v13 = vmul.f32 %v1964_v37, %v9880_v46  ;;  %v9885_v37 = vld [vmem:[#allocation30_spill] sm:$0xff]  ;;  %v7914_v45 = vsub.f32 %v1991_v36, %v7893_v7  ;;  %v7929_v36 = vand.u32 4294901760, %v1995_v31 }
 0x2b6   :  { %v1918_v24 = vpop.permute.xlu1 %1917 }
 0x2b7   :  { %v1878_v33 = vpop.permute.xlu0 %1877  ;;  %v1965_v23 = vadd.f32 %v7865_v60, %v1918_v24  ;;  %v9886_v24 = vld [vmem:[#allocation41_spill] sm:$0xff] }
 0x2b8   :  { %v1957_v48 = vadd.f32 %v7865_v60, %v1878_v33  ;;  %v1994_v33 = vmul.f32 %v9884_v56, %v1978_v17  ;;  %v7906_v46 = vmul.f32 %v9886_v24, %v1980_v13 }
 0x2b9   :  { %v1981_v57 = vmul.f32 %v1965_v23, %v9882_v51 }
 0x2ba   :  { %v1973_v38 = vmul.f32 %v1957_v48, %v9881_v9  ;;  %v1928_v6 = vpop.permute.xlu1 %1927  ;;  %v9887_v9 = vld [vmem:[#allocation48_spill] sm:$0xff]  ;;  %v7918_v13 = vand.u32 4294901760, %v1994_v33 }
 0x2bb   :  { %v1923_v47 = vpop.permute.xlu0 %1922  ;;  %v1967_v48 = vadd.f32 %v7865_v60, %v1928_v6  ;;  %v1997_v23 = vmul.f32 %v9887_v9, %v1981_v57  ;;  %v7921_v6 = vsub.f32 %v1992_v40, %v7898_v12  ;;  %v7924_v57 = vsub.f32 %v1993_v0, %v7896_v27 }
 0x2bc   :  { %v1989_v21 = vmul.f32 %v9885_v37, %v1973_v38  ;;  %v1966_v51 = vadd.f32 %v7865_v60, %v1923_v47  ;;  %v2187_v38 = vand.u32 4294901760, %v7901_v30 }
 0x2bd   :  { %v1983_v17 = vmul.f32 %v1967_v48, %v7358_v55  ;;  %2022 = vadd.xlane.f32.xlu0 %v1997_v23  ;;  %v7932_v55 = vand.u32 4294901760, %v7906_v46  ;;  %v9890_v48 = vld [vmem:[#allocation51_spill] sm:$0xff]  ;;  %v2207_v2 = vand.u32 4294901760, %v7921_v6 }
 0x2be   :  { %2006 = vadd.xlane.f32.xlu1 %v1989_v21  ;;  %v7911_v14 = vand.u32 4294901760, %v1989_v21  ;;  %v1938_v47 = vpop.permute.xlu1 %1937  ;;  %v1982_v9 = vmul.f32 %v1966_v51, %v9890_v48  ;;  %v2188_v49 = vsub.f32 %v7901_v30, %v2187_v38  ;;  %v7960_v48 = vand.u32 4294901760, %v1997_v23  ;;  %v9893_v30 = vld [vmem:[#allocation47_spill] sm:$0xff] }
 0x2bf   :  { %v1933_v56 = vpop.permute.xlu0 %1932  ;;  %9889 = vst [vmem:[#allocation15_spill] sm:$0xff] %v7932_v55  ;;  %v1969_v24 = vadd.f32 %v7865_v60, %v1938_v47  ;;  %v7938_v25 = vmul.f32 %v9891_v26, %v1983_v17  ;;  %v7946_v47 = vsub.f32 %v1994_v33, %v7918_v13  ;;  %v7952_v17 = vsub.f32 %v1995_v31, %v7929_v36 }
 0x2c0   :  { %v7927_v37 = vsub.f32 %v1989_v21, %v7911_v14  ;;  %v1968_v22 = vadd.f32 %v7865_v60, %v1933_v56  ;;  %v2197_v21 = vand.u32 4294901760, %v7914_v45  ;;  %v9892_v56 = vld [vmem:[#allocation28_spill] sm:$0xff]  ;;  %v1998_v4 = vmul.f32 %v9893_v30, %v1982_v9 }
 0x2c1   :  { %v1985_v50 = vmul.f32 %v1969_v24, %v7479_v34  ;;  %2026 = vadd.xlane.f32.xlu0 %v7938_v25  ;;  %v7956_v34 = vsub.f32 %v7906_v46, %v7932_v55 }
 0x2c2   :  { %9888 = vst [vmem:[#allocation33_spill] sm:$0xff] %v7927_v37  ;;  %2012 = vadd.xlane.f32.xlu1 %v1992_v40  ;;  %v2177_v0 = vand.u32 4294901760, %v7927_v37  ;;  %v1948_v51 = vpop.permute.xlu1 %1947  ;;  %v2217_v40 = vand.u32 4294901760, %v7924_v57  ;;  %v1984_v24 = vmul.f32 %v1968_v22, %v9892_v56  ;;  %v2198_v55 = vsub.f32 %v7914_v45, %v2197_v21 }
 0x2c3   :  { %v1943_v35 = vpop.permute.xlu0 %1942  ;;  %v1971_v22 = vadd.f32 %v7865_v60, %v1948_v51  ;;  %v2227_v56 = vand.u32 4294901760, %v7946_v47  ;;  %v2247_v30 = vand.u32 4294901760, %v7956_v34  ;;  %v7986_v51 = vand.u32 4294901760, %v7938_v25 }
 0x2c4   :  { %4985 = vmatmul.mubr.f32.vlgmr.msra.gmra.mrb[0].mxu0 %v2177_v0  ;;  %v2178_v26 = vsub.f32 %v7927_v37, %v2177_v0  ;;  %v7964_v0 = vmul.f32 %v9894_v19, %v1985_v50  ;;  %v1970_v37 = vadd.f32 %v7865_v60, %v1943_v35  ;;  %v2218_v50 = vsub.f32 %v7924_v57, %v2217_v40  ;;  %v9895_v60 = vld [vmem:[#allocation53_spill] sm:$0xff] }
 0x2c5   :  { %4987 = vmatprep.mubr.f32.mxu0 %v2187_v38  ;;  %5251 = vmatpush3.bf16.msra.mxu0 %v7730_v54  ;;  %v2189_v38 = vand.u32 4294901760, %v2188_v49  ;;  %v2208_v54 = vsub.f32 %v7921_v6, %v2207_v2  ;;  %v2237_v19 = vand.u32 4294901760, %v7952_v17  ;;  %v7975_v35 = vand.u32 4294901760, %v1998_v4 }
 0x2c6   :  { %2016 = vadd.xlane.f32.xlu1 %v1994_v33  ;;  %v2179_v31 = vand.u32 4294901760, %v2178_v26  ;;  %5253 = vmatprep.subr.bf16.mxu0 %v7760_v8  ;;  %v2000_v49 = vmul.f32 %v9895_v60, %v1984_v24  ;;  %v7980_v33 = vsub.f32 %v1997_v23, %v7960_v48  ;;  %v1986_v9 = vmul.f32 %v1970_v37, %v7423_v10 }
 0x2c7   :  { %2030 = vadd.xlane.f32.xlu0 %v7964_v0  ;;  %v2209_v26 = vand.u32 4294901760, %v2208_v54  ;;  %v2228_v23 = vsub.f32 %v7946_v47, %v2227_v56  ;;  %v2219_v10 = vand.u32 4294901760, %v2218_v50  ;;  %v2248_v37 = vsub.f32 %v7956_v34, %v2247_v30 }
 0x2c8   :  { %4817 = vmatmul.mubr.f32.vlgmr.msra.gmra.mrb[0].mxu1 %v2179_v31  ;;  %4988 = vmatmul.mubr.f32.gmra.mrb[2].mxu0 %v2197_v21  ;;  %v2199_v21 = vand.u32 4294901760, %v2198_v55  ;;  %v8003_v55 = vand.u32 4294901760, %v7964_v0  ;;  %v8008_v31 = vsub.f32 %v7938_v25, %v7986_v51 }
 0x2c9   :  { %4819 = vmatprep.mubr.f32.mxu1 %v2189_v38  ;;  %4990 = vmatprep.mubr.f32.mxu0 %v2207_v2  ;;  %v1987_v2 = vmul.f32 %v1971_v22, %v7530_v53  ;;  %v2257_v53 = vand.u32 4294901760, %v7980_v33  ;;  %v9897_v22 = vld [vmem:[#allocation42_spill] sm:$0xff]  ;;  %v2229_v54 = vand.u32 4294901760, %v2228_v23 }
 0x2ca   :  { %5155 = vmatpush3.bf16.msra.mxu1 %v7747_v32  ;;  %5255 = vmatpush3.bf16.msra.mxu0 %v7760_v8  ;;  %v2238_v32 = vsub.f32 %v7952_v17, %v2237_v19  ;;  %v7993_v8 = vand.u32 4294901760, %v2000_v49 }
 0x2cb   :  { %2020 = vadd.xlane.f32.xlu1 %v7906_v46  ;;  %5157 = vmatprep.subr.bf16.mxu1 %v7775_v29  ;;  %v7998_v46 = vsub.f32 %v1998_v4, %v7975_v35  ;;  %v2003_v38 = vmul.f32 %v9897_v22, %v1987_v2  ;;  %v2258_v60 = vsub.f32 %v7980_v33, %v2257_v53  ;;  %v9898_v22 = vld [vmem:[#allocation21_spill] sm:$0xff] }
 0x2cc   :  { %4820 = vmatmul.mubr.f32.gmra.mrb[2].mxu1 %v2199_v21  ;;  %4991 = vmatmul.mubr.f32.gmra.mrb[4].mxu0 %v2217_v40  ;;  %v9896_v40 = vld [vmem:[#allocation55_spill] sm:$0xff]  ;;  %v8016_v25 = vsub.f32 %v2000_v49, %v7993_v8 }
 0x2cd   :  { %4822 = vmatprep.mubr.f32.mxu1 %v2209_v26  ;;  %4993 = vmatprep.mubr.f32.mxu0 %v2227_v56  ;;  %v2002_v24 = vmul.f32 %v9896_v40, %v1986_v9  ;;  %v2249_v56 = vand.u32 4294901760, %v2248_v37  ;;  %v2267_v50 = vand.u32 4294901760, %v7998_v46  ;;  %v8026_v9 = vsub.f32 %v7964_v0, %v8003_v55 }
 0x2ce   :  { %5159 = vmatpush3.bf16.msra.mxu1 %v7775_v29  ;;  %5257 = vmatprep.subr.bf16.mxu0 %v7766_v42  ;;  %v2239_v29 = vand.u32 4294901760, %v2238_v32  ;;  %v2287_v21 = vand.u32 4294901760, %v8016_v25 }
 0x2cf   :  { %5259 = vmatpush3.bf16.msra.mxu0 %v7766_v42  ;;  %2024 = vadd.xlane.f32.xlu1 %v1998_v4  ;;  %v8019_v42 = vand.u32 4294901760, %v2002_v24  ;;  %v2277_v4 = vand.u32 4294901760, %v8008_v31  ;;  %v2297_v2 = vand.u32 4294901760, %v8026_v9 }
 0x2d0   :  { %4823 = vmatmul.mubr.f32.gmra.mrb[4].mxu1 %v2219_v10  ;;  %4994 = vmatmul.mubr.f32.gmra.mrb[6].mxu0 %v2237_v19  ;;  %v8022_v19 = vand.u32 4294901760, %v2003_v38  ;;  %v2288_v26 = vsub.f32 %v8016_v25, %v2287_v21 }
 0x2d1   :  { %4825 = vmatprep.mubr.f32.mxu1 %v2229_v54  ;;  %5161 = vmatprep.subr.bf16.mxu1 %v7784_v63  ;;  %v2278_v0 = vsub.f32 %v8008_v31, %v2277_v4  ;;  %v2298_v32 = vsub.f32 %v8026_v9, %v2297_v2  ;;  %v9901_v54 = vld [vmem:[#allocation23_spill] sm:$0xff] }
 0x2d2   :  { %5163 = vmatpush3.bf16.msra.mxu1 %v7784_v63  ;;  %4996 = vmatprep.mubr.f32.mxu0 %v2247_v30  ;;  %v2259_v63 = vand.u32 4294901760, %v2258_v60  ;;  %v2268_v30 = vsub.f32 %v7998_v46, %v2267_v50  ;;  %v9904_v60 = vld [vmem:[#allocation59_spill] sm:$0xff] }
 0x2d3   :  { %5261 = vmatprep.subr.bf16.mxu0 %v7790_v3  ;;  %2028 = vadd.xlane.f32.xlu1 %v2000_v49  ;;  %v8037_v49 = vsub.f32 %v2002_v24, %v8019_v42  ;;  %v2279_v23 = vand.u32 4294901760, %v2278_v0  ;;  %v3426_v0 = vld [vmem:[#allocation2 + $0x20] sm:$0xff] }
 0x2d4   :  { %5263 = vmatpush3.bf16.msra.mxu0 %v7790_v3  ;;  %4826 = vmatmul.mubr.f32.gmra.mrb[6].mxu1 %v2239_v29  ;;  %v8040_v3 = vsub.f32 %v2003_v38, %v8022_v19  ;;  %v9902_v29 = vld [vmem:[#allocation15_spill] sm:$0xff] }
 0x2d5   :  { %5165 = vmatprep.subr.bf16.mxu1 %v7803_v62  ;;  %4828 = vmatprep.mubr.f32.mxu1 %v2249_v56  ;;  %v2307_v10 = vand.u32 4294901760, %v8037_v49  ;;  %v9903_v56 = vld [vmem:[#allocation32_spill] sm:$0xff] }
 0x2d6   :  { %5167 = vmatpush3.bf16.msra.mxu1 %v7803_v62  ;;  %4997 = vmatmul.mubr.f32.gmra.mrb[8].mxu0 %v2257_v53  ;;  %v2269_v62 = vand.u32 4294901760, %v2268_v30  ;;  %v2317_v37 = vand.u32 4294901760, %v8040_v3  ;;  %v3431_v30 = vld [vmem:[#allocation2 + $0x48] sm:$0xff] }
 0x2d7   :  { %5265 = vmatprep.subr.bf16.mxu0 %v7805_v1  ;;  %4999 = vmatprep.mubr.f32.mxu0 %v2267_v50  ;;  %v2308_v53 = vsub.f32 %v8037_v49, %v2307_v10 }
 0x2d8   :  { %5267 = vmatpush3.bf16.msra.mxu0 %v7805_v1  ;;  %2032 = vadd.xlane.f32.xlu1 %v2002_v24  ;;  %v2299_v1 = vand.u32 4294901760, %v2298_v32  ;;  %v2318_v40 = vsub.f32 %v8040_v3, %v2317_v37  ;;  %v3433_v32 = vld [vmem:[#allocation2 + $0x58] sm:$0xff] }
 0x2d9   :  { %5169 = vmatprep.subr.bf16.mxu1 %v7812_v39  ;;  %4829 = vmatmul.mubr.f32.gmra.mrb[8].mxu1 %v2259_v63 }
 0x2da   :  { %5171 = vmatpush3.bf16.msra.mxu1 %v7812_v39  ;;  %5000 = vmatmul.mubr.f32.gmra.mrb[10].mxu0 %v2277_v4  ;;  %v2289_v39 = vand.u32 4294901760, %v2288_v26  ;;  %v2319_v24 = vand.u32 4294901760, %v2318_v40  ;;  %v9905_v4 = vld [vmem:[#allocation43_spill] sm:$0xff]  ;;  %v9908_v26 = vld [vmem:[#allocation60_spill] sm:$0xff]  ;;  %v9912_v40 = vld [vmem:[#allocation61_spill] sm:$0xff] }
 0x2db   :  { %5269 = vmatprep.subr.bf16.mxu0 %v7807_v20  ;;  %4831 = vmatprep.mubr.f32.mxu1 %v2269_v62 }
 0x2dc   :  { %5002 = vmatprep.mubr.f32.mxu0 %v2287_v21  ;;  %5271 = vmatpush3.bf16.msra.mxu0 %v7807_v20  ;;  %v2309_v20 = vand.u32 4294901760, %v2308_v53  ;;  %v9906_v21 = vld [vmem:[#allocation35_spill] sm:$0xff] }
 0x2dd   :  { %2034 = vadd.xlane.f32.xlu0 %v2003_v38  ;;  %5173 = vmatprep.subr.bf16.mxu1 %v7817_v18  ;;  %v3429_v38 = vld [vmem:[#allocation2 + $0x38] sm:$0xff] }
 0x2de   :  { %4832 = vmatmul.mubr.f32.gmra.mrb[10].mxu1 %v2279_v23  ;;  %5003 = vmatmul.mubr.f32.gmra.mrb[12].mxu0 %v2297_v2  ;;  %v3477_v50 = vmul.f32 %v3429_v38, %v9903_v56  ;;  %v9907_v2 = vld [vmem:[#allocation39_spill] sm:$0xff]  ;;  %v9909_v23 = vld [vmem:[#allocation44_spill] sm:$0xff]  ;;  %v9919_v38 = vld [vmem:[#allocation57_spill] sm:$0xff] }
 0x2df   :  { %5175 = vmatpush3.bf16.msra.mxu1 %v7817_v18  ;;  %5273 = vmatprep.subr.bf16.mxu0 %v7819_v44  ;;  %v3423_v18 = vld [vmem:[#allocation2 + $0x8] sm:$0xff]  ;;  %v3479_v62 = vmul.f32 %v3431_v30, %v9907_v2 }
 0x2e0   :  { %4834 = vmatprep.mubr.f32.mxu1 %v2289_v39  ;;  %5005 = vmatprep.mubr.f32.mxu0 %v2307_v10  ;;  %v3474_v10 = vmul.f32 %v3426_v0, %v9909_v23  ;;  %v3428_v39 = vld [vmem:[#allocation2 + $0x30] sm:$0xff]  ;;  %v9921_v56 = vld [vmem:[#allocation49_spill] sm:$0xff] }
 0x2e1   :  { %5275 = vmatpush3.bf16.msra.mxu0 %v7819_v44  ;;  %5177 = vmatprep.subr.bf16.mxu1 %v7828_v43  ;;  %v3471_v44 = vmul.f32 %v3423_v18, %v7617_v58  ;;  %v3435_v18 = vld [vmem:[#allocation2 + $0x68] sm:$0xff]  ;;  %v3436_v0 = vld [vmem:[#allocation2 + $0x70] sm:$0xff] }
 0x2e2   :  { %4835 = vmatmul.mubr.f32.gmra.mrb[12].mxu1 %v2299_v1  ;;  %5006 = vmatmul.mubr.f32.gmra.mrb[14].mxu0 %v2317_v37  ;;  %v9910_v37 = vld [vmem:[#allocation46_spill] sm:$0xff] }
 0x2e3   :  { %5179 = vmatpush3.bf16.msra.mxu1 %v7828_v43  ;;  %5277 = vmatprep.subr.bf16.mxu0 %v7831_v52  ;;  %v3425_v43 = vld [vmem:[#allocation2 + $0x18] sm:$0xff]  ;;  %v9911_v1 = vld [vmem:[#allocation26_spill] sm:$0xff] }
 0x2e4   :  { %4837 = vmatprep.mubr.f32.mxu1 %v2309_v20  ;;  %5040 = vmatprep.mubr.f32.mxu0 %v9898_v22  ;;  %v3473_v58 = vmul.f32 %v3425_v43, %v7489_v61  ;;  %v9899_v61 = vld [vmem:[#allocation31_spill] sm:$0xff]  ;;  %v3481_v53 = vmul.f32 %v3433_v32, %v9911_v1  ;;  %v9913_v20 = vld [vmem:[#allocation12_spill] sm:$0xff] }
 0x2e5   :  { %5279 = vmatpush3.bf16.msra.mxu0 %v7831_v52  ;;  %5181 = vmatprep.subr.bf16.mxu1 %v7833_v28  ;;  %v3422_v52 = vld [vmem:[#allocation2] sm:$0xff] }
 0x2e6   :  { %4838 = vmatmul.mubr.f32.gmra.mrb[14].mxu1 %v2319_v24  ;;  %5281 = vmatprep.subr.bf16.mxu0 %v7411_v59  ;;  %v3476_v24 = vmul.f32 %v3428_v39, %v9913_v20  ;;  %v3430_v43 = vld [vmem:[#allocation2 + $0x40] sm:$0xff] }
 0x2e7   :  { %5183 = vmatpush3.bf16.msra.mxu1 %v7833_v28  ;;  %4872 = vmatprep.mubr.f32.mxu1 %v9898_v22  ;;  %v9900_v28 = vld [vmem:[#allocation18_spill] sm:$0xff] }
 0x2e8   :  { %5041 = vmatmul.mubr.f32.vlgmr.msra.gmra.mrb[0].mxu0 %v7911_v14  ;;  %5185 = vmatprep.subr.bf16.mxu1 %v7837_v41 }
 0x2e9   :  { %5043 = vmatprep.mubr.f32.mxu0 %v7885_v5  ;;  %5283 = vmatpush3.bf16.msra.mxu0 %v7411_v59  ;;  %v3427_v59 = vld [vmem:[#allocation2 + $0x28] sm:$0xff] }
 0x2ea   :  { %3792 = vrot.lane.b32.xlu1 %v3471_v44, %s5596_s8  ;;  %4873 = vmatmul.mubr.f32.vlgmr.msra.gmra.mrb[0].mxu1 %v7911_v14  ;;  %v9914_v44 = vld [vmem:[#allocation13_spill] sm:$0xff] }
 0x2eb   :  { %5187 = vmatpush3.bf16.msra.mxu1 %v7837_v41  ;;  %5285 = vmatprep.subr.bf16.mxu0 %v7443_v15  ;;  %v5515_v41 = vld [vmem:[%s9506_s7] sm:$0xff]  ;;  %s5600_s7 = smov 2  }
 0x2ec   :  { %5044 = vmatmul.mubr.f32.gmra.mrb[2].mxu0 %v7893_v7  ;;  %4875 = vmatprep.mubr.f32.mxu1 %v7885_v5 }
 0x2ed   :  { %5046 = vmatprep.mubr.f32.mxu0 %v7898_v12  ;;  %5287 = vmatpush3.bf16.msra.mxu0 %v7443_v15  ;;  %v3475_v15 = vmul.f32 %v3427_v59, %v9899_v61  ;;  %v9917_v61 = vld [vmem:[#allocation34_spill] sm:$0xff] }
 0x2ee   :  { %5189 = vmatprep.subr.bf16.mxu1 %v7841_v16  ;;  %3796 = vrot.lane.b32.xlu1 %v3473_v58, %s5596_s8  ;;  %v9915_v58 = vld [vmem:[#allocation14_spill] sm:$0xff] }
 0x2ef   :  { %4876 = vmatmul.mubr.f32.gmra.mrb[2].mxu1 %v7893_v7  ;;  %5289 = vmatprep.subr.bf16.mxu0 %v7528_v11  ;;  %v3483_v59 = vmul.f32 %v3435_v18, %v9915_v58 }
 0x2f0   :  { %5191 = vmatpush3.bf16.msra.mxu1 %v7841_v16  ;;  %5047 = vmatmul.mubr.f32.gmra.mrb[4].mxu0 %v7896_v27  ;;  %v3470_v16 = vmul.f32 %v5515_v41, %v3422_v52  ;;  %v9916_v52 = vld [vmem:[#allocation62_spill] sm:$0xff]  ;;  %v9918_v41 = vld [vmem:[#allocation56_spill] sm:$0xff] }
 0x2f1   :  { %4878 = vmatprep.mubr.f32.mxu1 %v7898_v12  ;;  %5049 = vmatprep.mubr.f32.mxu0 %v7918_v13 }
 0x2f2   :  { %5291 = vmatpush3.bf16.msra.mxu0 %v7528_v11  ;;  %5193 = vmatprep.subr.bf16.mxu1 %v9900_v28  ;;  %v3424_v11 = vld [vmem:[#allocation2 + $0x10] sm:$0xff] }
 0x2f3   :  { %3800 = vrot.lane.b32.xlu1 %v3475_v15, %s5596_s8  ;;  %4879 = vmatmul.mubr.f32.gmra.mrb[4].mxu1 %v7896_v27  ;;  %v3472_v63 = vmul.f32 %v3424_v11, %v9905_v4  ;;  %v3478_v15 = vmul.f32 %v3430_v43, %v9917_v61  ;;  %v9920_v11 = vld [vmem:[#allocation63_spill] sm:$0xff]  ;;  %v9922_v4 = vld [vmem:[#allocation50_spill] sm:$0xff] }
 0x2f4   :  { %5195 = vmatpush3.bf16.msra.mxu1 %v9900_v28  ;;  %5050 = vmatmul.mubr.f32.gmra.mrb[6].mxu0 %v7929_v36  ;;  %v3437_v28 = vld [vmem:[#allocation2 + $0x78] sm:$0xff] }
 0x2f5   :  { %5293 = vmatprep.subr.bf16.mxu0 %v9901_v54  ;;  %3790 = vrot.lane.b32.xlu0 %v3470_v16, %s5596_s8  ;;  %v3432_v16 = vld [vmem:[#allocation2 + $0x50] sm:$0xff] }
 0x2f6   :  { %4881 = vmatprep.mubr.f32.mxu1 %v7918_v13  ;;  %5052 = vmatprep.mubr.f32.mxu0 %v9902_v29 }
 0x2f7   :  { %5295 = vmatpush3.bf16.msra.mxu0 %v9901_v54  ;;  %5197 = vmatprep.subr.bf16.mxu1 %v9904_v60  ;;  %v3485_v54 = vmul.f32 %v3437_v28, %v9919_v38  ;;  %v8261_v38 = vld [vmem:[%s9503_s4 + $0x20] sm:$0xff] }
 0x2f8   :  { %3804 = vrot.lane.b32.xlu1 %v3477_v50, %s5596_s8  ;;  %4882 = vmatmul.mubr.f32.gmra.mrb[6].mxu1 %v7929_v36  ;;  %v3480_v50 = vmul.f32 %v3432_v16, %v9921_v56 }
 0x2f9   :  { %5199 = vmatpush3.bf16.msra.mxu1 %v9904_v60  ;;  %5053 = vmatmul.mubr.f32.gmra.mrb[8].mxu0 %v7960_v48  ;;  %v3434_v60 = vld [vmem:[#allocation2 + $0x60] sm:$0xff] }
 0x2fa   :  { %5297 = vmatprep.subr.bf16.mxu0 %v9906_v21  ;;  %3794 = vrot.lane.b32.xlu0 %v3472_v63, %s5596_s8  ;;  %v9924_v63 = vld [vmem:[#allocation29_spill] sm:$0xff] }
 0x2fb   :  { %4884 = vmatprep.mubr.f32.mxu1 %v9902_v29  ;;  %5055 = vmatprep.mubr.f32.mxu0 %v7975_v35  ;;  %v3482_v30 = vmul.f32 %v3434_v60, %v9924_v63 }
 0x2fc   :  { %5299 = vmatpush3.bf16.msra.mxu0 %v9906_v21  ;;  %5201 = vmatprep.subr.bf16.mxu1 %v9908_v26  ;;  %v9925_v21 = vld [vmem:[#allocation20_spill] sm:$0xff] }
 0x2fd   :  { %3808 = vrot.lane.b32.xlu1 %v3479_v62, %s5596_s8  ;;  %4885 = vmatmul.mubr.f32.gmra.mrb[8].mxu1 %v7960_v48 }
 0x2fe   :  { %5203 = vmatpush3.bf16.msra.mxu1 %v9908_v26  ;;  %5056 = vmatmul.mubr.f32.gmra.mrb[10].mxu0 %v7986_v51 }
 0x2ff   :  { %5301 = vmatprep.subr.bf16.mxu0 %v9910_v37  ;;  %3798 = vrot.lane.b32.xlu0 %v3474_v10, %s5596_s8 }
 0x300   :  { %4887 = vmatprep.mubr.f32.mxu1 %v7975_v35  ;;  %5058 = vmatprep.mubr.f32.mxu0 %v7993_v8 }
 0x301   :  { %5303 = vmatpush3.bf16.msra.mxu0 %v9910_v37  ;;  %5205 = vmatprep.subr.bf16.mxu1 %v9912_v40  ;;  %v8247_v37 = vld [vmem:[%s9503_s4 + $0x10] sm:$0xff] }
 0x302   :  { %3812 = vrot.lane.b32.xlu1 %v3481_v53, %s5596_s8  ;;  %4888 = vmatmul.mubr.f32.gmra.mrb[10].mxu1 %v7986_v51 }
 0x303   :  { %5207 = vmatpush3.bf16.msra.mxu1 %v9912_v40  ;;  %5059 = vmatmul.mubr.f32.gmra.mrb[12].mxu0 %v8003_v55 }
 0x304   :  { %5305 = vmatprep.subr.bf16.mxu0 %v9914_v44  ;;  %3802 = vrot.lane.b32.xlu0 %v3476_v24, %s5596_s8 }
 0x305   :  { %4890 = vmatprep.mubr.f32.mxu1 %v7993_v8  ;;  %5061 = vmatprep.mubr.f32.mxu0 %v8019_v42 }
 0x306   :  { %5307 = vmatpush3.bf16.msra.mxu0 %v9914_v44  ;;  %5209 = vmatprep.subr.bf16.mxu1 %v9916_v52 }
 0x307   :  { %3816 = vrot.lane.b32.xlu1 %v3483_v59, %s5596_s8  ;;  %4891 = vmatmul.mubr.f32.gmra.mrb[12].mxu1 %v8003_v55 }
 0x308   :  { %5211 = vmatpush3.bf16.msra.mxu1 %v9916_v52  ;;  %5062 = vmatmul.mubr.f32.gmra.mrb[14].mxu0 %v8022_v19  ;;  %v8255_v52 = vld [vmem:[%s9503_s4 + $0x28] sm:$0xff] }
 0x309   :  { %5309 = vmatprep.subr.bf16.mxu0 %v9918_v41  ;;  %3806 = vrot.lane.b32.xlu0 %v3478_v15, %s5596_s8 }
 0x30a   :  { %4893 = vmatprep.mubr.f32.mxu1 %v8019_v42  ;;  %5311 = vmatpush3.bf16.msra.mxu0 %v9918_v41 }
 0x30b   :  { %5096 = vmatprep.mubr.f32.mxu0 %v9898_v22  ;;  %5213 = vmatprep.subr.bf16.mxu1 %v9920_v11  ;;  %v9923_v22 = vld [vmem:[#allocation33_spill] sm:$0xff] }
 0x30c   :  { %3820 = vrot.lane.b32.xlu1 %v3485_v54, %s5596_s8  ;;  %4894 = vmatmul.mubr.f32.gmra.mrb[14].mxu1 %v8022_v19 }
 0x30d   :  { %5215 = vmatpush3.bf16.msra.mxu1 %v9920_v11  ;;  %5097 = vmatmul.mubr.f32.vlgmr.msra.gmra.mrb[0].mxu0 %v7911_v14  ;;  %v9926_v14 = vld [vmem:[#allocation58_spill] sm:$0xff] }
 0x30e   :  { %3810 = vrot.lane.b32.xlu0 %v3480_v50, %s5596_s8  ;;  %4928 = vmatprep.mubr.f32.mxu1 %v9922_v4  ;;  %v3484_v2 = vmul.f32 %v3436_v0, %v9926_v14  ;;  %v8269_v0 = vld [vmem:[%s9503_s4 + $0x38] sm:$0xff] }
 0x30f   :  { %5099 = vmatprep.mubr.f32.mxu0 %v7885_v5 }
 0x310   :  { %4929 = vmatmul.mubr.f32.vlgmr.msra.gmra.mrb[0].mxu1 %v9923_v22 }
 0x311   :  { %5100 = vmatmul.mubr.f32.gmra.mrb[2].mxu0 %v7893_v7  ;;  %4931 = vmatprep.mubr.f32.mxu1 %v9925_v21 }
 0x312   :  { %3814 = vrot.lane.b32.xlu0 %v3482_v30, %s5596_s8  ;;  %5102 = vmatprep.mubr.f32.mxu0 %v7898_v12  ;;  %v9927_v12 = vmov 0.0  }
 0x313   :  { %111 = vst.msk [vmem:[#allocation3 + $0x8] sm:$0xff] %vm109_vm7, %v9927_v12  ;;  %110 = vst.msk [vmem:[#allocation3] sm:$0xff] %vm109_vm7, %v9927_v12 }
 0x314   :  { %4932 = vmatmul.mubr.f32.gmra.mrb[2].mxu1 %v7914_v45  ;;  %112 = vst.msk [vmem:[#allocation3 + $0x10] sm:$0xff] %vm109_vm7, %v9927_v12  ;;  %113 = vst.msk [vmem:[#allocation3 + $0x18] sm:$0xff] %vm109_vm7, %v9927_v12 }
 0x315   :  { %5103 = vmatmul.mubr.f32.gmra.mrb[4].mxu0 %v7896_v27  ;;  %4934 = vmatprep.mubr.f32.mxu1 %v7921_v6  ;;  %114 = vst.msk [vmem:[#allocation3 + $0x20] sm:$0xff] %vm109_vm7, %v9927_v12  ;;  %115 = vst.msk [vmem:[#allocation3 + $0x28] sm:$0xff] %vm109_vm7, %v9927_v12  ;;  %v2005_v27 = vpop.xlane.xlu0 %2004 }
 0x316   :  { %3818 = vrot.lane.b32.xlu0 %v3484_v2, %s5596_s8  ;;  %5105 = vmatprep.mubr.f32.mxu0 %v7918_v13  ;;  %116 = vst.msk [vmem:[#allocation3 + $0x30] sm:$0xff] %vm109_vm7, %v9927_v12  ;;  %117 = vst.msk [vmem:[#allocation3 + $0x38] sm:$0xff] %vm109_vm7, %v9927_v12 }
 0x317   :  { %118 = vst.msk [vmem:[#allocation3 + $0x40] sm:$0xff] %vm109_vm7, %v9927_v12  ;;  %119 = vst.msk [vmem:[#allocation3 + $0x48] sm:$0xff] %vm109_vm7, %v9927_v12 }
 0x318   :  { %4935 = vmatmul.mubr.f32.gmra.mrb[4].mxu1 %v7924_v57  ;;  %120 = vst.msk [vmem:[#allocation3 + $0x50] sm:$0xff] %vm109_vm7, %v9927_v12  ;;  %121 = vst.msk [vmem:[#allocation3 + $0x58] sm:$0xff] %vm109_vm7, %v9927_v12 }
 0x319   :  { %5106 = vmatmul.mubr.f32.gmra.mrb[6].mxu0 %v7929_v36  ;;  %4937 = vmatprep.mubr.f32.mxu1 %v7946_v47  ;;  %122 = vst.msk [vmem:[#allocation3 + $0x60] sm:$0xff] %vm109_vm7, %v9927_v12  ;;  %123 = vst.msk [vmem:[#allocation3 + $0x68] sm:$0xff] %vm109_vm7, %v9927_v12 }
 0x31a   :  { %5108 = vmatprep.mubr.f32.mxu0 %v9902_v29  ;;  %124 = vst.msk [vmem:[#allocation3 + $0x70] sm:$0xff] %vm109_vm7, %v9927_v12  ;;  %125 = vst.msk [vmem:[#allocation3 + $0x78] sm:$0xff] %vm109_vm7, %v9927_v12  ;;  %v8241_v29 = vld [vmem:[%s9503_s4 + $0x18] sm:$0xff] }
 0x31b   :  { %v2039_v40 = vld [vmem:[#allocation3 + $0x18] sm:$0xff]  ;;  %v2038_v44 = vld [vmem:[#allocation3 + $0x10] sm:$0xff] }
 0x31c   :  { %4938 = vmatmul.mubr.f32.gmra.mrb[6].mxu1 %v7952_v17  ;;  %v8229_v17 = vld [vmem:[%s9503_s4 + $0x8] sm:$0xff]  ;;  %v2040_v22 = vld [vmem:[#allocation3 + $0x20] sm:$0xff] }
 0x31d   :  { %5109 = vmatmul.mubr.f32.gmra.mrb[8].mxu0 %v7960_v48  ;;  %4940 = vmatprep.mubr.f32.mxu1 %v7956_v34  ;;  %v2041_v56 = vld [vmem:[#allocation3 + $0x28] sm:$0xff] }
 0x31e   :  { %5111 = vmatprep.mubr.f32.mxu0 %v7975_v35 }
 0x320   :  { %4941 = vmatmul.mubr.f32.gmra.mrb[8].mxu1 %v7980_v33 }
 0x321   :  { %5112 = vmatmul.mubr.f32.gmra.mrb[10].mxu0 %v7986_v51  ;;  %4943 = vmatprep.mubr.f32.mxu1 %v7998_v46  ;;  %v8235_v51 = vld [vmem:[%s9503_s4] sm:$0xff] }
 0x322   :  { %5114 = vmatprep.mubr.f32.mxu0 %v7993_v8  ;;  %v2052_v8 = vmul.f32 %v8235_v51, %v2005_v27 }
 0x324   :  { %4944 = vmatmul.mubr.f32.gmra.mrb[10].mxu1 %v8008_v31 }
 0x325   :  { %5115 = vmatmul.mubr.f32.gmra.mrb[12].mxu0 %v8003_v55  ;;  %4946 = vmatprep.mubr.f32.mxu1 %v8016_v25  ;;  %v2037_v55 = vld [vmem:[#allocation3 + $0x8] sm:$0xff] }
 0x326   :  { %5117 = vmatprep.mubr.f32.mxu0 %v8019_v42 }
 0x328   :  { %4947 = vmatmul.mubr.f32.gmra.mrb[12].mxu1 %v8026_v9 }
 0x329   :  { %5118 = vmatmul.mubr.f32.gmra.mrb[14].mxu0 %v8022_v19  ;;  %4949 = vmatprep.mubr.f32.mxu1 %v8037_v49  ;;  %v2036_v19 = vld [vmem:[#allocation3] sm:$0xff] }
 0x32c   :  { %4950 = vmatmul.mubr.f32.gmra.mrb[14].mxu1 %v8040_v3 }
 0x32e   :  { %v2009_v5 = vpop.xlane.xlu0 %2008 }
 0x32f   :  { %v2054_v39 = vmul.f32 %v8247_v37, %v2009_v5 }
 0x332   :  { %v2011_v45 = vpop.xlane.xlu0 %2010 }
 0x333   :  { %v2055_v62 = vmul.f32 %v8241_v29, %v2011_v45 }
 0x33a   :  { %v2015_v13 = vpop.xlane.xlu0 %2014 }
 0x33b   :  { %v2057_v61 = vmul.f32 %v8255_v52, %v2015_v13 }
 0x342   :  { %v2019_v46 = vpop.xlane.xlu0 %2018 }
 0x343   :  { %v2059_v14 = vmul.f32 %v8269_v0, %v2019_v46 }
 0x34a   :  { %v2023_v1 = vpop.xlane.xlu0 %2022 }
 0x34b   :  { %v2007_v7 = vpop.xlane.xlu1 %2006 }
 0x34c   :  { %v2053_v34 = vmul.f32 %v8229_v17, %v2007_v7  ;;  %v8275_v7 = vld [vmem:[%s9503_s4 + $0x30] sm:$0xff] }
 0x34e   :  { %v2027_v63 = vpop.xlane.xlu0 %2026 }
 0x34f   :  { %v2013_v57 = vpop.xlane.xlu1 %2012 }
 0x350   :  { %v2056_v54 = vmul.f32 %v8261_v38, %v2013_v57  ;;  %v2043_v57 = vld [vmem:[#allocation3 + $0x38] sm:$0xff] }
 0x353   :  { %v2017_v9 = vpop.xlane.xlu1 %2016 }
 0x354   :  { %v2058_v45 = vmul.f32 %v8275_v7, %v2017_v9 }
 0x358   :  { %v2021_v43 = vpop.xlane.xlu1 %2020 }
 0x35c   :  { %v2025_v13 = vpop.xlane.xlu1 %2024 }
 0x3e0   :  { %v5098_v6 = vpop.f32.mrb[0].mxu0 }
 0x3e1   :  { %v3276_v36 = vpop.f32.mrb[1].mxu0 }
 0x3e3   :  { %v4930_v47 = vpop.f32.mrb[0].mxu1 }
 0x3e4   :  { %v5312_v48 = vadd.f32 %v5098_v6, %v4930_v47  ;;  %v5101_v35 = vpop.f32.mrb[2].mxu0  ;;  %v2666_v33 = vpop.f32.mrb[1].mxu1 }
 0x3e5   :  { %v5313_v31 = vadd.f32 %v3276_v36, %v2666_v33  ;;  %v3288_v25 = vpop.f32.mrb[3].mxu0 }
 0x3e6   :  { %v3371_v42 = vsub.f32 %v2053_v34, %v5312_v48 }
 0x3e7   :  { %v3370_v49 = vsub.f32 %v2052_v8, %v5313_v31  ;;  %v4933_v3 = vpop.f32.mrb[2].mxu1  ;;  %v8285_v31 = vld [vmem:[%s9503_s4 + $0x48] sm:$0xff] }
 0x3e8   :  { %v3387_v26 = vadd.f32 %v3371_v42, %v2037_v55  ;;  %v5314_v23 = vadd.f32 %v5101_v35, %v4933_v3  ;;  %v5104_v10 = vpop.f32.mrb[4].mxu0  ;;  %v2680_v32 = vpop.f32.mrb[3].mxu1  ;;  %v2042_v35 = vld [vmem:[#allocation3 + $0x30] sm:$0xff]  ;;  %v8295_v3 = vld [vmem:[%s9503_s4 + $0x40] sm:$0xff] }
 0x3e9   :  { %v3386_v53 = vadd.f32 %v3370_v49, %v2036_v19  ;;  %v5315_v20 = vadd.f32 %v3288_v25, %v2680_v32  ;;  %v3300_v24 = vpop.f32.mrb[5].mxu0  ;;  %v2061_v25 = vmul.f32 %v8285_v31, %v2023_v1 }
 0x3ea   :  { %3404 = vst.msk [vmem:[#allocation3 + $0x8] sm:$0xff] %vm109_vm7, %v3387_v26  ;;  %v3373_v18 = vsub.f32 %v2055_v62, %v5314_v23  ;;  %v2060_v62 = vmul.f32 %v8295_v3, %v2021_v43  ;;  %v2045_v23 = vld [vmem:[#allocation3 + $0x48] sm:$0xff] }
 0x3eb   :  { %3403 = vst.msk [vmem:[#allocation3] sm:$0xff] %vm109_vm7, %v3386_v53  ;;  %v3372_v58 = vsub.f32 %v2054_v39, %v5315_v20  ;;  %v4936_v59 = vpop.f32.mrb[4].mxu1  ;;  %v2031_v39 = vpop.xlane.xlu0 %2030  ;;  %v2044_v53 = vld [vmem:[#allocation3 + $0x40] sm:$0xff] }
 0x3ec   :  { %v3389_v15 = vadd.f32 %v3373_v18, %v2039_v40  ;;  %v5316_v28 = vadd.f32 %v5104_v10, %v4936_v59  ;;  %v5107_v41 = vpop.f32.mrb[6].mxu0  ;;  %v2694_v16 = vpop.f32.mrb[5].mxu1 }
 0x3ed   :  { %v3388_v11 = vadd.f32 %v3372_v58, %v2038_v44  ;;  %v5317_v50 = vadd.f32 %v3300_v24, %v2694_v16  ;;  %v3312_v60 = vpop.f32.mrb[7].mxu0  ;;  %v2029_v20 = vpop.xlane.xlu1 %2028  ;;  %v8305_v44 = vld [vmem:[%s9503_s4 + $0x58] sm:$0xff] }
 0x3ee   :  { %3406 = vst.msk [vmem:[#allocation3 + $0x18] sm:$0xff] %vm109_vm7, %v3389_v15  ;;  %v3375_v4 = vsub.f32 %v2057_v61, %v5316_v28  ;;  %v2063_v43 = vmul.f32 %v8305_v44, %v2027_v63  ;;  %v8315_v28 = vld [vmem:[%s9503_s4 + $0x50] sm:$0xff]  ;;  %v8323_v63 = vld [vmem:[%s9503_s4 + $0x68] sm:$0xff] }
 0x3ef   :  { %3405 = vst.msk [vmem:[#allocation3 + $0x10] sm:$0xff] %vm109_vm7, %v3388_v11  ;;  %v3374_v30 = vsub.f32 %v2056_v54, %v5317_v50  ;;  %v4939_v21 = vpop.f32.mrb[6].mxu1  ;;  %v2047_v54 = vld [vmem:[#allocation3 + $0x58] sm:$0xff] }
 0x3f0   :  { %v3391_v2 = vadd.f32 %v3375_v4, %v2041_v56  ;;  %v5318_v12 = vadd.f32 %v5107_v41, %v4939_v21  ;;  %v5110_v27 = vpop.f32.mrb[8].mxu0  ;;  %v2708_v5 = vpop.f32.mrb[7].mxu1  ;;  %v2062_v41 = vmul.f32 %v8315_v28, %v2025_v13 }
 0x3f1   :  { %v3390_v6 = vadd.f32 %v3374_v30, %v2040_v22  ;;  %v5319_v36 = vadd.f32 %v3312_v60, %v2708_v5  ;;  %v3324_v47 = vpop.f32.mrb[9].mxu0  ;;  %v3439_v34 = vld [vmem:[#allocation3 + $0x8] sm:$0xff]  ;;  %v2046_v60 = vld [vmem:[#allocation3 + $0x50] sm:$0xff]  ;;  %v2065_v30 = vmul.f32 %v8323_v63, %v2031_v39 }
 0x3f2   :  { %3408 = vst.msk [vmem:[#allocation3 + $0x28] sm:$0xff] %vm109_vm7, %v3391_v2  ;;  %v3377_v48 = vsub.f32 %v2059_v14, %v5318_v12  ;;  %v8279_v33 = vsub.f32 0.0, %v3439_v34  ;;  %v3438_v55 = vld [vmem:[#allocation3] sm:$0xff] }
 0x3f3   :  { %3407 = vst.msk [vmem:[#allocation3 + $0x20] sm:$0xff] %vm109_vm7, %v3390_v6  ;;  %v3376_v8 = vsub.f32 %v2058_v45, %v5319_v36  ;;  %v4942_v46 = vpop.f32.mrb[8].mxu1  ;;  %v8299_v40 = vsub.f32 0.0, %v3438_v55  ;;  %v2035_v45 = vpop.xlane.xlu0 %2034  ;;  %v2049_v6 = vld [vmem:[#allocation3 + $0x68] sm:$0xff] }
 0x3f4   :  { %v3393_v42 = vadd.f32 %v3377_v48, %v2043_v57  ;;  %v5320_v19 = vadd.f32 %v5110_v27, %v4942_v46  ;;  %v5113_v9 = vpop.f32.mrb[10].mxu0  ;;  %v2722_v49 = vpop.f32.mrb[9].mxu1  ;;  %3584 = vrot.lane.b32.xlu1 %v8279_v33, %s5597_s24  ;;  %3520 = vrot.lane.b32.xlu0 %v8279_v33, %s5598_s25  ;;  %v8333_v27 = vld [vmem:[%s9503_s4 + $0x60] sm:$0xff]  ;;  %v8341_v46 = vld [vmem:[%s9503_s4 + $0x78] sm:$0xff]  ;;  %v8357_v39 = vmul.f32 %v8229_v17, %v8279_v33 }
 0x3f5   :  { %v3392_v26 = vadd.f32 %v3376_v8, %v2042_v35  ;;  %v5321_v10 = vadd.f32 %v3324_v47, %v2722_v49  ;;  %v3336_v32 = vpop.f32.mrb[11].mxu0  ;;  %v2064_v5 = vmul.f32 %v8333_v27, %v2029_v20  ;;  %v2033_v47 = vpop.xlane.xlu1 %2032  ;;  %v2048_v48 = vld [vmem:[#allocation3 + $0x60] sm:$0xff]  ;;  %v2067_v55 = vmul.f32 %v8341_v46, %v2035_v45 }
 0x3f6   :  { %3410 = vst.msk [vmem:[#allocation3 + $0x38] sm:$0xff] %vm109_vm7, %v3393_v42  ;;  %v3379_v1 = vsub.f32 %v2061_v25, %v5320_v19  ;;  %9928 = vst [vmem:[#allocation37_spill] sm:$0xff] %v8357_v39 }
 0x3f7   :  { %3409 = vst.msk [vmem:[#allocation3 + $0x30] sm:$0xff] %vm109_vm7, %v3392_v26  ;;  %v3378_v24 = vsub.f32 %v2060_v62, %v5321_v10  ;;  %v4945_v18 = vpop.f32.mrb[10].mxu1  ;;  %v2051_v26 = vld [vmem:[#allocation3 + $0x78] sm:$0xff] }
 0x3f8   :  { %v3395_v58 = vadd.f32 %v3379_v1, %v2045_v23  ;;  %v5322_v59 = vadd.f32 %v5113_v9, %v4945_v18  ;;  %v5116_v61 = vpop.f32.mrb[12].mxu0  ;;  %v2736_v15 = vpop.f32.mrb[11].mxu1  ;;  %3648 = vrot.lane.b32.xlu1 %v8279_v33, %s5599_s28  ;;  %3582 = vrot.lane.b32.xlu0 %v8299_v40, %s5597_s24  ;;  %v8351_v9 = vld [vmem:[%s9503_s4 + $0x70] sm:$0xff]  ;;  %v8361_v1 = vmul.f32 %v8235_v51, %v8299_v40 }
 0x3f9   :  { %v3394_v16 = vadd.f32 %v3378_v24, %v2044_v53  ;;  %v5323_v11 = vadd.f32 %v3336_v32, %v2736_v15  ;;  %v3348_v56 = vpop.f32.mrb[13].mxu0  ;;  %v2066_v49 = vmul.f32 %v8351_v9, %v2033_v47  ;;  %v2050_v32 = vld [vmem:[#allocation3 + $0x70] sm:$0xff] }
 0x3fa   :  { %3412 = vst.msk [vmem:[#allocation3 + $0x48] sm:$0xff] %vm109_vm7, %v3395_v58  ;;  %v3381_v50 = vsub.f32 %v2063_v43, %v5322_v59  ;;  %9929 = vst [vmem:[#allocation52_spill] sm:$0xff] %v8361_v1  ;;  %v3440_v18 = vld [vmem:[#allocation3 + $0x10] sm:$0xff]  ;;  %v3442_v59 = vld [vmem:[#allocation3 + $0x20] sm:$0xff] }
 0x3fb   :  { %3411 = vst.msk [vmem:[#allocation3 + $0x40] sm:$0xff] %vm109_vm7, %v3394_v16  ;;  %v3380_v4 = vsub.f32 %v2062_v41, %v5323_v11  ;;  %v4948_v22 = vpop.f32.mrb[12].mxu1  ;;  %v3456_v43 = vsub.f32 0.0, %v3440_v18  ;;  %v3458_v15 = vsub.f32 0.0, %v3442_v59  ;;  %v3443_v41 = vld [vmem:[#allocation3 + $0x28] sm:$0xff] }
 0x3fc   :  { %v3397_v21 = vadd.f32 %v3381_v50, %v2047_v54  ;;  %v5324_v14 = vadd.f32 %v5116_v61, %v4948_v22  ;;  %v5119_v2 = vpop.f32.mrb[14].mxu0  ;;  %v2750_v12 = vpop.f32.mrb[13].mxu1  ;;  %3712 = vrot.lane.b32.xlu1 %v8279_v33, %s5600_s7  ;;  %3646 = vrot.lane.b32.xlu0 %v8299_v40, %s5599_s28  ;;  %v3441_v33 = vld [vmem:[#allocation3 + $0x18] sm:$0xff]  ;;  %v3459_v16 = vsub.f32 0.0, %v3443_v41 }
 0x3fd   :  { %v3396_v13 = vadd.f32 %v3380_v4, %v2046_v60  ;;  %v5325_v57 = vadd.f32 %v3348_v56, %v2750_v12  ;;  %v3360_v36 = vpop.f32.mrb[15].mxu0  ;;  %v8381_v58 = vmul.f32 %v8247_v37, %v3456_v43  ;;  %v8403_v54 = vmul.f32 %v8261_v38, %v3458_v15  ;;  %v8414_v60 = vpop.permute.xlu1 %3792  ;;  %v3445_v22 = vld [vmem:[#allocation3 + $0x38] sm:$0xff] }
 0x3fe   :  { %3414 = vst.msk [vmem:[#allocation3 + $0x58] sm:$0xff] %vm109_vm7, %v3397_v21  ;;  %v3383_v34 = vsub.f32 %v2065_v30, %v5324_v14  ;;  %v3444_v11 = vld [vmem:[#allocation3 + $0x30] sm:$0xff]  ;;  %v8412_v56 = vmul.f32 %v8255_v52, %v3459_v16  ;;  %9934 = vst [vmem:[#allocation27_spill] sm:$0xff] %v8414_v60  ;;  %v8416_v4 = vpop.permute.xlu0 %3790  ;;  %v3461_v14 = vsub.f32 0.0, %v3445_v22 }
 0x3ff   :  { %3413 = vst.msk [vmem:[#allocation3 + $0x50] sm:$0xff] %vm109_vm7, %v3396_v13  ;;  %v3382_v35 = vsub.f32 %v2064_v5, %v5325_v57  ;;  %v4951_v8 = vpop.f32.mrb[14].mxu1  ;;  %9930 = vst [vmem:[#allocation40_spill] sm:$0xff] %v8381_v58  ;;  %v3460_v50 = vsub.f32 0.0, %v3444_v11 }
 0x400   :  { %v3399_v25 = vadd.f32 %v3383_v34, %v2049_v6  ;;  %v5326_v42 = vadd.f32 %v5119_v2, %v4951_v8  ;;  %v2764_v19 = vpop.f32.mrb[15].mxu1  ;;  %3518 = vrot.lane.b32.xlu1 %v8299_v40, %s5598_s25  ;;  %3710 = vrot.lane.b32.xlu0 %v8299_v40, %s5600_s7  ;;  %v3457_v40 = vsub.f32 0.0, %v3441_v33  ;;  %9932 = vst [vmem:[#allocation22_spill] sm:$0xff] %v8403_v54  ;;  %9933 = vst [vmem:[#allocation45_spill] sm:$0xff] %v8412_v56 }
 0x401   :  { %v3398_v62 = vadd.f32 %v3382_v35, %v2048_v48  ;;  %v5327_v23 = vadd.f32 %v3360_v36, %v2764_v19  ;;  %9935 = vst [vmem:[#allocation36_spill] sm:$0xff] %v8416_v4  ;;  %v8424_v30 = vpop.permute.xlu1 %3796  ;;  %v8437_v5 = vmul.f32 %v8275_v7, %v3460_v50  ;;  %v8450_v57 = vmul.f32 %v8269_v0, %v3461_v14  ;;  %v3447_v48 = vld [vmem:[#allocation3 + $0x48] sm:$0xff] }
 0x402   :  { %3416 = vst.msk [vmem:[#allocation3 + $0x68] sm:$0xff] %vm109_vm7, %v3399_v25  ;;  %v3385_v10 = vsub.f32 %v2067_v55, %v5326_v42  ;;  %v8390_v61 = vmul.f32 %v8241_v29, %v3457_v40  ;;  %v8426_v21 = vpop.permute.xlu0 %3794  ;;  %v3446_v6 = vld [vmem:[#allocation3 + $0x40] sm:$0xff]  ;;  %v3463_v55 = vsub.f32 0.0, %v3447_v48 }
 0x403   :  { %3415 = vst.msk [vmem:[#allocation3 + $0x60] sm:$0xff] %vm109_vm7, %v3398_v62  ;;  %v3384_v53 = vsub.f32 %v2066_v49, %v5327_v23  ;;  %9936 = vst [vmem:[#allocation25_spill] sm:$0xff] %v8437_v5  ;;  %v3462_v36 = vsub.f32 0.0, %v3446_v6 }
 0x404   :  { %v3401_v20 = vadd.f32 %v3385_v10, %v2051_v26  ;;  %3856 = vrot.lane.b32.xlu1 %v8357_v39, %s5601_s16  ;;  %3854 = vrot.lane.b32.xlu0 %v8361_v1, %s5601_s16  ;;  %9931 = vst [vmem:[#allocation16_spill] sm:$0xff] %v8390_v61  ;;  %9939 = vst [vmem:[#allocation38_spill] sm:$0xff] %v8450_v57 }
 0x405   :  { %v3400_v24 = vadd.f32 %v3384_v53, %v2050_v32  ;;  %v8430_v2 = vpop.permute.xlu1 %3800  ;;  %v8475_v19 = vmul.f32 %v8295_v3, %v3462_v36  ;;  %v8492_v32 = vmul.f32 %v8285_v31, %v3463_v55  ;;  %v3449_v33 = vld [vmem:[#allocation3 + $0x58] sm:$0xff] }
 0x406   :  { %3418 = vst.msk [vmem:[#allocation3 + $0x78] sm:$0xff] %vm109_vm7, %v3401_v20  ;;  %v8432_v12 = vpop.permute.xlu0 %3798  ;;  %v3448_v26 = vld [vmem:[#allocation3 + $0x50] sm:$0xff] }
 0x407   :  { %3417 = vst.msk [vmem:[#allocation3 + $0x70] sm:$0xff] %vm109_vm7, %v3400_v24  ;;  %9946 = vst [vmem:[#allocation47_spill] sm:$0xff] %v8475_v19  ;;  %v3464_v53 = vsub.f32 0.0, %v3448_v26 }
 0x408   :  { %4096 = vrot.lane.b32.xlu1 %v8357_v39, %s5602_s17  ;;  %4094 = vrot.lane.b32.xlu0 %v8361_v1, %s5602_s17  ;;  %9949 = vst [vmem:[#allocation55_spill] sm:$0xff] %v8492_v32 }
 0x409   :  { %v8442_v45 = vpop.permute.xlu1 %3804  ;;  %v8521_v11 = vmul.f32 %v8315_v28, %v3464_v53 }
 0x40a   :  { %9937 = vst [vmem:[#allocation19_spill] sm:$0xff] %v8442_v45  ;;  %v8444_v13 = vpop.permute.xlu0 %3802 }
 0x40b   :  { %9938 = vst [vmem:[#allocation17_spill] sm:$0xff] %v8444_v13  ;;  %9954 = vst [vmem:[#allocation23_spill] sm:$0xff] %v8521_v11 }
 0x40c   :  { %3524 = vrot.lane.b32.xlu1 %v3457_v40, %s5598_s25  ;;  %3586 = vrot.lane.b32.xlu0 %v3456_v43, %s5597_s24 }
 0x40d   :  { %v8452_v47 = vpop.permute.xlu1 %3808 }
 0x40e   :  { %9940 = vst [vmem:[#allocation30_spill] sm:$0xff] %v8452_v47  ;;  %v8454_v34 = vpop.permute.xlu0 %3806 }
 0x40f   :  { %9941 = vst [vmem:[#allocation41_spill] sm:$0xff] %v8454_v34 }
 0x410   :  { %3588 = vrot.lane.b32.xlu1 %v3457_v40, %s5597_s24  ;;  %3650 = vrot.lane.b32.xlu0 %v3456_v43, %s5599_s28 }
 0x411   :  { %v8462_v35 = vpop.permute.xlu1 %3812 }
 0x412   :  { %9942 = vst [vmem:[#allocation48_spill] sm:$0xff] %v8462_v35  ;;  %v8464_v8 = vpop.permute.xlu0 %3810 }
 0x413   :  { %9943 = vst [vmem:[#allocation51_spill] sm:$0xff] %v8464_v8 }
 0x414   :  { %3652 = vrot.lane.b32.xlu1 %v3457_v40, %s5599_s28  ;;  %3714 = vrot.lane.b32.xlu0 %v3456_v43, %s5600_s7 }
 0x415   :  { %v8468_v25 = vpop.permute.xlu1 %3816 }
 0x416   :  { %9944 = vst [vmem:[#allocation54_spill] sm:$0xff] %v8468_v25  ;;  %v8470_v42 = vpop.permute.xlu0 %3814 }
 0x417   :  { %9945 = vst [vmem:[#allocation28_spill] sm:$0xff] %v8470_v42 }
 0x418   :  { %3716 = vrot.lane.b32.xlu1 %v3457_v40, %s5600_s7  ;;  %3858 = vrot.lane.b32.xlu0 %v8381_v58, %s5601_s16 }
 0x419   :  { %v8480_v49 = vpop.permute.xlu1 %3820 }
 0x41a   :  { %9947 = vst [vmem:[#allocation24_spill] sm:$0xff] %v8480_v49  ;;  %v8482_v62 = vpop.permute.xlu0 %3818 }
 0x41b   :  { %9948 = vst [vmem:[#allocation53_spill] sm:$0xff] %v8482_v62  ;;  %v3452_v62 = vld [vmem:[#allocation3 + $0x70] sm:$0xff] }
 0x41c   :  { %3522 = vrot.lane.b32.xlu1 %v3456_v43, %s5598_s25  ;;  %4098 = vrot.lane.b32.xlu0 %v8381_v58, %s5602_s17  ;;  %v3465_v43 = vsub.f32 0.0, %v3449_v33  ;;  %v3451_v33 = vld [vmem:[#allocation3 + $0x68] sm:$0xff] }
 0x41e   :  { %v8538_v48 = vmul.f32 %v8305_v44, %v3465_v43 }
 0x420   :  { %3860 = vrot.lane.b32.xlu1 %v8390_v61, %s5601_s16  ;;  %3526 = vrot.lane.b32.xlu0 %v3458_v15, %s5598_s25  ;;  %9957 = vst [vmem:[#allocation59_spill] sm:$0xff] %v8538_v48 }
 0x424   :  { %4100 = vrot.lane.b32.xlu1 %v8390_v61, %s5602_s17  ;;  %3590 = vrot.lane.b32.xlu0 %v3458_v15, %s5597_s24 }
 0x428   :  { %3528 = vrot.lane.b32.xlu1 %v3459_v16, %s5598_s25  ;;  %3654 = vrot.lane.b32.xlu0 %v3458_v15, %s5599_s28 }
 0x42c   :  { %3592 = vrot.lane.b32.xlu1 %v3459_v16, %s5597_s24  ;;  %3718 = vrot.lane.b32.xlu0 %v3458_v15, %s5600_s7 }
 0x430   :  { %3656 = vrot.lane.b32.xlu1 %v3459_v16, %s5599_s28  ;;  %3862 = vrot.lane.b32.xlu0 %v8403_v54, %s5601_s16 }
 0x434   :  { %3720 = vrot.lane.b32.xlu1 %v3459_v16, %s5600_s7  ;;  %4102 = vrot.lane.b32.xlu0 %v8403_v54, %s5602_s17 }
 0x438   :  { %3864 = vrot.lane.b32.xlu1 %v8412_v56, %s5601_s16  ;;  %3530 = vrot.lane.b32.xlu0 %v3460_v50, %s5598_s25 }
 0x43c   :  { %4104 = vrot.lane.b32.xlu1 %v8412_v56, %s5602_s17  ;;  %3594 = vrot.lane.b32.xlu0 %v3460_v50, %s5597_s24 }
 0x440   :  { %3532 = vrot.lane.b32.xlu1 %v3461_v14, %s5598_s25  ;;  %3658 = vrot.lane.b32.xlu0 %v3460_v50, %s5599_s28 }
 0x444   :  { %3596 = vrot.lane.b32.xlu1 %v3461_v14, %s5597_s24  ;;  %3722 = vrot.lane.b32.xlu0 %v3460_v50, %s5600_s7 }
 0x448   :  { %3660 = vrot.lane.b32.xlu1 %v3461_v14, %s5599_s28  ;;  %3866 = vrot.lane.b32.xlu0 %v8437_v5, %s5601_s16 }
 0x44c   :  { %3724 = vrot.lane.b32.xlu1 %v3461_v14, %s5600_s7  ;;  %4106 = vrot.lane.b32.xlu0 %v8437_v5, %s5602_s17  ;;  %v3450_v14 = vld [vmem:[#allocation3 + $0x60] sm:$0xff] }
 0x450   :  { %3868 = vrot.lane.b32.xlu1 %v8450_v57, %s5601_s16  ;;  %3534 = vrot.lane.b32.xlu0 %v3462_v36, %s5598_s25 }
 0x454   :  { %4108 = vrot.lane.b32.xlu1 %v8450_v57, %s5602_s17  ;;  %3598 = vrot.lane.b32.xlu0 %v3462_v36, %s5597_s24  ;;  %v3453_v57 = vld [vmem:[#allocation3 + $0x78] sm:$0xff] }
 0x458   :  { %3536 = vrot.lane.b32.xlu1 %v3463_v55, %s5598_s25  ;;  %3662 = vrot.lane.b32.xlu0 %v3462_v36, %s5599_s28 }
 0x45c   :  { %3600 = vrot.lane.b32.xlu1 %v3463_v55, %s5597_s24  ;;  %3726 = vrot.lane.b32.xlu0 %v3462_v36, %s5600_s7 }
 0x460   :  { %3664 = vrot.lane.b32.xlu1 %v3463_v55, %s5599_s28  ;;  %3870 = vrot.lane.b32.xlu0 %v8475_v19, %s5601_s16 }
 0x464   :  { %3728 = vrot.lane.b32.xlu1 %v3463_v55, %s5600_s7  ;;  %4110 = vrot.lane.b32.xlu0 %v8475_v19, %s5602_s17  ;;  %v3466_v55 = vsub.f32 0.0, %v3450_v14  ;;  %v3467_v14 = vsub.f32 0.0, %v3451_v33 }
 0x466   :  { %v8487_v23 = vpop.permute.xlu1 %3584  ;;  %v8489_v10 = vpop.permute.xlu0 %3520  ;;  %v8567_v4 = vmul.f32 %v8333_v27, %v3466_v55 }
 0x468   :  { %3872 = vrot.lane.b32.xlu1 %v8492_v32, %s5601_s16  ;;  %3538 = vrot.lane.b32.xlu0 %v3464_v53, %s5598_s25  ;;  %9958 = vst [vmem:[#allocation43_spill] sm:$0xff] %v8567_v4 }
 0x46a   :  { %v8497_v20 = vpop.permute.xlu1 %3648  ;;  %v8499_v24 = vpop.permute.xlu0 %3582 }
 0x46b   :  { %9950 = vst [vmem:[#allocation42_spill] sm:$0xff] %v8497_v20  ;;  %v3630_v58 = vmul.f32 %v8235_v51, %v8499_v24 }
 0x46c   :  { %4112 = vrot.lane.b32.xlu1 %v8492_v32, %s5602_s17  ;;  %3602 = vrot.lane.b32.xlu0 %v3464_v53, %s5597_s24 }
 0x46e   :  { %v8504_v18 = vpop.permute.xlu1 %3712  ;;  %v8506_v40 = vpop.permute.xlu0 %3646 }
 0x46f   :  { %9951 = vst [vmem:[#allocation21_spill] sm:$0xff] %v8506_v40 }
 0x470   :  { %3540 = vrot.lane.b32.xlu1 %v3465_v43, %s5598_s25  ;;  %3666 = vrot.lane.b32.xlu0 %v3464_v53, %s5599_s28 }
 0x472   :  { %v8510_v59 = vpop.permute.xlu1 %3518  ;;  %v8512_v15 = vpop.permute.xlu0 %3710 }
 0x473   :  { %v3566_v61 = vmul.f32 %v8235_v51, %v8510_v59  ;;  %v3567_v59 = vmul.f32 %v8229_v17, %v8489_v10  ;;  %v8669_v10 = vmul.f32 %v8229_v17, %v8497_v20 }
 0x474   :  { %3604 = vrot.lane.b32.xlu1 %v3465_v43, %s5597_s24  ;;  %3730 = vrot.lane.b32.xlu0 %v3464_v53, %s5600_s7 }
 0x476   :  { %v8516_v41 = vpop.permute.xlu1 %3856  ;;  %v8518_v16 = vpop.permute.xlu0 %3854 }
 0x477   :  { %9952 = vst [vmem:[#allocation31_spill] sm:$0xff] %v8516_v41  ;;  %9953 = vst [vmem:[#allocation18_spill] sm:$0xff] %v8518_v16 }
 0x478   :  { %3668 = vrot.lane.b32.xlu1 %v3465_v43, %s5599_s28  ;;  %3874 = vrot.lane.b32.xlu0 %v8521_v11, %s5601_s16 }
 0x47a   :  { %v8526_v50 = vpop.permute.xlu1 %4096  ;;  %v8528_v22 = vpop.permute.xlu0 %4094 }
 0x47b   :  { %9955 = vst [vmem:[#allocation15_spill] sm:$0xff] %v8526_v50  ;;  %9956 = vst [vmem:[#allocation32_spill] sm:$0xff] %v8528_v22 }
 0x47c   :  { %3732 = vrot.lane.b32.xlu1 %v3465_v43, %s5600_s7  ;;  %4114 = vrot.lane.b32.xlu0 %v8521_v11, %s5602_s17 }
 0x47e   :  { %v8533_v6 = vpop.permute.xlu1 %3524  ;;  %v8535_v36 = vpop.permute.xlu0 %3586 }
 0x480   :  { %3876 = vrot.lane.b32.xlu1 %v8538_v48, %s5601_s16  ;;  %3542 = vrot.lane.b32.xlu0 %v3466_v55, %s5598_s25 }
 0x482   :  { %v8543_v26 = vpop.permute.xlu1 %3588  ;;  %v8545_v53 = vpop.permute.xlu0 %3650 }
 0x484   :  { %4116 = vrot.lane.b32.xlu1 %v8538_v48, %s5602_s17  ;;  %3606 = vrot.lane.b32.xlu0 %v3466_v55, %s5597_s24  ;;  %v3468_v48 = vsub.f32 0.0, %v3452_v62  ;;  %v3469_v62 = vsub.f32 0.0, %v3453_v57 }
 0x486   :  { %v8550_v50 = vpop.permute.xlu1 %3652  ;;  %v8552_v43 = vpop.permute.xlu0 %3714  ;;  %v8613_v8 = vmul.f32 %v8351_v9, %v3468_v48  ;;  %v8632_v39 = vmul.f32 %v8341_v46, %v3469_v62 }
 0x488   :  { %3544 = vrot.lane.b32.xlu1 %v3467_v14, %s5598_s25  ;;  %3670 = vrot.lane.b32.xlu0 %v3466_v55, %s5599_s28  ;;  %9960 = vst [vmem:[#allocation39_spill] sm:$0xff] %v8613_v8  ;;  %9961 = vst [vmem:[#allocation60_spill] sm:$0xff] %v8632_v39 }
 0x48a   :  { %v8556_v41 = vpop.permute.xlu1 %3716  ;;  %v8558_v60 = vpop.permute.xlu0 %3858 }
 0x48c   :  { %3608 = vrot.lane.b32.xlu1 %v3467_v14, %s5597_s24  ;;  %3734 = vrot.lane.b32.xlu0 %v3466_v55, %s5600_s7  ;;  %v8584_v55 = vmul.f32 %v8323_v63, %v3467_v14 }
 0x48e   :  { %v8562_v22 = vpop.permute.xlu1 %3522  ;;  %v8564_v16 = vpop.permute.xlu0 %4098  ;;  %9959 = vst [vmem:[#allocation35_spill] sm:$0xff] %v8584_v55 }
 0x490   :  { %3672 = vrot.lane.b32.xlu1 %v3467_v14, %s5599_s28  ;;  %3878 = vrot.lane.b32.xlu0 %v8567_v4, %s5601_s16 }
 0x492   :  { %v8572_v33 = vpop.permute.xlu1 %3860  ;;  %v8574_v49 = vpop.permute.xlu0 %3526 }
 0x494   :  { %3736 = vrot.lane.b32.xlu1 %v3467_v14, %s5600_s7  ;;  %4118 = vrot.lane.b32.xlu0 %v8567_v4, %s5602_s17 }
 0x496   :  { %v8579_v25 = vpop.permute.xlu1 %4100  ;;  %v8581_v42 = vpop.permute.xlu0 %3590 }
 0x498   :  { %3880 = vrot.lane.b32.xlu1 %v8584_v55, %s5601_s16  ;;  %3546 = vrot.lane.b32.xlu0 %v3468_v48, %s5598_s25 }
 0x49a   :  { %v8589_v32 = vpop.permute.xlu1 %3528  ;;  %v8591_v11 = vpop.permute.xlu0 %3654 }
 0x49c   :  { %4120 = vrot.lane.b32.xlu1 %v8584_v55, %s5602_s17  ;;  %3610 = vrot.lane.b32.xlu0 %v3468_v48, %s5597_s24 }
 0x49e   :  { %v8596_v4 = vpop.permute.xlu1 %3592  ;;  %v8598_v14 = vpop.permute.xlu0 %3718 }
 0x4a0   :  { %3548 = vrot.lane.b32.xlu1 %v3469_v62, %s5598_s25  ;;  %3674 = vrot.lane.b32.xlu0 %v3468_v48, %s5599_s28 }
 0x4a2   :  { %v8602_v35 = vpop.permute.xlu1 %3656  ;;  %v8604_v19 = vpop.permute.xlu0 %3862 }
 0x4a4   :  { %3612 = vrot.lane.b32.xlu1 %v3469_v62, %s5597_s24  ;;  %3738 = vrot.lane.b32.xlu0 %v3468_v48, %s5600_s7 }
 0x4a6   :  { %v8608_v55 = vpop.permute.xlu1 %3720  ;;  %v8610_v56 = vpop.permute.xlu0 %4102 }
 0x4a8   :  { %3676 = vrot.lane.b32.xlu1 %v3469_v62, %s5599_s28  ;;  %3882 = vrot.lane.b32.xlu0 %v8613_v8, %s5601_s16 }
 0x4aa   :  { %v8618_v57 = vpop.permute.xlu1 %3864  ;;  %v8620_v5 = vpop.permute.xlu0 %3530 }
 0x4ac   :  { %3740 = vrot.lane.b32.xlu1 %v3469_v62, %s5600_s7  ;;  %4122 = vrot.lane.b32.xlu0 %v8613_v8, %s5602_s17  ;;  %v8650_v62 = vmul.f32 %v8235_v51, %v8506_v40  ;;  %v3758_v40 = vmul.f32 %v8235_v51, %v8512_v15  ;;  %v3759_v51 = vmul.f32 %v8229_v17, %v8504_v18 }
 0x4ad   :  { %v3632_v15 = vmul.f32 %v8247_v37, %v8535_v36  ;;  %v3633_v18 = vmul.f32 %v8241_v29, %v8543_v26  ;;  %v3570_v26 = vmul.f32 %v8261_v38, %v8574_v49  ;;  %v3571_v49 = vmul.f32 %v8255_v52, %v8589_v32 }
 0x4ae   :  { %v8627_v54 = vpop.permute.xlu1 %4104  ;;  %v8629_v48 = vpop.permute.xlu0 %3594  ;;  %v3762_v32 = vmul.f32 %v8261_v38, %v8598_v14 }
 0x4b0   :  { %3884 = vrot.lane.b32.xlu1 %v8632_v39, %s5601_s16  ;;  %3918 = vrot.lane.b32.xlu0 %v3566_v61, %s5603_s18 }
 0x4b2   :  { %v8639_v8 = vpop.permute.xlu1 %3532  ;;  %v8641_v47 = vpop.permute.xlu0 %3658 }
 0x4b4   :  { %4124 = vrot.lane.b32.xlu1 %v8632_v39, %s5602_s17  ;;  %3982 = vrot.lane.b32.xlu0 %v3630_v58, %s5604_s19  ;;  %v3631_v39 = vmul.f32 %v8229_v17, %v8487_v23 }
 0x4b6   :  { %v8652_v1 = vpop.permute.xlu1 %3596  ;;  %v8654_v24 = vpop.permute.xlu0 %3722 }
 0x4b8   :  { %3920 = vrot.lane.b32.xlu1 %v3567_v59, %s5603_s18  ;;  %4046 = vrot.lane.b32.xlu0 %v8650_v62, %s5604_s19 }
 0x4ba   :  { %v8661_v58 = vpop.permute.xlu1 %3660  ;;  %v8663_v34 = vpop.permute.xlu0 %3866 }
 0x4bb   :  { %9962 = vst [vmem:[#allocation44_spill] sm:$0xff] %v8661_v58  ;;  %9963 = vst [vmem:[#allocation46_spill] sm:$0xff] %v8663_v34 }
 0x4bc   :  { %3984 = vrot.lane.b32.xlu1 %v3631_v39, %s5604_s19  ;;  %4142 = vrot.lane.b32.xlu0 %v3566_v61, %s5605_s20  ;;  %v3568_v39 = vmul.f32 %v8247_v37, %v8562_v22  ;;  %v3569_v22 = vmul.f32 %v8241_v29, %v8533_v6  ;;  %v8721_v6 = vmul.f32 %v8241_v29, %v8550_v50 }
 0x4be   :  { %v8673_v45 = vpop.permute.xlu1 %3724  ;;  %v8675_v13 = vpop.permute.xlu0 %4106 }
 0x4bf   :  { %9964 = vst [vmem:[#allocation26_spill] sm:$0xff] %v8675_v13 }
 0x4c0   :  { %4048 = vrot.lane.b32.xlu1 %v8669_v10, %s5604_s19  ;;  %4206 = vrot.lane.b32.xlu0 %v3758_v40, %s5605_s20 }
 0x4c2   :  { %v8682_v61 = vpop.permute.xlu1 %3868  ;;  %v8684_v23 = vpop.permute.xlu0 %3534 }
 0x4c3   :  { %9965 = vst [vmem:[#allocation61_spill] sm:$0xff] %v8682_v61 }
 0x4c4   :  { %4144 = vrot.lane.b32.xlu1 %v3567_v59, %s5605_s20  ;;  %3922 = vrot.lane.b32.xlu0 %v3568_v39, %s5603_s18  ;;  %v8702_v59 = vmul.f32 %v8247_v37, %v8545_v53 }
 0x4c6   :  { %v8692_v20 = vpop.permute.xlu1 %4108  ;;  %v8694_v40 = vpop.permute.xlu0 %3598 }
 0x4c7   :  { %9966 = vst [vmem:[#allocation12_spill] sm:$0xff] %v8692_v20  ;;  %v3638_v34 = vmul.f32 %v8295_v3, %v8694_v40 }
 0x4c8   :  { %4208 = vrot.lane.b32.xlu1 %v3759_v51, %s5605_s20  ;;  %3986 = vrot.lane.b32.xlu0 %v3632_v15, %s5604_s19  ;;  %v3760_v15 = vmul.f32 %v8247_v37, %v8552_v43  ;;  %v3761_v37 = vmul.f32 %v8241_v29, %v8556_v41  ;;  %v3634_v43 = vmul.f32 %v8261_v38, %v8581_v42 }
 0x4c9   :  { %v3635_v42 = vmul.f32 %v8255_v52, %v8596_v4  ;;  %v3572_v4 = vmul.f32 %v8275_v7, %v8620_v5  ;;  %v8800_v5 = vmul.f32 %v8275_v7, %v8641_v47 }
 0x4ca   :  { %v8704_v13 = vpop.permute.xlu1 %3536  ;;  %v8706_v17 = vpop.permute.xlu0 %3662 }
 0x4cb   :  { %9967 = vst [vmem:[#allocation13_spill] sm:$0xff] %v8706_v17 }
 0x4cc   :  { %3924 = vrot.lane.b32.xlu1 %v3569_v22, %s5603_s18  ;;  %4050 = vrot.lane.b32.xlu0 %v8702_v59, %s5604_s19 }
 0x4ce   :  { %v8713_v36 = vpop.permute.xlu1 %3600  ;;  %v8715_v51 = vpop.permute.xlu0 %3726 }
 0x4d0   :  { %3988 = vrot.lane.b32.xlu1 %v3633_v18, %s5604_s19  ;;  %4146 = vrot.lane.b32.xlu0 %v3568_v39, %s5605_s20 }
 0x4d2   :  { %v8725_v20 = vpop.permute.xlu1 %3664  ;;  %v8727_v61 = vpop.permute.xlu0 %3870 }
 0x4d3   :  { %9968 = vst [vmem:[#allocation14_spill] sm:$0xff] %v8725_v20  ;;  %9969 = vst [vmem:[#allocation62_spill] sm:$0xff] %v8727_v61 }
 0x4d4   :  { %4052 = vrot.lane.b32.xlu1 %v8721_v6, %s5604_s19  ;;  %4210 = vrot.lane.b32.xlu0 %v3760_v15, %s5605_s20 }
 0x4d6   :  { %v8734_v39 = vpop.permute.xlu1 %3728  ;;  %v8736_v18 = vpop.permute.xlu0 %4110 }
 0x4d7   :  { %9970 = vst [vmem:[#allocation34_spill] sm:$0xff] %v8736_v18 }
 0x4d8   :  { %4148 = vrot.lane.b32.xlu1 %v3569_v22, %s5605_s20  ;;  %3926 = vrot.lane.b32.xlu0 %v3570_v26, %s5603_s18  ;;  %v8754_v22 = vmul.f32 %v8261_v38, %v8591_v11  ;;  %v3573_v38 = vmul.f32 %v8269_v0, %v8639_v8  ;;  %v8811_v8 = vmul.f32 %v8269_v0, %v8661_v58 }
 0x4da   :  { %v8744_v61 = vpop.permute.xlu1 %3872  ;;  %v8746_v15 = vpop.permute.xlu0 %3538  ;;  %9979 = vst [vmem:[#allocation58_spill] sm:$0xff] %v8811_v8 }
 0x4db   :  { %9971 = vst [vmem:[#allocation56_spill] sm:$0xff] %v8744_v61 }
 0x4dc   :  { %4212 = vrot.lane.b32.xlu1 %v3761_v37, %s5605_s20  ;;  %3990 = vrot.lane.b32.xlu0 %v3634_v43, %s5604_s19  ;;  %v8773_v43 = vmul.f32 %v8255_v52, %v8602_v35  ;;  %v3636_v52 = vmul.f32 %v8275_v7, %v8629_v48 }
 0x4de   :  { %v8756_v18 = vpop.permute.xlu1 %4112  ;;  %v8758_v29 = vpop.permute.xlu0 %3602  ;;  %9974 = vst [vmem:[#allocation49_spill] sm:$0xff] %v8773_v43 }
 0x4df   :  { %9972 = vst [vmem:[#allocation57_spill] sm:$0xff] %v8756_v18 }
 0x4e0   :  { %3928 = vrot.lane.b32.xlu1 %v3571_v49, %s5603_s18  ;;  %4054 = vrot.lane.b32.xlu0 %v8754_v22, %s5604_s19 }
 0x4e2   :  { %v3541_v41 = vpop.permute.xlu1 %3540  ;;  %v8765_v37 = vpop.permute.xlu0 %3666 }
 0x4e3   :  { %9973 = vst [vmem:[#allocation63_spill] sm:$0xff] %v8765_v37 }
 0x4e4   :  { %3992 = vrot.lane.b32.xlu1 %v3635_v42, %s5604_s19  ;;  %4150 = vrot.lane.b32.xlu0 %v3570_v26, %s5605_s20 }
 0x4e6   :  { %v3605_v18 = vpop.permute.xlu1 %3604  ;;  %v8775_v61 = vpop.permute.xlu0 %3730 }
 0x4e8   :  { %4056 = vrot.lane.b32.xlu1 %v8773_v43, %s5604_s19  ;;  %4214 = vrot.lane.b32.xlu0 %v3762_v32, %s5605_s20 }
 0x4ea   :  { %v8782_v42 = vpop.permute.xlu1 %3668  ;;  %v8784_v26 = vpop.permute.xlu0 %3874 }
 0x4eb   :  { %9975 = vst [vmem:[#allocation50_spill] sm:$0xff] %v8782_v42  ;;  %9976 = vst [vmem:[#allocation33_spill] sm:$0xff] %v8784_v26 }
 0x4ec   :  { %4152 = vrot.lane.b32.xlu1 %v3571_v49, %s5605_s20  ;;  %3930 = vrot.lane.b32.xlu0 %v3572_v4, %s5603_s18  ;;  %v3637_v49 = vmul.f32 %v8269_v0, %v8652_v1  ;;  %v3574_v1 = vmul.f32 %v8295_v3, %v8684_v23  ;;  %v8834_v23 = vmul.f32 %v8295_v3, %v8706_v17 }
 0x4ee   :  { %v8792_v14 = vpop.permute.xlu1 %3732  ;;  %v8794_v32 = vpop.permute.xlu0 %4114  ;;  %9981 = vst [vmem:[#allocation65_spill] sm:$0xff] %v8834_v23 }
 0x4ef   :  { %9977 = vst [vmem:[#allocation29_spill] sm:$0xff] %v8794_v32 }
 0x4f0   :  { %3932 = vrot.lane.b32.xlu1 %v3573_v38, %s5603_s18  ;;  %3994 = vrot.lane.b32.xlu0 %v3636_v52, %s5604_s19 }
 0x4f2   :  { %v8804_v26 = vpop.permute.xlu1 %3876  ;;  %v3543_v48 = vpop.permute.xlu0 %3542 }
 0x4f3   :  { %9978 = vst [vmem:[#allocation20_spill] sm:$0xff] %v8804_v26 }
 0x4f4   :  { %3996 = vrot.lane.b32.xlu1 %v3637_v49, %s5604_s19  ;;  %4058 = vrot.lane.b32.xlu0 %v8800_v5, %s5604_s19 }
 0x4f6   :  { %v8813_v52 = vpop.permute.xlu1 %4116  ;;  %v3607_v32 = vpop.permute.xlu0 %3606 }
 0x4f7   :  { %9980 = vst [vmem:[#allocation64_spill] sm:$0xff] %v8813_v52  ;;  %v3575_v52 = vmul.f32 %v8285_v31, %v8704_v13  ;;  %v8847_v13 = vmul.f32 %v8285_v31, %v8725_v20  ;;  %v3640_v20 = vmul.f32 %v8315_v28, %v8758_v29  ;;  %v8881_v29 = vmul.f32 %v8305_v44, %v8782_v42 }
 0x4f8   :  { %4060 = vrot.lane.b32.xlu1 %v8811_v8, %s5604_s19  ;;  %4154 = vrot.lane.b32.xlu0 %v3572_v4, %s5605_s20  ;;  %v3639_v4 = vmul.f32 %v8285_v31, %v8713_v36  ;;  %v3576_v36 = vmul.f32 %v8315_v28, %v8746_v15  ;;  %v8871_v15 = vmul.f32 %v8315_v28, %v8765_v37 }
 0x4f9   :  { %9983 = vst [vmem:[#allocation67_spill] sm:$0xff] %v8847_v13  ;;  %v3642_v42 = vmul.f32 %v8333_v27, %v3607_v32 }
 0x4fa   :  { %v3545_v26 = vpop.permute.xlu1 %3544  ;;  %v8820_v49 = vpop.permute.xlu0 %3670  ;;  %9987 = vst [vmem:[#allocation71_spill] sm:$0xff] %v8871_v15 }
 0x4fb   :  { %v3579_v37 = vmul.f32 %v8323_v63, %v3545_v26 }
 0x4fc   :  { %4156 = vrot.lane.b32.xlu1 %v3573_v38, %s5605_s20  ;;  %3934 = vrot.lane.b32.xlu0 %v3574_v1, %s5603_s18 }
 0x4fe   :  { %v3609_v58 = vpop.permute.xlu1 %3608  ;;  %v8828_v8 = vpop.permute.xlu0 %3734 }
 0x500   :  { %3936 = vrot.lane.b32.xlu1 %v3575_v52, %s5603_s18  ;;  %3998 = vrot.lane.b32.xlu0 %v3638_v34, %s5604_s19 }
 0x502   :  { %v8838_v38 = vpop.permute.xlu1 %3672  ;;  %v8840_v40 = vpop.permute.xlu0 %3878 }
 0x503   :  { %9982 = vst [vmem:[#allocation66_spill] sm:$0xff] %v8840_v40  ;;  %v8917_v26 = vmul.f32 %v8323_v63, %v8838_v38 }
 0x504   :  { %4000 = vrot.lane.b32.xlu1 %v3639_v4, %s5604_s19  ;;  %4062 = vrot.lane.b32.xlu0 %v8834_v23, %s5604_s19 }
 0x506   :  { %v8849_v34 = vpop.permute.xlu1 %3736  ;;  %v8851_v17 = vpop.permute.xlu0 %4118 }
 0x507   :  { %9984 = vst [vmem:[#allocation68_spill] sm:$0xff] %v8851_v17  ;;  %v3577_v17 = vmul.f32 %v8305_v44, %v3541_v41 }
 0x508   :  { %4064 = vrot.lane.b32.xlu1 %v8847_v13, %s5604_s19  ;;  %4158 = vrot.lane.b32.xlu0 %v3574_v1, %s5605_s20 }
 0x50a   :  { %v8858_v4 = vpop.permute.xlu1 %3880  ;;  %v3547_v40 = vpop.permute.xlu0 %3546 }
 0x50b   :  { %9985 = vst [vmem:[#allocation69_spill] sm:$0xff] %v8858_v4 }
 0x50c   :  { %4160 = vrot.lane.b32.xlu1 %v3575_v52, %s5605_s20  ;;  %3938 = vrot.lane.b32.xlu0 %v3576_v36, %s5603_s18  ;;  %v3641_v52 = vmul.f32 %v8305_v44, %v3605_v18  ;;  %v3578_v18 = vmul.f32 %v8333_v27, %v3543_v48  ;;  %v8905_v48 = vmul.f32 %v8333_v27, %v8820_v49 }
 0x50e   :  { %v8865_v23 = vpop.permute.xlu1 %4120  ;;  %v3611_v13 = vpop.permute.xlu0 %3610 }
 0x50f   :  { %9986 = vst [vmem:[#allocation70_spill] sm:$0xff] %v8865_v23 }
 0x510   :  { %3940 = vrot.lane.b32.xlu1 %v3577_v17, %s5603_s18  ;;  %4002 = vrot.lane.b32.xlu0 %v3640_v20, %s5604_s19 }
 0x512   :  { %v3549_v1 = vpop.permute.xlu1 %3548  ;;  %v8874_v4 = vpop.permute.xlu0 %3674 }
 0x514   :  { %4004 = vrot.lane.b32.xlu1 %v3641_v52, %s5604_s19  ;;  %4066 = vrot.lane.b32.xlu0 %v8871_v15, %s5604_s19 }
 0x516   :  { %v3613_v41 = vpop.permute.xlu1 %3612  ;;  %v8883_v20 = vpop.permute.xlu0 %3738 }
 0x518   :  { %4068 = vrot.lane.b32.xlu1 %v8881_v29, %s5604_s19  ;;  %4162 = vrot.lane.b32.xlu0 %v3576_v36, %s5605_s20 }
 0x51a   :  { %v8889_v23 = vpop.permute.xlu1 %3676  ;;  %v8891_v52 = vpop.permute.xlu0 %3882 }
 0x51b   :  { %9988 = vst [vmem:[#allocation72_spill] sm:$0xff] %v8891_v52 }
 0x51c   :  { %4164 = vrot.lane.b32.xlu1 %v3577_v17, %s5605_s20  ;;  %3942 = vrot.lane.b32.xlu0 %v3578_v18, %s5603_s18  ;;  %v3643_v17 = vmul.f32 %v8323_v63, %v3609_v58  ;;  %v3580_v58 = vmul.f32 %v8351_v9, %v3547_v40  ;;  %v8943_v40 = vmul.f32 %v8351_v9, %v8874_v4 }
 0x51e   :  { %v8897_v15 = vpop.permute.xlu1 %3740  ;;  %v8899_v43 = vpop.permute.xlu0 %4122 }
 0x51f   :  { %9989 = vst [vmem:[#allocation73_spill] sm:$0xff] %v8899_v43  ;;  %v3644_v43 = vmul.f32 %v8351_v9, %v3611_v13  ;;  %v8955_v13 = vmul.f32 %v8341_v46, %v8889_v23 }
 0x520   :  { %3944 = vrot.lane.b32.xlu1 %v3579_v37, %s5603_s18  ;;  %4006 = vrot.lane.b32.xlu0 %v3642_v42, %s5604_s19 }
 0x522   :  { %v8908_v36 = vpop.permute.xlu1 %3884  ;;  %v8910_v52 = vpop.permute.xlu0 %3918 }
 0x523   :  { %9990 = vst [vmem:[#allocation74_spill] sm:$0xff] %v8908_v36  ;;  %9991 = vst [vmem:[#allocation75_spill] sm:$0xff] %v8910_v52 }
 0x524   :  { %4008 = vrot.lane.b32.xlu1 %v3643_v17, %s5604_s19  ;;  %4070 = vrot.lane.b32.xlu0 %v8905_v48, %s5604_s19 }
 0x526   :  { %v8919_v42 = vpop.permute.xlu1 %4124  ;;  %v8921_v32 = vpop.permute.xlu0 %3982 }
 0x527   :  { %9992 = vst [vmem:[#allocation76_spill] sm:$0xff] %v8919_v42  ;;  %9993 = vst [vmem:[#allocation77_spill] sm:$0xff] %v8921_v32  ;;  %v3581_v42 = vmul.f32 %v8341_v46, %v3549_v1 }
 0x528   :  { %4072 = vrot.lane.b32.xlu1 %v8917_v26, %s5604_s19  ;;  %4166 = vrot.lane.b32.xlu0 %v3578_v18, %s5605_s20 }
 0x52a   :  { %v8927_v52 = vpop.permute.xlu1 %3920  ;;  %v8929_v17 = vpop.permute.xlu0 %4046 }
 0x52b   :  { %9994 = vst [vmem:[#allocation78_spill] sm:$0xff] %v8927_v52 }
 0x52c   :  { %4168 = vrot.lane.b32.xlu1 %v3579_v37, %s5605_s20  ;;  %3946 = vrot.lane.b32.xlu0 %v3580_v58, %s5603_s18  ;;  %v3645_v37 = vmul.f32 %v8341_v46, %v3613_v41 }
 0x52e   :  { %v8935_v32 = vpop.permute.xlu1 %3984  ;;  %v8937_v36 = vpop.permute.xlu0 %4142 }
 0x52f   :  { %9995 = vst [vmem:[#allocation79_spill] sm:$0xff] %v8935_v32  ;;  %9996 = vst [vmem:[#allocation80_spill] sm:$0xff] %v8937_v36  ;;  %v5532_v32 = vld [vmem:[#allocation2 + $0x10] sm:$0xff] }
 0x530   :  { %3948 = vrot.lane.b32.xlu1 %v3581_v42, %s5603_s18  ;;  %4010 = vrot.lane.b32.xlu0 %v3644_v43, %s5604_s19  ;;  %v4352_v41 = vsel %vm92_vm0, %v5532_v32, %v8545_v53 }
 0x532   :  { %v8946_v18 = vpop.permute.xlu1 %4048  ;;  %v8948_v52 = vpop.permute.xlu0 %4206 }
 0x533   :  { %9997 = vst [vmem:[#allocation81_spill] sm:$0xff] %v8946_v18  ;;  %9998 = vst [vmem:[#allocation82_spill] sm:$0xff] %v8948_v52 }
 0x534   :  { %4012 = vrot.lane.b32.xlu1 %v3645_v37, %s5604_s19  ;;  %4074 = vrot.lane.b32.xlu0 %v8943_v40, %s5604_s19  ;;  %v3764_v37 = vmul.f32 %v8275_v7, %v8654_v24  ;;  %v5533_v7 = vld [vmem:[%s9503_s4 + $0x28] sm:$0xff]  ;;  %s5606_s4 = smov 10  }
 0x535   :  { %v3763_v24 = vmul.f32 %v5533_v7, %v8608_v55  ;;  %v3765_v55 = vmul.f32 %v8269_v0, %v8673_v45  ;;  %v3770_v45 = vmul.f32 %v8333_v27, %v8828_v8  ;;  %v5535_v7 = vld [vmem:[#allocation2 + $0x20] sm:$0xff]  ;;  %v3769_v27 = vmul.f32 %v8305_v44, %v8792_v14 }
 0x536   :  { %v8957_v43 = vpop.permute.xlu1 %4144  ;;  %v3923_v1 = vpop.permute.xlu0 %3922 }
 0x537   :  { %9999 = vst [vmem:[#allocation83_spill] sm:$0xff] %v8957_v43  ;;  %v4369_v43 = vsel %vm4366_vm8, %v4352_v41, %v8426_v21  ;;  %v3766_v21 = vmul.f32 %v8295_v3, %v8715_v51  ;;  %v3768_v3 = vmul.f32 %v8315_v28, %v8775_v61  ;;  %v3767_v28 = vmul.f32 %v8285_v31, %v8734_v39 }
 0x538   :  { %4076 = vrot.lane.b32.xlu1 %v8955_v13, %s5604_s19  ;;  %4170 = vrot.lane.b32.xlu0 %v3580_v58, %s5605_s20  ;;  %v4386_v36 = vsel %vm4383_vm9, %v4369_v43, %v8558_v60  ;;  %v5534_v43 = vld [vmem:[#allocation2 + $0x18] sm:$0xff]  ;;  %v4354_v31 = vsel %vm92_vm0, %v5535_v7, %v8591_v11  ;;  %v3772_v39 = vmul.f32 %v8351_v9, %v8883_v20 }
 0x539   :  { %v4403_v53 = vsel %vm4400_vm10, %v4386_v36, %v3923_v1  ;;  %v4353_v36 = vsel %vm92_vm0, %v5534_v43, %v8550_v50  ;;  %v3771_v9 = vmul.f32 %v8323_v63, %v8849_v34  ;;  %v3773_v63 = vmul.f32 %v8341_v46, %v8897_v15 }
 0x53a   :  { %v8966_v18 = vpop.permute.xlu1 %4208  ;;  %v3987_v52 = vpop.permute.xlu0 %3986  ;;  %v4370_v50 = vsel %vm4366_vm8, %v4353_v36, %v8424_v30 }
 0x53b   :  { %v4420_v60 = vsel %vm4417_vm11, %v4403_v53, %v3987_v52 }
 0x53c   :  { %4172 = vrot.lane.b32.xlu1 %v3581_v42, %s5605_s20  ;;  %4218 = vrot.lane.b32.xlu0 %v3764_v37, %s5605_s20  ;;  %v4387_v37 = vsel %vm4383_vm9, %v4370_v50, %v8572_v33 }
 0x53e   :  { %v3925_v32 = vpop.permute.xlu1 %3924  ;;  %v4051_v58 = vpop.permute.xlu0 %4050 }
 0x53f   :  { %v4437_v42 = vsel %vm4434_vm12, %v4420_v60, %v4051_v58  ;;  %v4404_v0 = vsel %vm4400_vm10, %v4387_v37, %v3925_v32  ;;  %v4371_v32 = vsel %vm4366_vm8, %v4354_v31, %v8432_v12  ;;  %v5536_v12 = vld [vmem:[#allocation2 + $0x28] sm:$0xff]  ;;  %v10005_v31 = vld [vmem:[#allocation19_spill] sm:$0xff] }
 0x540   :  { %4216 = vrot.lane.b32.xlu1 %v3763_v24, %s5605_s20  ;;  %4222 = vrot.lane.b32.xlu0 %v3766_v21, %s5605_s20  ;;  %v4454_v52 = vsel %vm4451_vm13, %v4437_v42, %v8564_v16  ;;  %v4388_v44 = vsel %vm4383_vm9, %v4371_v32, %v8604_v19  ;;  %v4355_v19 = vsel %vm92_vm0, %v5536_v12, %v8602_v35  ;;  %v10000_v37 = vld [vmem:[#allocation17_spill] sm:$0xff] }
 0x541   :  { %v4372_v36 = vsel %vm4366_vm8, %v4355_v19, %v8430_v2 }
 0x542   :  { %v3989_v51 = vpop.permute.xlu1 %3988  ;;  %v4147_v1 = vpop.permute.xlu0 %4146 }
 0x543   :  { %v4471_v41 = vsel %vm4468_vm14, %v4454_v52, %v4147_v1  ;;  %v4421_v30 = vsel %vm4417_vm11, %v4404_v0, %v3989_v51 }
 0x544   :  { %4220 = vrot.lane.b32.xlu1 %v3765_v55, %s5605_s20  ;;  %4226 = vrot.lane.b32.xlu0 %v3768_v3, %s5605_s20 }
 0x546   :  { %v4053_v16 = vpop.permute.xlu1 %4052  ;;  %v4211_v61 = vpop.permute.xlu0 %4210 }
 0x547   :  { %v4438_v53 = vsel %vm4434_vm12, %v4421_v30, %v4053_v16  ;;  %v9008_v33 = vsel %vm4485_vm15, %v4471_v41, %v4211_v61  ;;  %v10004_v30 = vld [vmem:[#allocation46_spill] sm:$0xff] }
 0x548   :  { %4224 = vrot.lane.b32.xlu1 %v3767_v28, %s5605_s20  ;;  %4230 = vrot.lane.b32.xlu0 %v3770_v45, %s5605_s20  ;;  %v4455_v8 = vsel %vm4451_vm13, %v4438_v53, %v8579_v25  ;;  %v5538_v28 = vld [vmem:[#allocation2 + $0x38] sm:$0xff]  ;;  %v10003_v45 = vld [vmem:[#allocation44_spill] sm:$0xff] }
 0x54a   :  { %v4149_v24 = vpop.permute.xlu1 %4148  ;;  %v3927_v21 = vpop.permute.xlu0 %3926 }
 0x54b   :  { %v4472_v60 = vsel %vm4468_vm14, %v4455_v8, %v4149_v24  ;;  %v4405_v11 = vsel %vm4400_vm10, %v4388_v44, %v3927_v21  ;;  %v10007_v8 = vld [vmem:[#allocation71_spill] sm:$0xff]  ;;  %v10008_v24 = vld [vmem:[#allocation61_spill] sm:$0xff] }
 0x54c   :  { %4228 = vrot.lane.b32.xlu1 %v3769_v27, %s5605_s20  ;;  %4234 = vrot.lane.b32.xlu0 %v3772_v39, %s5605_s20  ;;  %v10006_v39 = vld [vmem:[#allocation58_spill] sm:$0xff] }
 0x54e   :  { %v4213_v25 = vpop.permute.xlu1 %4212  ;;  %v3991_v14 = vpop.permute.xlu0 %3990 }
 0x54f   :  { %v9031_v20 = vsel %vm4485_vm15, %v4472_v60, %v4213_v25  ;;  %v4422_v58 = vsel %vm4417_vm11, %v4405_v11, %v3991_v14  ;;  %v10009_v25 = vld [vmem:[#allocation67_spill] sm:$0xff] }
 0x550   :  { %4232 = vrot.lane.b32.xlu1 %v3771_v9, %s5605_s20  ;;  %4254 = vrot.lane.b32.xlu0 %v8650_v62, %s5606_s4  ;;  %v4389_v62 = vsel %vm4383_vm9, %v4372_v36, %v8618_v57  ;;  %v10012_v36 = vld [vmem:[#allocation12_spill] sm:$0xff] }
 0x552   :  { %v3929_v34 = vpop.permute.xlu1 %3928  ;;  %v4055_v42 = vpop.permute.xlu0 %4054 }
 0x553   :  { %v4439_v43 = vsel %vm4434_vm12, %v4422_v58, %v4055_v42  ;;  %v4406_v35 = vsel %vm4400_vm10, %v4389_v62, %v3929_v34  ;;  %v10010_v58 = vld [vmem:[#allocation26_spill] sm:$0xff]  ;;  %v5539_v42 = vld [vmem:[#allocation2 + $0x40] sm:$0xff] }
 0x554   :  { %4236 = vrot.lane.b32.xlu1 %v3773_v63, %s5605_s20  ;;  %4258 = vrot.lane.b32.xlu0 %v8702_v59, %s5606_s4  ;;  %v4456_v46 = vsel %vm4451_vm13, %v4439_v43, %v8610_v56  ;;  %v5537_v56 = vld [vmem:[#allocation2 + $0x30] sm:$0xff]  ;;  %v10011_v43 = vld [vmem:[#allocation13_spill] sm:$0xff] }
 0x556   :  { %v3993_v55 = vpop.permute.xlu1 %3992  ;;  %v4151_v15 = vpop.permute.xlu0 %4150 }
 0x557   :  { %v4423_v3 = vsel %vm4417_vm11, %v4406_v35, %v3993_v55  ;;  %v4473_v51 = vsel %vm4468_vm14, %v4456_v46, %v4151_v15  ;;  %v10013_v15 = vld [vmem:[#allocation41_spill] sm:$0xff] }
 0x558   :  { %4256 = vrot.lane.b32.xlu1 %v8669_v10, %s5606_s4  ;;  %4262 = vrot.lane.b32.xlu0 %v8754_v22, %s5606_s4  ;;  %v4356_v10 = vsel %vm92_vm0, %v5537_v56, %v8641_v47  ;;  %v4357_v47 = vsel %vm92_vm0, %v5538_v28, %v10003_v45 }
 0x559   :  { %v4373_v0 = vsel %vm4366_vm8, %v4356_v10, %v10000_v37  ;;  %v4374_v27 = vsel %vm4366_vm8, %v4357_v47, %v10005_v31  ;;  %v10018_v37 = vld [vmem:[#allocation40_spill] sm:$0xff] }
 0x55a   :  { %v4057_v2 = vpop.permute.xlu1 %4056  ;;  %v4215_v59 = vpop.permute.xlu0 %4214  ;;  %v4391_v21 = vsel %vm4383_vm9, %v4374_v27, %v10008_v24  ;;  %v5541_v24 = vld [vmem:[#allocation2 + $0x50] sm:$0xff] }
 0x55b   :  { %v4440_v57 = vsel %vm4434_vm12, %v4423_v3, %v4057_v2  ;;  %v9060_v52 = vsel %vm4485_vm15, %v4473_v51, %v4215_v59  ;;  %v10015_v51 = vld [vmem:[#allocation14_spill] sm:$0xff] }
 0x55c   :  { %4260 = vrot.lane.b32.xlu1 %v8721_v6, %s5606_s4  ;;  %4266 = vrot.lane.b32.xlu0 %v8800_v5, %s5606_s4  ;;  %v4457_v22 = vsel %vm4451_vm13, %v4440_v57, %v8627_v54  ;;  %v10001_v6 = vld [vmem:[#allocation49_spill] sm:$0xff]  ;;  %v4390_v54 = vsel %vm4383_vm9, %v4373_v0, %v10004_v30  ;;  %v10016_v59 = vld [vmem:[#allocation62_spill] sm:$0xff]  ;;  %v10019_v0 = vld [vmem:[#allocation56_spill] sm:$0xff] }
 0x55d   :  { %v10002_v5 = vld [vmem:[#allocation65_spill] sm:$0xff] }
 0x55e   :  { %v4153_v1 = vpop.permute.xlu1 %4152  ;;  %v3931_v50 = vpop.permute.xlu0 %3930 }
 0x55f   :  { %v9071_v41 = vsel %vm4468_vm14, %v4457_v22, %v4153_v1  ;;  %v4407_v16 = vsel %vm4400_vm10, %v4390_v54, %v3931_v50  ;;  %v10017_v50 = vld [vmem:[#allocation30_spill] sm:$0xff]  ;;  %v10020_v54 = vld [vmem:[#allocation37_spill] sm:$0xff] }
 0x560   :  { %4264 = vrot.lane.b32.xlu1 %v10001_v6, %s5606_s4  ;;  %4270 = vrot.lane.b32.xlu0 %v10002_v5, %s5606_s4 }
 0x562   :  { %v3933_v61 = vpop.permute.xlu1 %3932  ;;  %v3995_v53 = vpop.permute.xlu0 %3994 }
 0x563   :  { %v4424_v7 = vsel %vm4417_vm11, %v4407_v16, %v3995_v53  ;;  %v4408_v60 = vsel %vm4400_vm10, %v4391_v21, %v3933_v61  ;;  %v10021_v16 = vld [vmem:[#allocation22_spill] sm:$0xff]  ;;  %v10025_v21 = vld [vmem:[#allocation63_spill] sm:$0xff] }
 0x564   :  { %4268 = vrot.lane.b32.xlu1 %v10006_v39, %s5606_s4  ;;  %4274 = vrot.lane.b32.xlu0 %v10007_v8, %s5606_s4  ;;  %v10022_v61 = vld [vmem:[#allocation34_spill] sm:$0xff]  ;;  %v10023_v39 = vld [vmem:[#allocation16_spill] sm:$0xff]  ;;  %v10024_v8 = vld [vmem:[#allocation25_spill] sm:$0xff] }
 0x566   :  { %v3997_v32 = vpop.permute.xlu1 %3996  ;;  %v4059_v44 = vpop.permute.xlu0 %4058 }
 0x567   :  { %v4425_v9 = vsel %vm4417_vm11, %v4408_v60, %v3997_v32  ;;  %v4441_v11 = vsel %vm4434_vm12, %v4424_v7, %v4059_v44  ;;  %v4360_v60 = vsel %vm92_vm0, %v5541_v24, %v10025_v21  ;;  %v10026_v32 = vld [vmem:[#allocation57_spill] sm:$0xff]  ;;  %v10043_v24 = vld [vmem:[#allocation35_spill] sm:$0xff] }
 0x568   :  { %4272 = vrot.lane.b32.xlu1 %v10009_v25, %s5606_s4  ;;  %4278 = vrot.lane.b32.xlu0 %v8905_v48, %s5606_s4  ;;  %v4458_v12 = vsel %vm4451_vm13, %v4441_v11, %v10010_v58  ;;  %v4358_v48 = vsel %vm92_vm0, %v5539_v42, %v10011_v43  ;;  %v10030_v42 = vld [vmem:[#allocation50_spill] sm:$0xff]  ;;  %v5544_v21 = vld [vmem:[#allocation2 + $0x68] sm:$0xff] }
 0x569   :  { %v4375_v3 = vsel %vm4366_vm8, %v4358_v48, %v10013_v15  ;;  %v10031_v48 = vld [vmem:[#allocation33_spill] sm:$0xff] }
 0x56a   :  { %v4061_v14 = vpop.permute.xlu1 %4060  ;;  %v4155_v19 = vpop.permute.xlu0 %4154  ;;  %v4392_v57 = vsel %vm4383_vm9, %v4375_v3, %v10016_v59  ;;  %v10032_v3 = vld [vmem:[#allocation48_spill] sm:$0xff] }
 0x56b   :  { %v4442_v63 = vsel %vm4434_vm12, %v4425_v9, %v4061_v14  ;;  %v9104_v34 = vsel %vm4468_vm14, %v4458_v12, %v4155_v19  ;;  %v10027_v14 = vld [vmem:[#allocation51_spill] sm:$0xff]  ;;  %v10028_v12 = vld [vmem:[#allocation45_spill] sm:$0xff] }
 0x56c   :  { %4276 = vrot.lane.b32.xlu1 %v8881_v29, %s5606_s4  ;;  %4282 = vrot.lane.b32.xlu0 %v8943_v40, %s5606_s4  ;;  %v4459_v62 = vsel %vm4451_vm13, %v4442_v63, %v10012_v36  ;;  %v10014_v29 = vld [vmem:[#allocation52_spill] sm:$0xff]  ;;  %v5540_v40 = vld [vmem:[#allocation2 + $0x48] sm:$0xff]  ;;  %v4377_v58 = vsel %vm4366_vm8, %v4360_v60, %v10027_v14  ;;  %v10029_v19 = vld [vmem:[#allocation47_spill] sm:$0xff]  ;;  %v4363_v60 = vsel %vm92_vm0, %v5544_v21, %v8838_v38 }
 0x56d   :  { %v4359_v2 = vsel %vm92_vm0, %v5540_v40, %v10015_v51  ;;  %v5542_v63 = vld [vmem:[#allocation2 + $0x58] sm:$0xff]  ;;  %v4394_v36 = vsel %vm4383_vm9, %v4377_v58, %v10031_v48  ;;  %v10033_v40 = vld [vmem:[#allocation38_spill] sm:$0xff] }
 0x56e   :  { %v4157_v35 = vpop.permute.xlu1 %4156  ;;  %v3935_v55 = vpop.permute.xlu0 %3934  ;;  %v4361_v43 = vsel %vm92_vm0, %v5542_v63, %v10030_v42  ;;  %v10034_v51 = vld [vmem:[#allocation23_spill] sm:$0xff]  ;;  %v10045_v58 = vld [vmem:[#allocation54_spill] sm:$0xff]  ;;  %v10047_v63 = vld [vmem:[#allocation69_spill] sm:$0xff] }
 0x56f   :  { %v9115_v46 = vsel %vm4468_vm14, %v4459_v62, %v4157_v35  ;;  %v4409_v56 = vsel %vm4400_vm10, %v4392_v57, %v3935_v55 }
 0x570   :  { %4280 = vrot.lane.b32.xlu1 %v8917_v26, %s5606_s4  ;;  %4302 = vrot.lane.b32.xlu0 %v10014_v29, %s5607_s2  ;;  %v4376_v26 = vsel %vm4366_vm8, %v4359_v2, %v10017_v50  ;;  %v4378_v29 = vsel %vm4366_vm8, %v4361_v43, %v10032_v3  ;;  %v10035_v2 = vld [vmem:[#allocation20_spill] sm:$0xff]  ;;  %v10036_v50 = vld [vmem:[#allocation55_spill] sm:$0xff] }
 0x571   :  { %v4393_v6 = vsel %vm4383_vm9, %v4376_v26, %v10019_v0  ;;  %v4395_v59 = vsel %vm4383_vm9, %v4378_v29, %v10035_v2  ;;  %v10037_v26 = vld [vmem:[#allocation43_spill] sm:$0xff]  ;;  %v10038_v0 = vld [vmem:[#allocation29_spill] sm:$0xff] }
 0x572   :  { %v3937_v10 = vpop.permute.xlu1 %3936  ;;  %v3999_v22 = vpop.permute.xlu0 %3998 }
 0x573   :  { %v4426_v1 = vsel %vm4417_vm11, %v4409_v56, %v3999_v22  ;;  %v4410_v5 = vsel %vm4400_vm10, %v4393_v6, %v3937_v10 }
 0x574   :  { %4284 = vrot.lane.b32.xlu1 %v8955_v13, %s5606_s4  ;;  %4306 = vrot.lane.b32.xlu0 %v10018_v37, %s5607_s2 }
 0x576   :  { %v4001_v28 = vpop.permute.xlu1 %4000  ;;  %v4063_v45 = vpop.permute.xlu0 %4062 }
 0x577   :  { %v4427_v47 = vsel %vm4417_vm11, %v4410_v5, %v4001_v28  ;;  %v4443_v30 = vsel %vm4434_vm12, %v4426_v1, %v4063_v45 }
 0x578   :  { %4304 = vrot.lane.b32.xlu1 %v10020_v54, %s5607_s2  ;;  %4310 = vrot.lane.b32.xlu0 %v10021_v16, %s5607_s2  ;;  %v4460_v53 = vsel %vm4451_vm13, %v4443_v30, %v10022_v61  ;;  %v10040_v30 = vld [vmem:[#allocation39_spill] sm:$0xff]  ;;  %v5543_v54 = vld [vmem:[#allocation2 + $0x60] sm:$0xff] }
 0x579   :  { %v4362_v16 = vsel %vm92_vm0, %v5543_v54, %v8820_v49 }
 0x57a   :  { %v4065_v13 = vpop.permute.xlu1 %4064  ;;  %v4159_v7 = vpop.permute.xlu0 %4158 }
 0x57b   :  { %v4444_v31 = vsel %vm4434_vm12, %v4427_v47, %v4065_v13  ;;  %v9148_v27 = vsel %vm4468_vm14, %v4460_v53, %v4159_v7  ;;  %v10039_v47 = vld [vmem:[#allocation59_spill] sm:$0xff]  ;;  %v10041_v13 = vld [vmem:[#allocation64_spill] sm:$0xff] }
 0x57c   :  { %4308 = vrot.lane.b32.xlu1 %v10023_v39, %s5607_s2  ;;  %4314 = vrot.lane.b32.xlu0 %v10024_v8, %s5607_s2  ;;  %v4461_v44 = vsel %vm4451_vm13, %v4444_v31, %v10026_v32  ;;  %v10042_v39 = vld [vmem:[#allocation28_spill] sm:$0xff]  ;;  %v10044_v32 = vld [vmem:[#allocation66_spill] sm:$0xff] }
 0x57d   :  { %v4379_v8 = vsel %vm4366_vm8, %v4362_v16, %v10042_v39  ;;  %v10053_v16 = vld [vmem:[#allocation74_spill] sm:$0xff] }
 0x57e   :  { %v4161_v9 = vpop.permute.xlu1 %4160  ;;  %v3939_v11 = vpop.permute.xlu0 %3938  ;;  %v4396_v49 = vsel %vm4383_vm9, %v4379_v8, %v10044_v32 }
 0x57f   :  { %v9159_v25 = vsel %vm4468_vm14, %v4461_v44, %v4161_v9  ;;  %v4411_v62 = vsel %vm4400_vm10, %v4394_v36, %v3939_v11 }
 0x580   :  { %4312 = vrot.lane.b32.xlu1 %v10028_v12, %s5607_s2  ;;  %4318 = vrot.lane.b32.xlu0 %v10029_v19, %s5607_s2  ;;  %v4380_v12 = vsel %vm4366_vm8, %v4363_v60, %v10045_v58  ;;  %v10046_v19 = vld [vmem:[#allocation60_spill] sm:$0xff] }
 0x581   :  { %v4397_v42 = vsel %vm4383_vm9, %v4380_v12, %v10047_v63 }
 0x582   :  { %v3941_v35 = vpop.permute.xlu1 %3940  ;;  %v4003_v55 = vpop.permute.xlu0 %4002 }
 0x583   :  { %v4428_v15 = vsel %vm4417_vm11, %v4411_v62, %v4003_v55  ;;  %v4412_v57 = vsel %vm4400_vm10, %v4395_v59, %v3941_v35  ;;  %v10048_v55 = vld [vmem:[#allocation68_spill] sm:$0xff]  ;;  %v10049_v59 = vld [vmem:[#allocation70_spill] sm:$0xff] }
 0x584   :  { %4316 = vrot.lane.b32.xlu1 %v10033_v40, %s5607_s2  ;;  %4322 = vrot.lane.b32.xlu0 %v10034_v51, %s5607_s2  ;;  %v5545_v51 = vld [vmem:[#allocation2 + $0x70] sm:$0xff] }
 0x585   :  { %v4364_v2 = vsel %vm92_vm0, %v5545_v51, %v8874_v4 }
 0x586   :  { %v4005_v56 = vpop.permute.xlu1 %4004  ;;  %v4067_v10 = vpop.permute.xlu0 %4066 }
 0x587   :  { %v4429_v22 = vsel %vm4417_vm11, %v4412_v57, %v4005_v56  ;;  %v4445_v1 = vsel %vm4434_vm12, %v4428_v15, %v4067_v10 }
 0x588   :  { %4320 = vrot.lane.b32.xlu1 %v10036_v50, %s5607_s2  ;;  %4326 = vrot.lane.b32.xlu0 %v10037_v26, %s5607_s2  ;;  %v4462_v6 = vsel %vm4451_vm13, %v4445_v1, %v10038_v0  ;;  %v10050_v1 = vld [vmem:[#allocation53_spill] sm:$0xff]  ;;  %v5546_v26 = vld [vmem:[#allocation2 + $0x78] sm:$0xff]  ;;  %v10051_v0 = vld [vmem:[#allocation72_spill] sm:$0xff] }
 0x589   :  { %v4381_v50 = vsel %vm4366_vm8, %v4364_v2, %v10050_v1 }
 0x58a   :  { %v4069_v37 = vpop.permute.xlu1 %4068  ;;  %v4163_v5 = vpop.permute.xlu0 %4162 }
 0x58b   :  { %v4446_v28 = vsel %vm4434_vm12, %v4429_v22, %v4069_v37  ;;  %v9192_v45 = vsel %vm4468_vm14, %v4462_v6, %v4163_v5  ;;  %v4365_v37 = vsel %vm92_vm0, %v5546_v26, %v8889_v23  ;;  %v4398_v6 = vsel %vm4383_vm9, %v4381_v50, %v10051_v0 }
 0x58c   :  { %4324 = vrot.lane.b32.xlu1 %v10039_v47, %s5607_s2  ;;  %4330 = vrot.lane.b32.xlu0 %v10040_v30, %s5607_s2  ;;  %v4463_v61 = vsel %vm4451_vm13, %v4446_v28, %v10041_v13  ;;  %v10052_v30 = vld [vmem:[#allocation24_spill] sm:$0xff] }
 0x58d   :  { %v4382_v54 = vsel %vm4366_vm8, %v4365_v37, %v10052_v30  ;;  %v10057_v37 = vld [vmem:[#allocation36_spill] sm:$0xff] }
 0x58e   :  { %v4165_v53 = vpop.permute.xlu1 %4164  ;;  %v3943_v7 = vpop.permute.xlu0 %3942  ;;  %v4399_v13 = vsel %vm4383_vm9, %v4382_v54, %v10053_v16  ;;  %v10060_v54 = vld [vmem:[#allocation77_spill] sm:$0xff] }
 0x58f   :  { %v9203_v31 = vsel %vm4468_vm14, %v4463_v61, %v4165_v53  ;;  %v4413_v44 = vsel %vm4400_vm10, %v4396_v49, %v3943_v7 }
 0x590   :  { %4328 = vrot.lane.b32.xlu1 %v10043_v24, %s5607_s2  ;;  %v10054_v24 = vld [vmem:[#allocation73_spill] sm:$0xff] }
 0x592   :  { %v3945_v9 = vpop.permute.xlu1 %3944  ;;  %v4007_v11 = vpop.permute.xlu0 %4006 }
 0x593   :  { %v4430_v14 = vsel %vm4417_vm11, %v4413_v44, %v4007_v11  ;;  %v4414_v38 = vsel %vm4400_vm10, %v4397_v42, %v3945_v9  ;;  %v10055_v44 = vld [vmem:[#allocation76_spill] sm:$0xff] }
 0x594   :  { %4332 = vrot.lane.b32.xlu1 %v10046_v19, %s5607_s2 }
 0x596   :  { %v4009_v43 = vpop.permute.xlu1 %4008  ;;  %v4071_v48 = vpop.permute.xlu0 %4070 }
 0x597   :  { %v4431_v36 = vsel %vm4417_vm11, %v4414_v38, %v4009_v43  ;;  %v4447_v62 = vsel %vm4434_vm12, %v4430_v14, %v4071_v48 }
 0x598   :  { %v4464_v15 = vsel %vm4451_vm13, %v4447_v62, %v10048_v55 }
 0x59a   :  { %v4073_v35 = vpop.permute.xlu1 %4072  ;;  %v4167_v3 = vpop.permute.xlu0 %4166 }
 0x59b   :  { %v4448_v29 = vsel %vm4434_vm12, %v4431_v36, %v4073_v35  ;;  %v9228_v40 = vsel %vm4468_vm14, %v4464_v15, %v4167_v3 }
 0x59c   :  { %v4465_v57 = vsel %vm4451_vm13, %v4448_v29, %v10049_v59 }
 0x59e   :  { %v4169_v56 = vpop.permute.xlu1 %4168  ;;  %v3947_v10 = vpop.permute.xlu0 %3946 }
 0x59f   :  { %v9235_v22 = vsel %vm4468_vm14, %v4465_v57, %v4169_v56  ;;  %v4415_v4 = vsel %vm4400_vm10, %v4398_v6, %v3947_v10  ;;  %v5547_v56 = vld [vmem:[#allocation2] sm:$0xff]  ;;  %v10056_v10 = vld [vmem:[#allocation21_spill] sm:$0xff]  ;;  %v10058_v6 = vld [vmem:[#allocation18_spill] sm:$0xff] }
 0x5a0   :  { %v4350_v1 = vsel %vm92_vm0, %v5547_v56, %v10056_v10  ;;  %v10067_v10 = vld [vmem:[#allocation78_spill] sm:$0xff] }
 0x5a1   :  { %v4367_v0 = vsel %vm4366_vm8, %v4350_v1, %v10057_v37 }
 0x5a2   :  { %v3949_v5 = vpop.permute.xlu1 %3948  ;;  %v4011_v28 = vpop.permute.xlu0 %4010 }
 0x5a3   :  { %v4432_v47 = vsel %vm4417_vm11, %v4415_v4, %v4011_v28  ;;  %v4416_v61 = vsel %vm4400_vm10, %v4399_v13, %v3949_v5  ;;  %v4384_v4 = vsel %vm4383_vm9, %v4367_v0, %v10058_v6  ;;  %v10059_v5 = vld [vmem:[#allocation75_spill] sm:$0xff] }
 0x5a4   :  { %v4401_v28 = vsel %vm4400_vm10, %v4384_v4, %v10059_v5  ;;  %v10068_v4 = vld [vmem:[#allocation79_spill] sm:$0xff] }
 0x5a5   :  { %v4418_v16 = vsel %vm4417_vm11, %v4401_v28, %v10060_v54  ;;  %v10069_v54 = vld [vmem:[#allocation81_spill] sm:$0xff] }
 0x5a6   :  { %v4013_v53 = vpop.permute.xlu1 %4012  ;;  %v4075_v7 = vpop.permute.xlu0 %4074  ;;  %v4435_v13 = vsel %vm4434_vm12, %v4418_v16, %v8929_v17  ;;  %v10065_v17 = vld [vmem:[#allocation31_spill] sm:$0xff] }
 0x5a7   :  { %v4433_v23 = vsel %vm4417_vm11, %v4416_v61, %v4013_v53  ;;  %v4449_v39 = vsel %vm4434_vm12, %v4432_v47, %v4075_v7  ;;  %v5548_v61 = vld [vmem:[#allocation2 + $0x8] sm:$0xff]  ;;  %v10061_v53 = vld [vmem:[#allocation42_spill] sm:$0xff] }
 0x5a8   :  { %v4466_v21 = vsel %vm4451_vm13, %v4449_v39, %v10054_v24  ;;  %v4351_v7 = vsel %vm92_vm0, %v5548_v61, %v10061_v53  ;;  %vm4536_vm0 = vcmask 113664  }
 0x5aa   :  { %v4077_v8 = vpop.permute.xlu1 %4076  ;;  %v4171_v60 = vpop.permute.xlu0 %4170 }
 0x5ab   :  { %v4450_v32 = vsel %vm4434_vm12, %v4433_v23, %v4077_v8  ;;  %v9256_v49 = vsel %vm4468_vm14, %v4466_v21, %v4171_v60  ;;  %v10062_v8 = vld [vmem:[#allocation32_spill] sm:$0xff]  ;;  %v10063_v21 = vld [vmem:[#allocation27_spill] sm:$0xff] }
 0x5ac   :  { %v4467_v9 = vsel %vm4451_vm13, %v4450_v32, %v10055_v44  ;;  %v4452_v24 = vsel %vm4451_vm13, %v4435_v13, %v10062_v8  ;;  %v4368_v60 = vsel %vm4366_vm8, %v4351_v7, %v10063_v21  ;;  %v10064_v32 = vld [vmem:[#allocation80_spill] sm:$0xff]  ;;  %v10070_v7 = vld [vmem:[#allocation15_spill] sm:$0xff] }
 0x5ad   :  { %v4469_v44 = vsel %vm4468_vm14, %v4452_v24, %v10064_v32  ;;  %v10071_v21 = vld [vmem:[#allocation83_spill] sm:$0xff] }
 0x5ae   :  { %v4173_v11 = vpop.permute.xlu1 %4172  ;;  %v9260_v14 = vpop.permute.xlu0 %4218 }
 0x5af   :  { %v9263_v58 = vsel %vm4468_vm14, %v4467_v9, %v4173_v11  ;;  %v4385_v9 = vsel %vm4383_vm9, %v4368_v60, %v10065_v17  ;;  %v10066_v11 = vld [vmem:[#allocation82_spill] sm:$0xff] }
 0x5b0   :  { %v4486_v56 = vsel %vm4485_vm15, %v4469_v44, %v10066_v11  ;;  %v4402_v1 = vsel %vm4400_vm10, %v4385_v9, %v10067_v10 }
 0x5b1   :  { %v4419_v5 = vsel %vm4417_vm11, %v4402_v1, %v10068_v4  ;;  %v4492_v1 = vsel %vm4485_vm15, %v9104_v34, %v9260_v14 }
 0x5b2   :  { %v9265_v12 = vpop.permute.xlu1 %4216  ;;  %v9267_v19 = vpop.permute.xlu0 %4222  ;;  %v4436_v16 = vsel %vm4434_vm12, %v4419_v5, %v10069_v54 }
 0x5b3   :  { %v4453_v8 = vsel %vm4451_vm13, %v4436_v16, %v10070_v7  ;;  %v4491_v5 = vsel %vm4485_vm15, %v9071_v41, %v9265_v12 }
 0x5b4   :  { %v4470_v60 = vsel %vm4468_vm14, %v4453_v8, %v10071_v21 }
 0x5b5   :  { %v4487_v44 = vsel %vm4485_vm15, %v4470_v60, %v8966_v18 }
 0x5b6   :  { %v9269_v63 = vpop.permute.xlu1 %4220  ;;  %v9271_v42 = vpop.permute.xlu0 %4226 }
 0x5b7   :  { %v4493_v16 = vsel %vm4485_vm15, %v9115_v46, %v9269_v63 }
 0x5ba   :  { %v9273_v38 = vpop.permute.xlu1 %4224  ;;  %v9275_v43 = vpop.permute.xlu0 %4230 }
 0x5bb   :  { %v4495_v7 = vsel %vm4485_vm15, %v9159_v25, %v9273_v38 }
 0x5be   :  { %v9277_v48 = vpop.permute.xlu1 %4228  ;;  %v9279_v36 = vpop.permute.xlu0 %4234 }
 0x5bf   :  { %v4497_v60 = vsel %vm4485_vm15, %v9203_v31, %v9277_v48 }
 0x5c2   :  { %v9281_v62 = vpop.permute.xlu1 %4232  ;;  %v4255_v35 = vpop.permute.xlu0 %4254 }
 0x5c3   :  { %v4503_v37 = vsel %vm4502_vm2, %v4486_v56, %v4255_v35 }
 0x5c6   :  { %v9283_v55 = vpop.permute.xlu1 %4236  ;;  %v4259_v15 = vpop.permute.xlu0 %4258 }
 0x5c7   :  { %v4505_v35 = vsel %vm4502_vm2, %v9008_v33, %v4259_v15 }
 0x5ca   :  { %v4257_v3 = vpop.permute.xlu1 %4256  ;;  %v4263_v29 = vpop.permute.xlu0 %4262 }
 0x5cb   :  { %v4504_v33 = vsel %vm4502_vm2, %v4487_v44, %v4257_v3  ;;  %v4507_v15 = vsel %vm4502_vm2, %v9060_v52, %v4263_v29 }
 0x5ce   :  { %v4261_v51 = vpop.permute.xlu1 %4260  ;;  %v4267_v2 = vpop.permute.xlu0 %4266 }
 0x5cf   :  { %v4506_v52 = vsel %vm4502_vm2, %v9031_v20, %v4261_v51  ;;  %v4509_v3 = vsel %vm4502_vm2, %v4492_v1, %v4267_v2  ;;  %v4494_v20 = vsel %vm4485_vm15, %v9148_v27, %v9267_v19 }
 0x5d2   :  { %v9285_v59 = vpop.permute.xlu1 %4264  ;;  %v9287_v57 = vpop.permute.xlu0 %4270 }
 0x5d3   :  { %v4508_v51 = vsel %vm4502_vm2, %v4491_v5, %v9285_v59  ;;  %v4511_v41 = vsel %vm4502_vm2, %v4494_v20, %v9287_v57  ;;  %v4496_v59 = vsel %vm4485_vm15, %v9192_v45, %v9271_v42 }
 0x5d6   :  { %v9291_v50 = vpop.permute.xlu1 %4268  ;;  %v9293_v26 = vpop.permute.xlu0 %4274 }
 0x5d7   :  { %v4510_v57 = vsel %vm4502_vm2, %v4493_v16, %v9291_v50  ;;  %v4513_v46 = vsel %vm4502_vm2, %v4496_v59, %v9293_v26  ;;  %v4498_v50 = vsel %vm4485_vm15, %v9228_v40, %v9275_v43 }
 0x5da   :  { %v9301_v47 = vpop.permute.xlu1 %4272  ;;  %v9303_v30 = vpop.permute.xlu0 %4278 }
 0x5db   :  { %v4512_v26 = vsel %vm4502_vm2, %v4495_v7, %v9301_v47  ;;  %v4515_v25 = vsel %vm4502_vm2, %v4498_v50, %v9303_v30  ;;  %v4500_v47 = vsel %vm4485_vm15, %v9256_v49, %v9279_v36 }
 0x5de   :  { %v9311_v23 = vpop.permute.xlu1 %4276  ;;  %v9313_v39 = vpop.permute.xlu0 %4282 }
 0x5df   :  { %v4514_v30 = vsel %vm4502_vm2, %v4497_v60, %v9311_v23  ;;  %v4517_v31 = vsel %vm4502_vm2, %v4500_v47, %v9313_v39 }
 0x5e2   :  { %v9328_v0 = vpop.permute.xlu1 %4280  ;;  %v4303_v6 = vpop.permute.xlu0 %4302 }
 0x5e3   :  { %v4520_v28 = vsel %vm4519_vm3, %v4503_v37, %v4303_v6 }
 0x5e4   :  { %v4537_v13 = vsel %vm4536_vm0, %v4520_v28, 0.0 }
 0x5e5   :  { %4554 = vst.msk [vmem:[%s9509_s10] sm:$0xff] %vm4553_vm4, %v4537_v13 }
 0x5e6   :  { %v9342_v61 = vpop.permute.xlu1 %4284  ;;  %v4307_v53 = vpop.permute.xlu0 %4306 }
 0x5e7   :  { %v4522_v24 = vsel %vm4519_vm3, %v4505_v35, %v4307_v53 }
 0x5e8   :  { %v4539_v32 = vsel %vm4536_vm0, %v4522_v24, 0.0 }
 0x5e9   :  { %4556 = vst.msk [vmem:[%s9509_s10 + $0x10] sm:$0xff] %vm4553_vm4, %v4539_v32 }
 0x5ea   :  { %v4305_v17 = vpop.permute.xlu1 %4304  ;;  %v4311_v9 = vpop.permute.xlu0 %4310 }
 0x5eb   :  { %v4521_v11 = vsel %vm4519_vm3, %v4504_v33, %v4305_v17  ;;  %v4524_v56 = vsel %vm4519_vm3, %v4507_v15, %v4311_v9  ;;  %v4499_v15 = vsel %vm4485_vm15, %v9235_v22, %v9281_v62  ;;  %v4501_v22 = vsel %vm4485_vm15, %v9263_v58, %v9283_v55 }
 0x5ec   :  { %v4538_v10 = vsel %vm4536_vm0, %v4521_v11, 0.0  ;;  %v4541_v18 = vsel %vm4536_vm0, %v4524_v56, 0.0  ;;  %v4516_v23 = vsel %vm4502_vm2, %v4499_v15, %v9328_v0  ;;  %v4518_v62 = vsel %vm4502_vm2, %v4501_v22, %v9342_v61 }
 0x5ed   :  { %4555 = vst.msk [vmem:[%s9509_s10 + $0x8] sm:$0xff] %vm4553_vm4, %v4538_v10  ;;  %4558 = vst.msk [vmem:[%s9509_s10 + $0x20] sm:$0xff] %vm4553_vm4, %v4541_v18 }
 0x5ee   :  { %v4309_v29 = vpop.permute.xlu1 %4308  ;;  %v4315_v37 = vpop.permute.xlu0 %4314 }
 0x5ef   :  { %v4523_v6 = vsel %vm4519_vm3, %v4506_v52, %v4309_v29  ;;  %v4526_v34 = vsel %vm4519_vm3, %v4509_v3, %v4315_v37 }
 0x5f0   :  { %v4540_v14 = vsel %vm4536_vm0, %v4523_v6, 0.0  ;;  %v4543_v4 = vsel %vm4536_vm0, %v4526_v34, 0.0 }
 0x5f1   :  { %4557 = vst.msk [vmem:[%s9509_s10 + $0x18] sm:$0xff] %vm4553_vm4, %v4540_v14  ;;  %4560 = vst.msk [vmem:[%s9509_s10 + $0x30] sm:$0xff] %vm4553_vm4, %v4543_v4 }
 0x5f2   :  { %v4313_v12 = vpop.permute.xlu1 %4312  ;;  %v4319_v2 = vpop.permute.xlu0 %4318 }
 0x5f3   :  { %v4525_v27 = vsel %vm4519_vm3, %v4508_v51, %v4313_v12  ;;  %v4528_v19 = vsel %vm4519_vm3, %v4511_v41, %v4319_v2 }
 0x5f4   :  { %v4542_v28 = vsel %vm4536_vm0, %v4525_v27, 0.0  ;;  %v4545_v54 = vsel %vm4536_vm0, %v4528_v19, 0.0 }
 0x5f5   :  { %4559 = vst.msk [vmem:[%s9509_s10 + $0x28] sm:$0xff] %vm4553_vm4, %v4542_v28  ;;  %4562 = vst.msk [vmem:[%s9509_s10 + $0x40] sm:$0xff] %vm4553_vm4, %v4545_v54 }
 0x5f6   :  { %v4317_v63 = vpop.permute.xlu1 %4316  ;;  %v4323_v13 = vpop.permute.xlu0 %4322 }
 0x5f7   :  { %v4527_v45 = vsel %vm4519_vm3, %v4510_v57, %v4317_v63  ;;  %v4530_v42 = vsel %vm4519_vm3, %v4513_v46, %v4323_v13 }
 0x5f8   :  { %v4544_v35 = vsel %vm4536_vm0, %v4527_v45, 0.0  ;;  %v4547_v53 = vsel %vm4536_vm0, %v4530_v42, 0.0 }
 0x5f9   :  { %4561 = vst.msk [vmem:[%s9509_s10 + $0x38] sm:$0xff] %vm4553_vm4, %v4544_v35  ;;  %4564 = vst.msk [vmem:[%s9509_s10 + $0x50] sm:$0xff] %vm4553_vm4, %v4547_v53 }
 0x5fa   :  { %v4321_v38 = vpop.permute.xlu1 %4320  ;;  %v4327_v8 = vpop.permute.xlu0 %4326 }
 0x5fb   :  { %v4529_v40 = vsel %vm4519_vm3, %v4512_v26, %v4321_v38  ;;  %v4532_v43 = vsel %vm4519_vm3, %v4515_v25, %v4327_v8 }
 0x5fc   :  { %v4546_v24 = vsel %vm4536_vm0, %v4529_v40, 0.0  ;;  %v4549_v21 = vsel %vm4536_vm0, %v4532_v43, 0.0 }
 0x5fd   :  { %4563 = vst.msk [vmem:[%s9509_s10 + $0x48] sm:$0xff] %vm4553_vm4, %v4546_v24  ;;  %4566 = vst.msk [vmem:[%s9509_s10 + $0x60] sm:$0xff] %vm4553_vm4, %v4549_v21 }
 0x5fe   :  { %v4325_v48 = vpop.permute.xlu1 %4324  ;;  %v4331_v32 = vpop.permute.xlu0 %4330 }
 0x5ff   :  { %v4531_v49 = vsel %vm4519_vm3, %v4514_v30, %v4325_v48  ;;  %v4534_v36 = vsel %vm4519_vm3, %v4517_v31, %v4331_v32 }
 0x600   :  { %v4548_v44 = vsel %vm4536_vm0, %v4531_v49, 0.0  ;;  %v4551_v33 = vsel %vm4536_vm0, %v4534_v36, 0.0 }
 0x601   :  { %4565 = vst.msk [vmem:[%s9509_s10 + $0x58] sm:$0xff] %vm4553_vm4, %v4548_v44  ;;  %4568 = vst.msk [vmem:[%s9509_s10 + $0x70] sm:$0xff] %vm4553_vm4, %v4551_v33 }
 0x602   :  { %v4329_v39 = vpop.permute.xlu1 %4328 }
 0x603   :  { %v4533_v17 = vsel %vm4519_vm3, %v4516_v23, %v4329_v39 }
 0x604   :  { %v4550_v9 = vsel %vm4536_vm0, %v4533_v17, 0.0 }
 0x605   :  { %4567 = vst.msk [vmem:[%s9509_s10 + $0x68] sm:$0xff] %vm4553_vm4, %v4550_v9 }
 0x606   :  { %v4333_v11 = vpop.permute.xlu1 %4332 }
 0x607   :  { %v4535_v0 = vsel %vm4519_vm3, %v4518_v62, %v4333_v11 }
 0x608   :  { %v4552_v56 = vsel %vm4536_vm0, %v4535_v0, 0.0 }
 0x609   :  { %4569 = vst.msk [vmem:[%s9509_s10 + $0x78] sm:$0xff] %vm4553_vm4, %v4552_v56 }
 0x60a   :  { %4574 = vsyncpa [#allocation6], 1 }
 0x60b   :  { %4575 = vsyncpa [#allocation8], 1 }

</bundles_post_ra>
